<compile_context>
chip_gen: v5e
topology: v5e:2x2
jax: 0.10.0
libtpu: 0.0.40
codegen_flags: <defaults>
</compile_context>

<pallas_src>
import numpy as np
import jax
import jax.numpy as jnp
from jax.experimental import pallas as pl
from jax.experimental.pallas import tpu as pltpu

IMG_FEAT_DIM = 2048   # nn.Linear(2048, H)
DIST_DIM = 1600       # nn.Linear(1600, H)
LOC_DIM = 5           # nn.Linear(5, H)
LN_EPS = 1e-12


def _round_up(x, m):
    return (x + m - 1) // m * m


def _cdiv(a, b):
    return -(-a // b)


def _supports_pipeline_mode():
    if not hasattr(pl, "Buffered"):
        return False
    try:
        pl.BlockSpec((8, 128), lambda i: (0, 0), pipeline_mode=pl.Buffered(1))
        return True
    except TypeError:
        return False


_SINGLE_BUFFER_RESIDENT = _supports_pipeline_mode()


def _resident_spec(shape):
    """BlockSpec for a grid-invariant (weight / param) operand.

    Single-buffered when the installed Pallas supports pipeline_mode, since
    the block index never changes across the grid."""
    idx = lambda i: (0,) * len(shape)
    if _SINGLE_BUFFER_RESIDENT:
        return pl.BlockSpec(shape, idx, pipeline_mode=pl.Buffered(1))
    return pl.BlockSpec(shape, idx)


def _row_granule(*dtypes):
    g = 8
    for d in dtypes:
        its = np.dtype(d).itemsize
        if its == 2:
            g = max(g, 16)
        elif its == 1:
            g = max(g, 32)
    return g


def _default_tm():
    # 512-row tiles on 128-MiB-VMEM chips (v5e/v6e); 256 on v7x (64 MiB/TC).
    try:
        info = pltpu.get_tpu_info()
        vmem = getattr(info, "vmem_capacity_bytes", 0) or 0
        if vmem >= 96 * 1024 * 1024:
            return 512
    except Exception:
        pass
    return 256


# ----------------------------- kernels ------------------------------------


def _loc_fma(e, loc_ref, w_loc_ref):
    """loc projection as 5 broadcast-FMAs on the VPU (no MXU pass)."""
    loc = loc_ref[...].astype(jnp.float32)       # (tm, 5)
    w_loc = w_loc_ref[...].astype(jnp.float32)   # (5, H)
    for k in range(LOC_DIM):
        e = e + loc[:, k:k + 1] * w_loc[k:k + 1, :]
    return e


def _layernorm_affine(e, gamma, beta):
    mean = jnp.mean(e, axis=-1, keepdims=True)
    c = e - mean
    var = jnp.mean(c * c, axis=-1, keepdims=True)
    inv = jax.lax.rsqrt(var + LN_EPS)
    return c * inv * gamma.astype(jnp.float32) + beta.astype(jnp.float32)


def _emb_kernel_dist(img_ref, dist_ref, loc_ref,
                     w_img_ref, w_dist_ref, w_loc_ref,
                     bias_ref, gamma_ref, beta_ref, out_ref):
    e = jnp.dot(img_ref[...], w_img_ref[...],
                preferred_element_type=jnp.float32)                 # (tm, H)
    e = e + jnp.dot(dist_ref[...], w_dist_ref[...],
                    preferred_element_type=jnp.float32)
    e = _loc_fma(e, loc_ref, w_loc_ref)
    e = e + bias_ref[...]                                           # (1, H) f32
    out = _layernorm_affine(e, gamma_ref[...], beta_ref[...])
    out_ref[...] = out.astype(out_ref.dtype)


def _emb_kernel_nodist(img_ref, loc_ref,
                       w_img_ref, w_loc_ref,
                       bias_ref, gamma_ref, beta_ref, out_ref):
    e = jnp.dot(img_ref[...], w_img_ref[...],
                preferred_element_type=jnp.float32)
    e = _loc_fma(e, loc_ref, w_loc_ref)
    e = e + bias_ref[...]
    out = _layernorm_affine(e, gamma_ref[...], beta_ref[...])
    out_ref[...] = out.astype(out_ref.dtype)


# ----------------------------- wrapper -------------------------------------


def bert_image_embeddings(input_ids, input_loc, input_dist,
                          w_img, b_img, w_dist, b_dist, w_loc, b_loc,
                          gamma, beta, *, tm=None, out_dtype=None):
    """input_ids: (bs, seq, 2048) image features, input_loc: (bs, seq, 5),
       input_dist: (bs, seq, 1600) or None.  Weights stored transposed as
       (in_dim, H).  Inputs/weights stream in their given dtype (bf16 for
       best HBM bandwidth); accumulation + LayerNorm are always f32.
       Returns (bs, seq, H) embeddings in `out_dtype` (default: input dtype).
    """
    bs, seq, _ = input_ids.shape
    H = w_img.shape[1]
    N = bs * seq
    if out_dtype is None:
        out_dtype = input_ids.dtype
    if tm is None:
        tm = _default_tm()

    has_dist = input_dist is not None

    x_img = input_ids.reshape(N, IMG_FEAT_DIM)
    x_loc = input_loc.reshape(N, LOC_DIM)
    x_dist = input_dist.reshape(N, DIST_DIM) if has_dist else None

    # Row-tile granule depends on the narrowest streamed dtype (bf16 -> 16).
    dts = [x_img.dtype, x_loc.dtype, out_dtype] + ([x_dist.dtype] if has_dist else [])
    granule = _row_granule(*dts)

    # Clip the tile to the token count; keep >= 2 grid steps when possible so
    # the "parallel" row axis can split across both v7x TensorCores.
    tm = _round_up(min(tm, _round_up(N, granule)), granule)
    if _cdiv(N, tm) < 2 and N > granule:
        tm = max(granule, _round_up(_cdiv(N, 2), granule))
    grid = (_cdiv(N, tm),)

    # Fuse the per-branch biases once (H-sized vectors, negligible).  When
    # input_dist is None the dist projection AND its bias are omitted,
    # exactly like the PyTorch forward.
    if has_dist:
        bias_sum = (b_img.astype(jnp.float32) + b_dist.astype(jnp.float32)
                    + b_loc.astype(jnp.float32))
    else:
        bias_sum = b_img.astype(jnp.float32) + b_loc.astype(jnp.float32)
    bias2 = bias_sum.reshape(1, H)
    gamma2 = gamma.reshape(1, H).astype(jnp.float32)
    beta2 = beta.reshape(1, H).astype(jnp.float32)

    def row_spec(k):
        return pl.BlockSpec((tm, k), lambda i: (i, 0))

    in_arrays = [x_img]
    in_specs = [row_spec(IMG_FEAT_DIM)]
    if has_dist:
        in_arrays.append(x_dist)
        in_specs.append(row_spec(DIST_DIM))       # full-dim K=1600, no padding
    in_arrays.append(x_loc)
    in_specs.append(row_spec(LOC_DIM))            # full-dim K=5, no padding

    in_arrays.append(w_img)
    in_specs.append(_resident_spec((IMG_FEAT_DIM, H)))
    if has_dist:
        in_arrays.append(w_dist)
        in_specs.append(_resident_spec((DIST_DIM, H)))
    in_arrays.append(w_loc)
    in_specs.append(_resident_spec((LOC_DIM, H)))
    for p in (bias2, gamma2, beta2):
        in_arrays.append(p)
        in_specs.append(_resident_spec((1, H)))

    kernel = _emb_kernel_dist if has_dist else _emb_kernel_nodist

    # Right-size the VMEM request from the actual footprint: double-buffered
    # streamed tiles + resident params (+ f32 LN intermediates + headroom).
    streamed = tm * (IMG_FEAT_DIM * np.dtype(x_img.dtype).itemsize
                     + (DIST_DIM * np.dtype(x_dist.dtype).itemsize if has_dist else 0)
                     + LOC_DIM * np.dtype(x_loc.dtype).itemsize
                     + H * np.dtype(out_dtype).itemsize)
    n_wbuf = 1 if _SINGLE_BUFFER_RESIDENT else 2
    resident = n_wbuf * (IMG_FEAT_DIM * H * np.dtype(w_img.dtype).itemsize
                         + (DIST_DIM * H * np.dtype(w_dist.dtype).itemsize if has_dist else 0)
                         + LOC_DIM * H * np.dtype(w_loc.dtype).itemsize
                         + 3 * H * 4)
    vmem_limit = int(2 * streamed + resident + 4 * tm * H * 4) + (4 << 20)
    vmem_limit = min(max(vmem_limit, 32 << 20), 100 << 20)

    out = pl.pallas_call(
        kernel,
        out_shape=jax.ShapeDtypeStruct((N, H), out_dtype),
        grid_spec=pltpu.PrefetchScalarGridSpec(
            num_scalar_prefetch=0,
            grid=grid,
            in_specs=in_specs,
            out_specs=pl.BlockSpec((tm, H), lambda i: (i, 0)),   # lane-dense out
        ),
        compiler_params=pltpu.CompilerParams(
            dimension_semantics=("parallel",),     # no cross-step state
            vmem_limit_bytes=vmem_limit),
    )(*in_arrays)

    # TODO(synk): dropout(p=0.1) is identity at inference; training-mode mask
    # (pltpu.prng_random_bits) not implemented here.
    # TODO(synk): token_type_ids is constructed but unused by the original
    # forward; the original input_loc=None default path is broken upstream
    # (torch.arange(np.zeros(...))) -- callers must pass input_loc (or zeros).
    return out.reshape(bs, seq, H)


# ----------------------------- reference / demo ----------------------------


def _reference(input_ids, input_loc, input_dist,
               w_img, b_img, w_dist, b_dist, w_loc, b_loc, gamma, beta):
    hp = jax.lax.Precision.HIGHEST
    e = jnp.dot(input_ids, w_img, precision=hp) + b_img
    e = e + jnp.dot(input_loc, w_loc, precision=hp) + b_loc
    if input_dist is not None:
        e = e + jnp.dot(input_dist, w_dist, precision=hp) + b_dist
    mean = jnp.mean(e, axis=-1, keepdims=True)
    var = jnp.mean((e - mean) ** 2, axis=-1, keepdims=True)
    return (e - mean) * jax.lax.rsqrt(var + LN_EPS) * gamma + beta


if __name__ == "__main__":
    key = jax.random.PRNGKey(0)
    bs, seq, H = 2, 8, 256   # small hidden_size consistent with the module

    keys = jax.random.split(key, 9)
    # Large operands live in bf16 so the kernel streams bf16 straight from
    # HBM (no wrapper cast/pad passes); tiny params stay f32.
    input_ids = jax.random.normal(
        keys[0], (bs, seq, IMG_FEAT_DIM), jnp.float32).astype(jnp.bfloat16)
    input_loc = jax.random.uniform(keys[1], (bs, seq, LOC_DIM), jnp.float32)
    input_dist = jax.random.normal(
        keys[2], (bs, seq, DIST_DIM), jnp.float32).astype(jnp.bfloat16)

    def linear_init(kw, kb, fan_in, fan_out, wdtype):
        bound = 1.0 / (fan_in ** 0.5)
        w = jax.random.uniform(kw, (fan_in, fan_out), jnp.float32, -bound, bound)
        b = jax.random.uniform(kb, (fan_out,), jnp.float32, -bound, bound)
        return w.astype(wdtype), b

    w_img, b_img = linear_init(keys[3], keys[4], IMG_FEAT_DIM, H, jnp.bfloat16)
    w_dist, b_dist = linear_init(keys[5], keys[6], DIST_DIM, H, jnp.bfloat16)
    w_loc, b_loc = linear_init(keys[7], keys[8], LOC_DIM, H, jnp.float32)
    gamma = jnp.ones((H,), jnp.float32)
    beta = jnp.zeros((H,), jnp.float32)

    # Path with input_dist.
    out = bert_image_embeddings(input_ids, input_loc, input_dist,
                                w_img, b_img, w_dist, b_dist, w_loc, b_loc,
                                gamma, beta)
    jax.block_until_ready(out)
    assert out.shape == (bs, seq, H)

    ref = _reference(input_ids.astype(jnp.float32), input_loc,
                     input_dist.astype(jnp.float32),
                     w_img.astype(jnp.float32), b_img,
                     w_dist.astype(jnp.float32), b_dist,
                     w_loc, b_loc, gamma, beta)
    err = float(jnp.max(jnp.abs(out.astype(jnp.float32) - ref)))
    assert jnp.allclose(out.astype(jnp.float32), ref, atol=2e-2, rtol=2e-2), err

    # Specialized path without input_dist (no zero tensor streamed).
    out_nd = bert_image_embeddings(input_ids, input_loc, None,
                                   w_img, b_img, w_dist, b_dist, w_loc, b_loc,
                                   gamma, beta)
    jax.block_until_ready(out_nd)
    ref_nd = _reference(input_ids.astype(jnp.float32), input_loc, None,
                        w_img.astype(jnp.float32), b_img,
                        w_dist.astype(jnp.float32), b_dist,
                        w_loc, b_loc, gamma, beta)
    err_nd = float(jnp.max(jnp.abs(out_nd.astype(jnp.float32) - ref_nd)))
    assert jnp.allclose(out_nd.astype(jnp.float32), ref_nd,
                        atol=2e-2, rtol=2e-2), err_nd

    print("KERNEL_OK")
</pallas_src>

<mosaic_0001>
module attributes {stable_mosaic.version = 11 : i64} {
  func.func @_emb_kernel_dist(%arg0: i32, %arg1: memref<16x2048xbf16, #tpu.memory_space<vmem>>, %arg2: memref<16x1600xbf16, #tpu.memory_space<vmem>>, %arg3: memref<16x5xf32, #tpu.memory_space<vmem>>, %arg4: memref<2048x256xbf16, #tpu.memory_space<vmem>>, %arg5: memref<1600x256xbf16, #tpu.memory_space<vmem>>, %arg6: memref<5x256xf32, #tpu.memory_space<vmem>>, %arg7: memref<1x256xf32, #tpu.memory_space<vmem>>, %arg8: memref<1x256xf32, #tpu.memory_space<vmem>>, %arg9: memref<1x256xf32, #tpu.memory_space<vmem>>, %arg10: memref<16x256xbf16, #tpu.memory_space<vmem>>) attributes {dimension_semantics = [#tpu.dimension_semantics<parallel>], iteration_bounds = array<i64: 1>, scalar_prefetch = 0 : i64, scratch_operands = 0 : i64, tpu.core_type = #tpu.core_type<tc>, window_params = [{transform_indices = @transform_0, window_bounds = array<i64: 16, 2048>}, {transform_indices = @transform_1, window_bounds = array<i64: 16, 1600>}, {transform_indices = @transform_2, window_bounds = array<i64: 16, 5>}, {pipeline_mode = #tpu.pipeline_mode<synchronous>, transform_indices = @transform_3, window_bounds = array<i64: 2048, 256>}, {pipeline_mode = #tpu.pipeline_mode<synchronous>, transform_indices = @transform_4, window_bounds = array<i64: 1600, 256>}, {pipeline_mode = #tpu.pipeline_mode<synchronous>, transform_indices = @transform_5, window_bounds = array<i64: 5, 256>}, {pipeline_mode = #tpu.pipeline_mode<synchronous>, transform_indices = @transform_6, window_bounds = array<i64: 1, 256>}, {pipeline_mode = #tpu.pipeline_mode<synchronous>, transform_indices = @transform_7, window_bounds = array<i64: 1, 256>}, {pipeline_mode = #tpu.pipeline_mode<synchronous>, transform_indices = @transform_8, window_bounds = array<i64: 1, 256>}, {transform_indices = @transform_9, window_bounds = array<i64: 16, 256>}]} {
    %c0 = arith.constant 0 : index
    %c0_0 = arith.constant 0 : index
    %0 = vector.load %arg1[%c0, %c0_0] : memref<16x2048xbf16, #tpu.memory_space<vmem>>, vector<16x2048xbf16>
    %c0_1 = arith.constant 0 : index
    %c0_2 = arith.constant 0 : index
    %1 = vector.load %arg4[%c0_1, %c0_2] : memref<2048x256xbf16, #tpu.memory_space<vmem>>, vector<2048x256xbf16>
    %cst = arith.constant dense<0.000000e+00> : vector<16x256xf32>
    %2 = tpu.matmul %0, %1, %cst {dimension_numbers = #tpu.dot_dimension_numbers<[1], [0], [0], [1], [0, 0, 1, 1], [], []>} : vector<16x2048xbf16>, vector<2048x256xbf16>, vector<16x256xf32> -> vector<16x256xf32>
    %c0_3 = arith.constant 0 : index
    %c0_4 = arith.constant 0 : index
    %3 = vector.load %arg2[%c0_3, %c0_4] : memref<16x1600xbf16, #tpu.memory_space<vmem>>, vector<16x1600xbf16>
    %c0_5 = arith.constant 0 : index
    %c0_6 = arith.constant 0 : index
    %4 = vector.load %arg5[%c0_5, %c0_6] : memref<1600x256xbf16, #tpu.memory_space<vmem>>, vector<1600x256xbf16>
    %cst_7 = arith.constant dense<0.000000e+00> : vector<16x256xf32>
    %5 = tpu.matmul %3, %4, %cst_7 {dimension_numbers = #tpu.dot_dimension_numbers<[1], [0], [0], [1], [0, 0, 1, 1], [], []>} : vector<16x1600xbf16>, vector<1600x256xbf16>, vector<16x256xf32> -> vector<16x256xf32>
    %6 = arith.addf %2, %5 : vector<16x256xf32>
    %c0_8 = arith.constant 0 : index
    %c0_9 = arith.constant 0 : index
    %7 = vector.load %arg3[%c0_8, %c0_9] : memref<16x5xf32, #tpu.memory_space<vmem>>, vector<16x5xf32>
    %c0_10 = arith.constant 0 : index
    %c0_11 = arith.constant 0 : index
    %8 = vector.load %arg6[%c0_10, %c0_11] : memref<5x256xf32, #tpu.memory_space<vmem>>, vector<5x256xf32>
    %9 = vector.extract_strided_slice %7 {offsets = [0, 0], sizes = [16, 1], strides = [1, 1]} : vector<16x5xf32> to vector<16x1xf32>
    %10 = vector.extract_strided_slice %8 {offsets = [0, 0], sizes = [1, 256], strides = [1, 1]} : vector<5x256xf32> to vector<1x256xf32>
    %11 = vector.broadcast %9 : vector<16x1xf32> to vector<16x256xf32>
    %12 = vector.broadcast %10 : vector<1x256xf32> to vector<16x256xf32>
    %13 = arith.mulf %11, %12 : vector<16x256xf32>
    %14 = arith.addf %6, %13 : vector<16x256xf32>
    %15 = vector.extract_strided_slice %7 {offsets = [0, 1], sizes = [16, 1], strides = [1, 1]} : vector<16x5xf32> to vector<16x1xf32>
    %16 = vector.extract_strided_slice %8 {offsets = [1, 0], sizes = [1, 256], strides = [1, 1]} : vector<5x256xf32> to vector<1x256xf32>
    %17 = vector.broadcast %15 : vector<16x1xf32> to vector<16x256xf32>
    %18 = vector.broadcast %16 : vector<1x256xf32> to vector<16x256xf32>
    %19 = arith.mulf %17, %18 : vector<16x256xf32>
    %20 = arith.addf %14, %19 : vector<16x256xf32>
    %21 = vector.extract_strided_slice %7 {offsets = [0, 2], sizes = [16, 1], strides = [1, 1]} : vector<16x5xf32> to vector<16x1xf32>
    %22 = vector.extract_strided_slice %8 {offsets = [2, 0], sizes = [1, 256], strides = [1, 1]} : vector<5x256xf32> to vector<1x256xf32>
    %23 = vector.broadcast %21 : vector<16x1xf32> to vector<16x256xf32>
    %24 = vector.broadcast %22 : vector<1x256xf32> to vector<16x256xf32>
    %25 = arith.mulf %23, %24 : vector<16x256xf32>
    %26 = arith.addf %20, %25 : vector<16x256xf32>
    %27 = vector.extract_strided_slice %7 {offsets = [0, 3], sizes = [16, 1], strides = [1, 1]} : vector<16x5xf32> to vector<16x1xf32>
    %28 = vector.extract_strided_slice %8 {offsets = [3, 0], sizes = [1, 256], strides = [1, 1]} : vector<5x256xf32> to vector<1x256xf32>
    %29 = vector.broadcast %27 : vector<16x1xf32> to vector<16x256xf32>
    %30 = vector.broadcast %28 : vector<1x256xf32> to vector<16x256xf32>
    %31 = arith.mulf %29, %30 : vector<16x256xf32>
    %32 = arith.addf %26, %31 : vector<16x256xf32>
    %33 = vector.extract_strided_slice %7 {offsets = [0, 4], sizes = [16, 1], strides = [1, 1]} : vector<16x5xf32> to vector<16x1xf32>
    %34 = vector.extract_strided_slice %8 {offsets = [4, 0], sizes = [1, 256], strides = [1, 1]} : vector<5x256xf32> to vector<1x256xf32>
    %35 = vector.broadcast %33 : vector<16x1xf32> to vector<16x256xf32>
    %36 = vector.broadcast %34 : vector<1x256xf32> to vector<16x256xf32>
    %37 = arith.mulf %35, %36 : vector<16x256xf32>
    %38 = arith.addf %32, %37 : vector<16x256xf32>
    %c0_12 = arith.constant 0 : index
    %c0_13 = arith.constant 0 : index
    %39 = vector.load %arg7[%c0_12, %c0_13] : memref<1x256xf32, #tpu.memory_space<vmem>>, vector<1x256xf32>
    %40 = vector.broadcast %39 : vector<1x256xf32> to vector<16x256xf32>
    %41 = arith.addf %38, %40 : vector<16x256xf32>
    %c0_14 = arith.constant 0 : index
    %c0_15 = arith.constant 0 : index
    %42 = vector.load %arg8[%c0_14, %c0_15] : memref<1x256xf32, #tpu.memory_space<vmem>>, vector<1x256xf32>
    %c0_16 = arith.constant 0 : index
    %c0_17 = arith.constant 0 : index
    %43 = vector.load %arg9[%c0_16, %c0_17] : memref<1x256xf32, #tpu.memory_space<vmem>>, vector<1x256xf32>
    %cst_18 = arith.constant dense<0.000000e+00> : vector<16xf32>
    %44 = vector.multi_reduction <add>, %41, %cst_18 [1] : vector<16x256xf32> to vector<16xf32>
    %45 = vector.shape_cast %44 : vector<16xf32> to vector<16x1xf32>
    %cst_19 = arith.constant 2.560000e+02 : f32
    %46 = vector.broadcast %cst_19 : f32 to vector<16x1xf32>
    %47 = arith.divf %45, %46 : vector<16x1xf32>
    %48 = vector.broadcast %47 : vector<16x1xf32> to vector<16x256xf32>
    %49 = arith.subf %41, %48 : vector<16x256xf32>
    %50 = arith.mulf %49, %49 : vector<16x256xf32>
    %cst_20 = arith.constant dense<0.000000e+00> : vector<16xf32>
    %51 = vector.multi_reduction <add>, %50, %cst_20 [1] : vector<16x256xf32> to vector<16xf32>
    %52 = vector.shape_cast %51 : vector<16xf32> to vector<16x1xf32>
    %cst_21 = arith.constant 2.560000e+02 : f32
    %53 = vector.broadcast %cst_21 : f32 to vector<16x1xf32>
    %54 = arith.divf %52, %53 : vector<16x1xf32>
    %cst_22 = arith.constant 9.99999996E-13 : f32
    %55 = vector.broadcast %cst_22 : f32 to vector<16x1xf32>
    %56 = arith.addf %54, %55 : vector<16x1xf32>
    %57 = math.rsqrt %56 : vector<16x1xf32>
    %58 = vector.broadcast %57 : vector<16x1xf32> to vector<16x256xf32>
    %59 = arith.mulf %49, %58 : vector<16x256xf32>
    %60 = vector.broadcast %42 : vector<1x256xf32> to vector<16x256xf32>
    %61 = arith.mulf %59, %60 : vector<16x256xf32>
    %62 = vector.broadcast %43 : vector<1x256xf32> to vector<16x256xf32>
    %63 = arith.addf %61, %62 : vector<16x256xf32>
    %64 = arith.truncf %63 : vector<16x256xf32> to vector<16x256xbf16>
    %c0_23 = arith.constant 0 : index
    %c0_24 = arith.constant 0 : index
    %65 = vector.load %arg10[%c0_23, %c0_24] : memref<16x256xbf16, #tpu.memory_space<vmem>>, vector<16x256xbf16>
    tpu.vector_store %arg10[%c0_23, %c0_24], %64 {strides = array<i32>} : memref<16x256xbf16, #tpu.memory_space<vmem>>, vector<16x256xbf16>,
    return
  }
  func.func @transform_0(%arg0: i32) -> (i32, i32) {
    %c0_i32 = arith.constant 0 : i32
    %c0_i32_0 = arith.constant 0 : i32
    return %arg0, %c0_i32 : i32, i32
  }
  func.func @transform_1(%arg0: i32) -> (i32, i32) {
    %c0_i32 = arith.constant 0 : i32
    %c0_i32_0 = arith.constant 0 : i32
    return %arg0, %c0_i32 : i32, i32
  }
  func.func @transform_2(%arg0: i32) -> (i32, i32) {
    %c0_i32 = arith.constant 0 : i32
    %c0_i32_0 = arith.constant 0 : i32
    return %arg0, %c0_i32 : i32, i32
  }
  func.func @transform_3(%arg0: i32) -> (i32, i32) {
    %c0_i32 = arith.constant 0 : i32
    %c0_i32_0 = arith.constant 0 : i32
    %c0_i32_1 = arith.constant 0 : i32
    return %c0_i32, %c0_i32_0 : i32, i32
  }
  func.func @transform_4(%arg0: i32) -> (i32, i32) {
    %c0_i32 = arith.constant 0 : i32
    %c0_i32_0 = arith.constant 0 : i32
    %c0_i32_1 = arith.constant 0 : i32
    return %c0_i32, %c0_i32_0 : i32, i32
  }
  func.func @transform_5(%arg0: i32) -> (i32, i32) {
    %c0_i32 = arith.constant 0 : i32
    %c0_i32_0 = arith.constant 0 : i32
    %c0_i32_1 = arith.constant 0 : i32
    return %c0_i32, %c0_i32_0 : i32, i32
  }
  func.func @transform_6(%arg0: i32) -> (i32, i32) {
    %c0_i32 = arith.constant 0 : i32
    %c0_i32_0 = arith.constant 0 : i32
    %c0_i32_1 = arith.constant 0 : i32
    return %c0_i32, %c0_i32_0 : i32, i32
  }
  func.func @transform_7(%arg0: i32) -> (i32, i32) {
    %c0_i32 = arith.constant 0 : i32
    %c0_i32_0 = arith.constant 0 : i32
    %c0_i32_1 = arith.constant 0 : i32
    return %c0_i32, %c0_i32_0 : i32, i32
  }
  func.func @transform_8(%arg0: i32) -> (i32, i32) {
    %c0_i32 = arith.constant 0 : i32
    %c0_i32_0 = arith.constant 0 : i32
    %c0_i32_1 = arith.constant 0 : i32
    return %c0_i32, %c0_i32_0 : i32, i32
  }
  func.func @transform_9(%arg0: i32) -> (i32, i32) {
    %c0_i32 = arith.constant 0 : i32
    %c0_i32_0 = arith.constant 0 : i32
    return %arg0, %c0_i32 : i32, i32
  }
}

</mosaic_0001>

<bundles_post_ra>
// kernel: tpu_custom_call.1
= control target key start
LH: loop header
LB: loop body
LE: loop exit
PB: predicated region body
PF: predicated region fallthrough
CT: control target
= control target key end

     0   :  { %14 = vsyncpa [#allocation3], 0  ;;  %s6947_s0 = inlined_call_operand.hbm [shape: bf16[16,2048], index: 0, kind: input, shape index: {}]   ;;  %s6948_s1 = inlined_call_operand.hbm [shape: bf16[16,1600], index: 1, kind: input, shape index: {}]   ;;  %s6949_s2 = inlined_call_operand.vmem [shape: f32[16,5], index: 2, kind: input, shape index: {}]   ;;  %s6950_s3 = inlined_call_operand.hbm [shape: bf16[2048,256], index: 3, kind: input, shape index: {}]   ;;  %s6951_s4 = inlined_call_operand.hbm [shape: bf16[1600,256], index: 4, kind: input, shape index: {}]   ;;  %s6952_s5 = inlined_call_operand.vmem [shape: f32[5,256], index: 5, kind: input, shape index: {}]   ;;  %s6953_s6 = inlined_call_operand.vmem [shape: f32[1,256], index: 6, kind: input, shape index: {}]   ;;  %s6954_s7 = inlined_call_operand.vmem [shape: f32[1,256], index: 7, kind: input, shape index: {}]   ;;  %s6955_s8 = inlined_call_operand.vmem [shape: f32[1,256], index: 8, kind: input, shape index: {}]   ;;  %s6956_s9 = inlined_call_operand.hbm [shape: bf16[16,256], index: 9, kind: output, shape index: {}]  }
   0x1   :  { %15 = vsyncpa [#allocation6], 0 }
   0x2   :  { %16 = vsyncpa [#allocation9], 0  ;;  %s35_s11 = sshll.u32 %s6948_s1, 4  ;;  %s36_s11 = int_to_ptr.hbm [resolvable:$true] %s35_s11 }
   0x3   :  { %17 = vsyncpa [#allocation4], 0  ;;  %s6618_s12 = smov [#allocation5]   ;;  %s22_s16 = sshll.u32 %s6947_s0, 4  ;;  %s23_s16 = int_to_ptr.hbm [resolvable:$true] %s22_s16 }
   0x4   :  { %s37_s13 = sshll.u32 %s6618_s12, 4  ;;  %s6619_s17 = smov 832   ;;  %s38_s13 = int_to_ptr.vmem [resolvable:$true] %s37_s13 }
   0x5   :  { %s6620_s18 = smov 52   ;;  %s6621_s19 = smov [#allocation2]  }
   0x6   :  { %43 = dma.hbm_to_vmem [thread:$0]  %s36_s11, 1664, %s38_s13, [#allocation6], %s6619_s17, %s6619_s17, %s6620_s18  }
   0x7   :  { %s24_s20 = sshll.u32 %s6621_s19, 4  ;;  %s6622_s21 = smov 1024   ;;  %s25_s20 = int_to_ptr.vmem [resolvable:$true] %s24_s20 }
   0x8   :  { %s6623_s22 = smov 64   ;;  %s50_s24 = sshll.u32 %s6950_s3, 4  ;;  %s51_s24 = int_to_ptr.hbm [resolvable:$true] %s50_s24 }
   0x9   :  { %30 = dma.hbm_to_vmem [thread:$0]  %s23_s16, 2048, %s25_s20, [#allocation3], %s6622_s21, %s6622_s21, %s6623_s22  }
   0xa   :  { %s6624_s25 = smov [#allocation7]   ;;  %s63_s28 = sshll.u32 %s6951_s4, 4  ;;  %s64_s28 = int_to_ptr.hbm [resolvable:$true] %s63_s28 }
   0xb   :  { %s52_s26 = sshll.u32 %s6624_s25, 4  ;;  %s6625_s29 = smov 128   ;;  %s53_s26 = int_to_ptr.vmem [resolvable:$true] %s52_s26 }
   0xc   :  { %s6626_s30 = smov 8   ;;  %s6627_s10 = smov [#allocation8]  }
   0xd   :  { %58 = dma.hbm_to_vmem [thread:$0]  %s51_s24, 32768, %s53_s26, [#allocation6], %s6625_s29, %s6625_s29, %s6626_s30  }
   0xe   :  { %s65_s11 = sshll.u32 %s6627_s10, 4  ;;  %s66_s11 = int_to_ptr.vmem [resolvable:$true] %s65_s11 }
   0xf   :  { %71 = dma.hbm_to_vmem [thread:$0]  %s64_s28, 25600, %s66_s11, [#allocation9], %s6625_s29, %s6625_s29, %s6626_s30  }
  0x10   :  { %6610 = dma.done.wait [#allocation3], 2048  }
  0x11   :  { %6611 = vsyncadd [#allocation3], 4294965248 }
  0x12   :  { %6612 = dma.done.wait [#allocation6], 34432  }
  0x13   :  { %6613 = vsyncadd [#allocation6], 4294932864 }
  0x14   :  { %6614 = dma.done.wait [#allocation9], 25600  }
  0x15   :  { %6615 = vsyncadd [#allocation9], 4294941696  ;;  %v4142_v0 = vld [vmem:[#allocation8 + $0x70] sm:$0xf]  ;;  %v6274_v1 = vld [vmem:[#allocation8 + $0x74] sm:$0xf0] }
  0x16   :  { %v4206_v2 = vld [vmem:[#allocation8 + $0xf0] sm:$0xf]  ;;  %v4143_v3 = vor.u32 %v6274_v1, %v4142_v0  ;;  %v6290_v4 = vld [vmem:[#allocation8 + $0xf4] sm:$0xf0]  ;;  %v4134_v11 = vld [vmem:[#allocation8 + $0x60] sm:$0xf] }
  0x17   :  { %v4270_v5 = vld [vmem:[#allocation8 + $0x170] sm:$0xf]  ;;  %v6306_v6 = vld [vmem:[#allocation8 + $0x174] sm:$0xf0]  ;;  %v4207_v7 = vor.u32 %v6290_v4, %v4206_v2  ;;  %v6272_v13 = vld [vmem:[#allocation8 + $0x64] sm:$0xf0] }
  0x18   :  { %v4271_v8 = vor.u32 %v6306_v6, %v4270_v5  ;;  %v4334_v9 = vld [vmem:[#allocation8 + $0x1f0] sm:$0xf]  ;;  %v6322_v10 = vld [vmem:[#allocation8 + $0x1f4] sm:$0xf0]  ;;  %1652 = vmatpush.bf16.msra.mxu0 %v4143_v3  ;;  %v4198_v14 = vld [vmem:[#allocation8 + $0xe0] sm:$0xf]  ;;  %v4135_v16 = vor.u32 %v6272_v13, %v4134_v11 }
  0x19   :  { %v4335_v12 = vor.u32 %v6322_v10, %v4334_v9  ;;  %v6288_v15 = vld [vmem:[#allocation8 + $0xe4] sm:$0xf0]  ;;  %1666 = vmatpush.bf16.msra.mxu1 %v4207_v7  ;;  %v4262_v18 = vld [vmem:[#allocation8 + $0x160] sm:$0xf]  ;;  %v4126_v23 = vld [vmem:[#allocation8 + $0x50] sm:$0xf] }
  0x1a   :  { %1680 = vmatpush.bf16.msra.mxu2 %v4271_v8  ;;  %v4199_v17 = vor.u32 %v6288_v15, %v4198_v14  ;;  %v6304_v19 = vld [vmem:[#allocation8 + $0x164] sm:$0xf0]  ;;  %v4326_v20 = vld [vmem:[#allocation8 + $0x1e0] sm:$0xf]  ;;  %v6270_v24 = vld [vmem:[#allocation8 + $0x54] sm:$0xf0] }
  0x1b   :  { %1694 = vmatpush.bf16.msra.mxu3 %v4335_v12  ;;  %v4263_v21 = vor.u32 %v6304_v19, %v4262_v18  ;;  %v6320_v22 = vld [vmem:[#allocation8 + $0x1e4] sm:$0xf0]  ;;  %v4190_v26 = vld [vmem:[#allocation8 + $0xd0] sm:$0xf]  ;;  %v6286_v27 = vld [vmem:[#allocation8 + $0xd4] sm:$0xf0]  ;;  %v4127_v29 = vor.u32 %v6270_v24, %v4126_v23 }
  0x1c   :  { %v4327_v25 = vor.u32 %v6320_v22, %v4326_v20  ;;  %v4254_v28 = vld [vmem:[#allocation8 + $0x150] sm:$0xf]  ;;  %1653 = vmatpush.bf16.msra.mxu0 %v4135_v16  ;;  %v6302_v30 = vld [vmem:[#allocation8 + $0x154] sm:$0xf0]  ;;  %v4191_v33 = vor.u32 %v6286_v27, %v4190_v26  ;;  %v4118_v35 = vld [vmem:[#allocation8 + $0x40] sm:$0xf] }
  0x1d   :  { %v4318_v31 = vld [vmem:[#allocation8 + $0x1d0] sm:$0xf]  ;;  %v6318_v32 = vld [vmem:[#allocation8 + $0x1d4] sm:$0xf0]  ;;  %1667 = vmatpush.bf16.msra.mxu1 %v4199_v17  ;;  %v4255_v34 = vor.u32 %v6302_v30, %v4254_v28  ;;  %v6268_v36 = vld [vmem:[#allocation8 + $0x44] sm:$0xf0] }
  0x1e   :  { %1681 = vmatpush.bf16.msra.mxu2 %v4263_v21  ;;  %v4182_v37 = vld [vmem:[#allocation8 + $0xc0] sm:$0xf]  ;;  %v4319_v38 = vor.u32 %v6318_v32, %v4318_v31  ;;  %v6284_v39 = vld [vmem:[#allocation8 + $0xc4] sm:$0xf0]  ;;  %v4119_v44 = vor.u32 %v6268_v36, %v4118_v35  ;;  %v4110_v47 = vld [vmem:[#allocation8 + $0x30] sm:$0xf] }
  0x1f   :  { %1695 = vmatpush.bf16.msra.mxu3 %v4327_v25  ;;  %v4246_v40 = vld [vmem:[#allocation8 + $0x140] sm:$0xf]  ;;  %v6300_v41 = vld [vmem:[#allocation8 + $0x144] sm:$0xf0]  ;;  %v4183_v45 = vor.u32 %v6284_v39, %v4182_v37  ;;  %v6266_v48 = vld [vmem:[#allocation8 + $0x34] sm:$0xf0] }
  0x20   :  { %v4310_v42 = vld [vmem:[#allocation8 + $0x1c0] sm:$0xf]  ;;  %v6316_v43 = vld [vmem:[#allocation8 + $0x1c4] sm:$0xf0]  ;;  %1654 = vmatpush.bf16.msra.mxu0 %v4127_v29  ;;  %v4247_v46 = vor.u32 %v6300_v41, %v4246_v40  ;;  %v4174_v49 = vld [vmem:[#allocation8 + $0xb0] sm:$0xf]  ;;  %v4111_v56 = vor.u32 %v6266_v48, %v4110_v47 }
  0x21   :  { %1668 = vmatpush.bf16.msra.mxu1 %v4191_v33  ;;  %v4311_v50 = vor.u32 %v6316_v43, %v4310_v42  ;;  %v6282_v51 = vld [vmem:[#allocation8 + $0xb4] sm:$0xf0]  ;;  %v4238_v52 = vld [vmem:[#allocation8 + $0x130] sm:$0xf]  ;;  %v4102_v59 = vld [vmem:[#allocation8 + $0x20] sm:$0xf] }
  0x22   :  { %1682 = vmatpush.bf16.msra.mxu2 %v4255_v34  ;;  %v6298_v53 = vld [vmem:[#allocation8 + $0x134] sm:$0xf0]  ;;  %v4302_v54 = vld [vmem:[#allocation8 + $0x1b0] sm:$0xf]  ;;  %v4175_v57 = vor.u32 %v6282_v51, %v4174_v49  ;;  %v6264_v60 = vld [vmem:[#allocation8 + $0x24] sm:$0xf0] }
  0x23   :  { %1696 = vmatpush.bf16.msra.mxu3 %v4319_v38  ;;  %v6314_v55 = vld [vmem:[#allocation8 + $0x1b4] sm:$0xf0]  ;;  %v4239_v58 = vor.u32 %v6298_v53, %v4238_v52  ;;  %v4166_v61 = vld [vmem:[#allocation8 + $0xa0] sm:$0xf]  ;;  %v6280_v63 = vld [vmem:[#allocation8 + $0xa4] sm:$0xf0]  ;;  %v4103_v4 = vor.u32 %v6264_v60, %v4102_v59 }
  0x24   :  { %1655 = vmatpush.bf16.msra.mxu0 %v4119_v44  ;;  %v4303_v62 = vor.u32 %v6314_v55, %v4302_v54  ;;  %v4230_v0 = vld [vmem:[#allocation8 + $0x120] sm:$0xf]  ;;  %v6296_v1 = vld [vmem:[#allocation8 + $0x124] sm:$0xf0]  ;;  %v4167_v5 = vor.u32 %v6280_v63, %v4166_v61  ;;  %v4094_v7 = vld [vmem:[#allocation8 + $0x10] sm:$0xf] }
  0x25   :  { %1669 = vmatpush.bf16.msra.mxu1 %v4183_v45  ;;  %v4294_v2 = vld [vmem:[#allocation8 + $0x1a0] sm:$0xf]  ;;  %v6312_v3 = vld [vmem:[#allocation8 + $0x1a4] sm:$0xf0]  ;;  %v4231_v6 = vor.u32 %v6296_v1, %v4230_v0  ;;  %v6262_v8 = vld [vmem:[#allocation8 + $0x14] sm:$0xf0] }
  0x26   :  { %1683 = vmatpush.bf16.msra.mxu2 %v4247_v46  ;;  %v4158_v9 = vld [vmem:[#allocation8 + $0x90] sm:$0xf]  ;;  %v4295_v10 = vor.u32 %v6312_v3, %v4294_v2  ;;  %v6278_v11 = vld [vmem:[#allocation8 + $0x94] sm:$0xf0]  ;;  %v4095_v16 = vor.u32 %v6262_v8, %v4094_v7  ;;  %v4086_v17 = vld [vmem:[#allocation8] sm:$0xf] }
  0x27   :  { %1697 = vmatpush.bf16.msra.mxu3 %v4311_v50  ;;  %v4222_v12 = vld [vmem:[#allocation8 + $0x110] sm:$0xf]  ;;  %v6294_v13 = vld [vmem:[#allocation8 + $0x114] sm:$0xf0]  ;;  %v6260_v18 = vld [vmem:[#allocation8 + $0x4] sm:$0xf0]  ;;  %v4159_v19 = vor.u32 %v6278_v11, %v4158_v9 }
  0x28   :  { %1656 = vmatpush.bf16.msra.mxu0 %v4111_v56  ;;  %v4286_v14 = vld [vmem:[#allocation8 + $0x190] sm:$0xf]  ;;  %v6310_v15 = vld [vmem:[#allocation8 + $0x194] sm:$0xf0]  ;;  %v4223_v20 = vor.u32 %v6294_v13, %v4222_v12  ;;  %v4150_v21 = vld [vmem:[#allocation8 + $0x80] sm:$0xf]  ;;  %v4087_v31 = vor.u32 %v6260_v18, %v4086_v17 }
  0x29   :  { %1670 = vmatpush.bf16.msra.mxu1 %v4175_v57  ;;  %v6276_v22 = vld [vmem:[#allocation8 + $0x84] sm:$0xf0]  ;;  %v4214_v23 = vld [vmem:[#allocation8 + $0x100] sm:$0xf]  ;;  %v4287_v24 = vor.u32 %v6310_v15, %v4286_v14  ;;  %v4398_v28 = vld [vmem:[#allocation8 + $0x270] sm:$0xf] }
  0x2a   :  { %1684 = vmatpush.bf16.msra.mxu2 %v4239_v58  ;;  %v6292_v25 = vld [vmem:[#allocation8 + $0x104] sm:$0xf0]  ;;  %v4278_v26 = vld [vmem:[#allocation8 + $0x180] sm:$0xf]  ;;  %v6338_v29 = vld [vmem:[#allocation8 + $0x274] sm:$0xf0]  ;;  %v4151_v35 = vor.u32 %v6276_v22, %v4150_v21 }
  0x2b   :  { %1698 = vmatpush.bf16.msra.mxu3 %v4303_v62  ;;  %v6308_v27 = vld [vmem:[#allocation8 + $0x184] sm:$0xf0]  ;;  %v4462_v30 = vld [vmem:[#allocation8 + $0x2f0] sm:$0xf]  ;;  %v6354_v32 = vld [vmem:[#allocation8 + $0x2f4] sm:$0xf0]  ;;  %v4215_v36 = vor.u32 %v6292_v25, %v4214_v23  ;;  %v4399_v40 = vor.u32 %v6338_v29, %v4398_v28 }
  0x2c   :  { %1657 = vmatpush.bf16.msra.mxu0 %v4103_v4  ;;  %v4526_v33 = vld [vmem:[#allocation8 + $0x370] sm:$0xf]  ;;  %v6370_v34 = vld [vmem:[#allocation8 + $0x374] sm:$0xf0]  ;;  %v4279_v39 = vor.u32 %v6308_v27, %v4278_v26  ;;  %v4390_v41 = vld [vmem:[#allocation8 + $0x260] sm:$0xf]  ;;  %v4463_v43 = vor.u32 %v6354_v32, %v4462_v30 }
  0x2d   :  { %1671 = vmatpush.bf16.msra.mxu1 %v4167_v5  ;;  %v4590_v37 = vld [vmem:[#allocation8 + $0x3f0] sm:$0xf]  ;;  %v6386_v38 = vld [vmem:[#allocation8 + $0x3f4] sm:$0xf0]  ;;  %v6336_v42 = vld [vmem:[#allocation8 + $0x264] sm:$0xf0]  ;;  %v4527_v44 = vor.u32 %v6370_v34, %v4526_v33 }
  0x2e   :  { %1685 = vmatpush.bf16.msra.mxu2 %v4231_v6  ;;  %v4454_v45 = vld [vmem:[#allocation8 + $0x2e0] sm:$0xf]  ;;  %v6352_v46 = vld [vmem:[#allocation8 + $0x2e4] sm:$0xf0]  ;;  %v4591_v48 = vor.u32 %v6386_v38, %v4590_v37  ;;  %v4034_v52 = vld [vmem:[#allocation5] sm:$0xf]  ;;  %v4391_v55 = vor.u32 %v6336_v42, %v4390_v41 }
  0x2f   :  { %1699 = vmatpush.bf16.msra.mxu3 %v4295_v10  ;;  %v4518_v47 = vld [vmem:[#allocation8 + $0x360] sm:$0xf]  ;;  %v6368_v49 = vld [vmem:[#allocation8 + $0x364] sm:$0xf0]  ;;  %v6252_v53 = vld [vmem:[#allocation5 + $0x30] sm:$0xf0]  ;;  %v4455_v60 = vor.u32 %v6352_v46, %v4454_v45 }
  0x30   :  { %1658 = vmatpush.bf16.msra.mxu0 %v4095_v16  ;;  %v4582_v50 = vld [vmem:[#allocation8 + $0x3e0] sm:$0xf]  ;;  %v6384_v51 = vld [vmem:[#allocation8 + $0x3e4] sm:$0xf0]  ;;  %v4382_v56 = vld [vmem:[#allocation8 + $0x250] sm:$0xf]  ;;  %v6703_v58 = vor.u32 %v6252_v53, %v4034_v52  ;;  %v4519_v61 = vor.u32 %v6368_v49, %v4518_v47 }
  0x31   :  { %1672 = vmatpush.bf16.msra.mxu1 %v4159_v19  ;;  %v4042_v54 = vld [vmem:[#allocation5 + $0x8] sm:$0xf]  ;;  %v6334_v57 = vld [vmem:[#allocation8 + $0x254] sm:$0xf0]  ;;  %v6253_v59 = vld [vmem:[#allocation5 + $0x38] sm:$0xf0]  ;;  %v4583_v2 = vor.u32 %v6384_v51, %v4582_v50 }
  0x32   :  { %1686 = vmatpush.bf16.msra.mxu2 %v4223_v20  ;;  %v4446_v62 = vld [vmem:[#allocation8 + $0x2d0] sm:$0xf]  ;;  %v6350_v63 = vld [vmem:[#allocation8 + $0x2d4] sm:$0xf0]  ;;  %v6705_v1 = vor.u32 %v6253_v59, %v4042_v54  ;;  %v6246_v6 = vld [vmem:[#allocation5 + $0x4] sm:$0xf]  ;;  %v4383_v9 = vor.u32 %v6334_v57, %v4382_v56 }
  0x33   :  { %1700 = vmatpush.bf16.msra.mxu3 %v4287_v24  ;;  %v4510_v0 = vld [vmem:[#allocation8 + $0x350] sm:$0xf]  ;;  %v6366_v3 = vld [vmem:[#allocation8 + $0x354] sm:$0xf0]  ;;  %v6247_v8 = vld [vmem:[#allocation5 + $0xc] sm:$0xf]  ;;  %v4447_v12 = vor.u32 %v6350_v63, %v4446_v62 }
  0x34   :  { %1659 = vmatpush.bf16.msra.mxu0 %v4087_v31  ;;  %v4574_v4 = vld [vmem:[#allocation8 + $0x3d0] sm:$0xf]  ;;  %v6382_v5 = vld [vmem:[#allocation8 + $0x3d4] sm:$0xf0]  ;;  %v4511_v13 = vor.u32 %v6366_v3, %v4510_v0  ;;  %v4374_v14 = vld [vmem:[#allocation8 + $0x240] sm:$0xf] }
  0x35   :  { %1673 = vmatpush.bf16.msra.mxu1 %v4151_v35  ;;  %v4036_v7 = vld [vmem:[#allocation5 + $0x34] sm:$0xf0]  ;;  %v4044_v11 = vld [vmem:[#allocation5 + $0x3c] sm:$0xf0]  ;;  %v6332_v15 = vld [vmem:[#allocation8 + $0x244] sm:$0xf0]  ;;  %v4575_v18 = vor.u32 %v6382_v5, %v4574_v4 }
  0x36   :  { %1687 = vmatpush.bf16.msra.mxu2 %v4215_v36  ;;  %v6709_v10 = vor.u32 %v6246_v6, %v4036_v7  ;;  %v4438_v16 = vld [vmem:[#allocation8 + $0x2c0] sm:$0xf]  ;;  %v6711_v17 = vor.u32 %v6247_v8, %v4044_v11  ;;  %v6348_v19 = vld [vmem:[#allocation8 + $0x2c4] sm:$0xf0]  ;;  %v4375_v24 = vor.u32 %v6332_v15, %v4374_v14  ;;  %v4366_v27 = vld [vmem:[#allocation8 + $0x230] sm:$0xf] }
  0x37   :  { %1701 = vmatpush.bf16.msra.mxu3 %v4279_v39  ;;  %1660 = vmatmul.bf16.vlgmr.msra.gmra.mxu0 %v6703_v58  ;;  %v4502_v20 = vld [vmem:[#allocation8 + $0x340] sm:$0xf]  ;;  %v6364_v21 = vld [vmem:[#allocation8 + $0x344] sm:$0xf0]  ;;  %v4439_v25 = vor.u32 %v6348_v19, %v4438_v16  ;;  %v6330_v28 = vld [vmem:[#allocation8 + $0x234] sm:$0xf0] }
  0x38   :  { %1708 = vmatpush.bf16.msrb.mxu0 %v4399_v40  ;;  %1674 = vmatmul.bf16.vlgmr.msra.gmra.mxu1 %v6709_v10  ;;  %v4566_v22 = vld [vmem:[#allocation8 + $0x3c0] sm:$0xf]  ;;  %v6380_v23 = vld [vmem:[#allocation8 + $0x3c4] sm:$0xf0]  ;;  %v4503_v26 = vor.u32 %v6364_v21, %v4502_v20  ;;  %v4430_v29 = vld [vmem:[#allocation8 + $0x2b0] sm:$0xf]  ;;  %v4367_v36 = vor.u32 %v6330_v28, %v4366_v27 }
  0x39   :  { %1722 = vmatpush.bf16.msrb.mxu1 %v4463_v43  ;;  %1688 = vmatmul.bf16.vlgmr.msra.gmra.mxu2 %v6705_v1  ;;  %v4567_v30 = vor.u32 %v6380_v23, %v4566_v22  ;;  %v6346_v31 = vld [vmem:[#allocation8 + $0x2b4] sm:$0xf0]  ;;  %v4494_v32 = vld [vmem:[#allocation8 + $0x330] sm:$0xf]  ;;  %v4358_v39 = vld [vmem:[#allocation8 + $0x220] sm:$0xf] }
  0x3a   :  { %1736 = vmatpush.bf16.msrb.mxu2 %v4527_v44  ;;  %1702 = vmatmul.bf16.vlgmr.msra.gmra.mxu3 %v6711_v17  ;;  %v6362_v33 = vld [vmem:[#allocation8 + $0x334] sm:$0xf0]  ;;  %v4558_v34 = vld [vmem:[#allocation8 + $0x3b0] sm:$0xf]  ;;  %v4431_v37 = vor.u32 %v6346_v31, %v4430_v29  ;;  %v6328_v40 = vld [vmem:[#allocation8 + $0x224] sm:$0xf0] }
  0x3b   :  { %1750 = vmatpush.bf16.msrb.mxu3 %v4591_v48  ;;  %v6378_v35 = vld [vmem:[#allocation8 + $0x3b4] sm:$0xf0]  ;;  %v4495_v38 = vor.u32 %v6362_v33, %v4494_v32  ;;  %v4422_v41 = vld [vmem:[#allocation8 + $0x2a0] sm:$0xf]  ;;  %v6344_v43 = vld [vmem:[#allocation8 + $0x2a4] sm:$0xf0]  ;;  %v4359_v48 = vor.u32 %v6328_v40, %v4358_v39 }
  0x3c   :  { %1709 = vmatpush.bf16.msrb.mxu0 %v4391_v55  ;;  %v4559_v42 = vor.u32 %v6378_v35, %v4558_v34  ;;  %v4486_v44 = vld [vmem:[#allocation8 + $0x320] sm:$0xf]  ;;  %v6360_v45 = vld [vmem:[#allocation8 + $0x324] sm:$0xf0]  ;;  %v4350_v49 = vld [vmem:[#allocation8 + $0x210] sm:$0xf]  ;;  %v4423_v50 = vor.u32 %v6344_v43, %v4422_v41 }
  0x3d   :  { %1723 = vmatpush.bf16.msrb.mxu1 %v4455_v60  ;;  %v4550_v46 = vld [vmem:[#allocation8 + $0x3a0] sm:$0xf]  ;;  %v6376_v47 = vld [vmem:[#allocation8 + $0x3a4] sm:$0xf0]  ;;  %v4487_v51 = vor.u32 %v6360_v45, %v4486_v44  ;;  %v6326_v52 = vld [vmem:[#allocation8 + $0x214] sm:$0xf0] }
  0x3e   :  { %1737 = vmatpush.bf16.msrb.mxu2 %v4519_v61  ;;  %v4414_v53 = vld [vmem:[#allocation8 + $0x290] sm:$0xf]  ;;  %v6342_v54 = vld [vmem:[#allocation8 + $0x294] sm:$0xf0]  ;;  %v4551_v55 = vor.u32 %v6376_v47, %v4550_v46  ;;  %v4342_v61 = vld [vmem:[#allocation8 + $0x200] sm:$0xf]  ;;  %v4351_v63 = vor.u32 %v6326_v52, %v4350_v49 }
  0x3f   :  { %1751 = vmatpush.bf16.msrb.mxu3 %v4583_v2  ;;  %v4478_v56 = vld [vmem:[#allocation8 + $0x310] sm:$0xf]  ;;  %v6358_v57 = vld [vmem:[#allocation8 + $0x314] sm:$0xf0]  ;;  %v6324_v62 = vld [vmem:[#allocation8 + $0x204] sm:$0xf0]  ;;  %v4415_v5 = vor.u32 %v6342_v54, %v4414_v53 }
  0x40   :  { %1710 = vmatpush.bf16.msrb.mxu0 %v4383_v9  ;;  %v4542_v59 = vld [vmem:[#allocation8 + $0x390] sm:$0xf]  ;;  %v6374_v60 = vld [vmem:[#allocation8 + $0x394] sm:$0xf0]  ;;  %v4406_v0 = vld [vmem:[#allocation8 + $0x280] sm:$0xf]  ;;  %v4479_v6 = vor.u32 %v6358_v57, %v4478_v56  ;;  %v4343_v19 = vor.u32 %v6324_v62, %v4342_v61 }
  0x41   :  { %1724 = vmatpush.bf16.msrb.mxu1 %v4447_v12  ;;  %v6340_v2 = vld [vmem:[#allocation8 + $0x284] sm:$0xf0]  ;;  %v4470_v3 = vld [vmem:[#allocation8 + $0x300] sm:$0xf]  ;;  %v4654_v9 = vld [vmem:[#allocation8 + $0x470] sm:$0xf]  ;;  %v4543_v11 = vor.u32 %v6374_v60, %v4542_v59 }
  0x42   :  { %1738 = vmatpush.bf16.msrb.mxu2 %v4511_v13  ;;  %v6356_v4 = vld [vmem:[#allocation8 + $0x304] sm:$0xf0]  ;;  %v4534_v7 = vld [vmem:[#allocation8 + $0x380] sm:$0xf]  ;;  %v6402_v12 = vld [vmem:[#allocation8 + $0x474] sm:$0xf0]  ;;  %v4407_v23 = vor.u32 %v6340_v2, %v4406_v0 }
  0x43   :  { %1752 = vmatpush.bf16.msrb.mxu3 %v4575_v18  ;;  %v6372_v8 = vld [vmem:[#allocation8 + $0x384] sm:$0xf0]  ;;  %v4718_v13 = vld [vmem:[#allocation8 + $0x4f0] sm:$0xf]  ;;  %v6418_v14 = vld [vmem:[#allocation8 + $0x4f4] sm:$0xf0]  ;;  %v4655_v29 = vor.u32 %v6402_v12, %v4654_v9 }
  0x44   :  { %1711 = vmatpush.bf16.msrb.mxu0 %v4375_v24  ;;  %v4782_v15 = vld [vmem:[#allocation8 + $0x570] sm:$0xf]  ;;  %v6434_v16 = vld [vmem:[#allocation8 + $0x574] sm:$0xf0]  ;;  %v4050_v21 = vld [vmem:[#allocation5 + $0x10] sm:$0xf]  ;;  %v4471_v24 = vor.u32 %v6356_v4, %v4470_v3  ;;  %v4535_v28 = vor.u32 %v6372_v8, %v4534_v7  ;;  %v4719_v33 = vor.u32 %v6418_v14, %v4718_v13 }
  0x45   :  { %1725 = vmatpush.bf16.msrb.mxu1 %v4439_v25  ;;  %v4846_v18 = vld [vmem:[#allocation8 + $0x5f0] sm:$0xf]  ;;  %v6450_v20 = vld [vmem:[#allocation8 + $0x5f4] sm:$0xf0]  ;;  %v6254_v22 = vld [vmem:[#allocation5 + $0x40] sm:$0xf0]  ;;  %v4783_v34 = vor.u32 %v6434_v16, %v4782_v15 }
  0x46   :  { %1739 = vmatpush.bf16.msrb.mxu2 %v4503_v26  ;;  %v4058_v25 = vld [vmem:[#allocation5 + $0x18] sm:$0xf]  ;;  %v6255_v26 = vld [vmem:[#allocation5 + $0x48] sm:$0xf0]  ;;  %v6248_v27 = vld [vmem:[#allocation5 + $0x14] sm:$0xf]  ;;  %v6715_v39 = vor.u32 %v6254_v22, %v4050_v21 }
  0x47   :  { %1753 = vmatpush.bf16.msrb.mxu3 %v4567_v30  ;;  %v4052_v30 = vld [vmem:[#allocation5 + $0x44] sm:$0xf0]  ;;  %v6249_v31 = vld [vmem:[#allocation5 + $0x1c] sm:$0xf]  ;;  %v4060_v32 = vld [vmem:[#allocation5 + $0x4c] sm:$0xf0]  ;;  %v6717_v43 = vor.u32 %v6255_v26, %v4058_v25 }
  0x48   :  { %1712 = vmatpush.bf16.msrb.mxu0 %v4367_v36  ;;  %v4646_v35 = vld [vmem:[#allocation8 + $0x460] sm:$0xf]  ;;  %v6400_v36 = vld [vmem:[#allocation8 + $0x464] sm:$0xf0]  ;;  %v6719_v44 = vor.u32 %v6248_v27, %v4052_v30  ;;  %v6721_v47 = vor.u32 %v6249_v31, %v4060_v32  ;;  %v6398_v52 = vld [vmem:[#allocation8 + $0x454] sm:$0xf0] }
  0x49   :  { %1726 = vmatpush.bf16.msrb.mxu1 %v4431_v37  ;;  %v4710_v37 = vld [vmem:[#allocation8 + $0x4e0] sm:$0xf]  ;;  %v6416_v40 = vld [vmem:[#allocation8 + $0x4e4] sm:$0xf0]  ;;  %v4702_v53 = vld [vmem:[#allocation8 + $0x4d0] sm:$0xf] }
  0x4a   :  { %1740 = vmatpush.bf16.msrb.mxu2 %v4495_v38  ;;  %v4847_v38 = vor.u32 %v6450_v20, %v4846_v18  ;;  %v4774_v41 = vld [vmem:[#allocation8 + $0x560] sm:$0xf]  ;;  %v6448_v46 = vld [vmem:[#allocation8 + $0x5e4] sm:$0xf0]  ;;  %v4711_v49 = vor.u32 %v6416_v40, %v4710_v37  ;;  %v4766_v56 = vld [vmem:[#allocation8 + $0x550] sm:$0xf] }
  0x4b   :  { %1754 = vmatpush.bf16.msrb.mxu3 %v4559_v42  ;;  %v6432_v42 = vld [vmem:[#allocation8 + $0x564] sm:$0xf0]  ;;  %v4838_v45 = vld [vmem:[#allocation8 + $0x5e0] sm:$0xf]  ;;  %v6430_v57 = vld [vmem:[#allocation8 + $0x554] sm:$0xf0] }
  0x4c   :  { %1713 = vmatpush.bf16.msrb.mxu0 %v4359_v48  ;;  %v4647_v48 = vor.u32 %v6400_v36, %v4646_v35  ;;  %v4839_v54 = vor.u32 %v6448_v46, %v4838_v45  ;;  %v4830_v59 = vld [vmem:[#allocation8 + $0x5d0] sm:$0xf]  ;;  %v6446_v60 = vld [vmem:[#allocation8 + $0x5d4] sm:$0xf0]  ;;  %v4630_v0 = vld [vmem:[#allocation8 + $0x440] sm:$0xf] }
  0x4d   :  { %1727 = vmatpush.bf16.msrb.mxu1 %v4423_v50  ;;  %v4775_v50 = vor.u32 %v6432_v42, %v4774_v41  ;;  %v6396_v2 = vld [vmem:[#allocation8 + $0x444] sm:$0xf0]  ;;  %v4694_v3 = vld [vmem:[#allocation8 + $0x4c0] sm:$0xf]  ;;  %v4831_v4 = vor.u32 %v6446_v60, %v4830_v59  ;;  %v4622_v14 = vld [vmem:[#allocation8 + $0x430] sm:$0xf] }
  0x4e   :  { %1741 = vmatpush.bf16.msrb.mxu2 %v4487_v51  ;;  %v4638_v51 = vld [vmem:[#allocation8 + $0x450] sm:$0xf]  ;;  %v6428_v7 = vld [vmem:[#allocation8 + $0x544] sm:$0xf0]  ;;  %v4822_v8 = vld [vmem:[#allocation8 + $0x5c0] sm:$0xf] }
  0x4f   :  { %1755 = vmatpush.bf16.msrb.mxu3 %v4551_v55  ;;  %v6414_v55 = vld [vmem:[#allocation8 + $0x4d4] sm:$0xf0]  ;;  %v4639_v61 = vor.u32 %v6398_v52, %v4638_v51  ;;  %v6444_v9 = vld [vmem:[#allocation8 + $0x5c4] sm:$0xf0]  ;;  %v4686_v16 = vld [vmem:[#allocation8 + $0x4b0] sm:$0xf] }
  0x50   :  { %1714 = vmatpush.bf16.msrb.mxu0 %v4351_v63  ;;  %v4703_v62 = vor.u32 %v6414_v55, %v4702_v53  ;;  %v4767_v63 = vor.u32 %v6430_v57, %v4766_v56  ;;  %v6394_v15 = vld [vmem:[#allocation8 + $0x434] sm:$0xf0]  ;;  %v4823_v18 = vor.u32 %v6444_v9, %v4822_v8  ;;  %v4750_v20 = vld [vmem:[#allocation8 + $0x530] sm:$0xf]  ;;  %v4614_v27 = vld [vmem:[#allocation8 + $0x420] sm:$0xf] }
  0x51   :  { %1728 = vmatpush.bf16.msrb.mxu1 %v4415_v5  ;;  %v6412_v5 = vld [vmem:[#allocation8 + $0x4c4] sm:$0xf0]  ;;  %v6426_v21 = vld [vmem:[#allocation8 + $0x534] sm:$0xf0]  ;;  %v4814_v22 = vld [vmem:[#allocation8 + $0x5b0] sm:$0xf] }
  0x52   :  { %1742 = vmatpush.bf16.msrb.mxu2 %v4479_v6  ;;  %v4758_v6 = vld [vmem:[#allocation8 + $0x540] sm:$0xf]  ;;  %v4695_v12 = vor.u32 %v6412_v5, %v4694_v3  ;;  %v4751_v26 = vor.u32 %v6426_v21, %v4750_v20  ;;  %v6408_v31 = vld [vmem:[#allocation8 + $0x4a4] sm:$0xf0]  ;;  %v4606_v37 = vld [vmem:[#allocation8 + $0x410] sm:$0xf] }
  0x53   :  { %1756 = vmatpush.bf16.msrb.mxu3 %v4543_v11  ;;  %v4631_v11 = vor.u32 %v6396_v2, %v4630_v0  ;;  %v4759_v13 = vor.u32 %v6428_v7, %v4758_v6  ;;  %v4742_v32 = vld [vmem:[#allocation8 + $0x520] sm:$0xf]  ;;  %v6440_v35 = vld [vmem:[#allocation8 + $0x5a4] sm:$0xf0]  ;;  %v6390_v41 = vld [vmem:[#allocation8 + $0x414] sm:$0xf0] }
  0x54   :  { %1715 = vmatpush.bf16.msrb.mxu0 %v4343_v19  ;;  %v6410_v19 = vld [vmem:[#allocation8 + $0x4b4] sm:$0xf0]  ;;  %v4670_v42 = vld [vmem:[#allocation8 + $0x490] sm:$0xf]  ;;  %v4598_v52 = vld [vmem:[#allocation8 + $0x400] sm:$0xf] }
  0x55   :  { %1729 = vmatpush.bf16.msrb.mxu1 %v4407_v23  ;;  %v6442_v23 = vld [vmem:[#allocation8 + $0x5b4] sm:$0xf0]  ;;  %v4687_v25 = vor.u32 %v6410_v19, %v4686_v16  ;;  %v6388_v53 = vld [vmem:[#allocation8 + $0x404] sm:$0xf0]  ;;  %v4662_v55 = vld [vmem:[#allocation8 + $0x480] sm:$0xf] }
  0x56   :  { %1743 = vmatpush.bf16.msrb.mxu2 %v4471_v24  ;;  %v4623_v24 = vor.u32 %v6394_v15, %v4622_v14  ;;  %v4815_v30 = vor.u32 %v6442_v23, %v4814_v22  ;;  %v6406_v45 = vld [vmem:[#allocation8 + $0x494] sm:$0xf0]  ;;  %v6404_v56 = vld [vmem:[#allocation8 + $0x484] sm:$0xf0]  ;;  %v4726_v57 = vld [vmem:[#allocation8 + $0x500] sm:$0xf]  ;;  %v4599_v9 = vor.u32 %v6388_v53, %v4598_v52 }
  0x57   :  { %1757 = vmatpush.bf16.msrb.mxu3 %v4535_v28  ;;  %1716 = vmatmul.bf16.vlgmr.msrb.gmra.mxu0 %v6715_v39  ;;  %v6392_v28 = vld [vmem:[#allocation8 + $0x424] sm:$0xf0]  ;;  %v6438_v51 = vld [vmem:[#allocation8 + $0x594] sm:$0xf0]  ;;  %v4671_v60 = vor.u32 %v6406_v45, %v4670_v42  ;;  %v4878_v0 = vld [vmem:[#allocation8 + $0x630] sm:$0xf]  ;;  %v4663_v14 = vor.u32 %v6404_v56, %v4662_v55 }
  0x58   :  { %1764 = vmatpush.bf16.msra.mxu0 %v4655_v29  ;;  %1730 = vmatmul.bf16.vlgmr.msrb.gmra.mxu1 %v6719_v44  ;;  %v4678_v29 = vld [vmem:[#allocation8 + $0x4a0] sm:$0xf]  ;;  %v4615_v36 = vor.u32 %v6392_v28, %v4614_v27  ;;  %v6420_v59 = vld [vmem:[#allocation8 + $0x504] sm:$0xf0]  ;;  %v6458_v3 = vld [vmem:[#allocation8 + $0x634] sm:$0xf0] }
  0x59   :  { %1778 = vmatpush.bf16.msra.mxu1 %v4719_v33  ;;  %1744 = vmatmul.bf16.vlgmr.msrb.gmra.mxu2 %v6717_v43  ;;  %v6424_v33 = vld [vmem:[#allocation8 + $0x524] sm:$0xf0]  ;;  %v4144_v5 = vld [vmem:[#allocation8 + $0x78] sm:$0xf0]  ;;  %v6289_v6 = vld [vmem:[#allocation8 + $0xf4] sm:$0xf]  ;;  %v4727_v15 = vor.u32 %v6420_v59, %v4726_v57  ;;  %v4879_v21 = vor.u32 %v6458_v3, %v4878_v0 }
  0x5a   :  { %1792 = vmatpush.bf16.msra.mxu2 %v4783_v34  ;;  %1758 = vmatmul.bf16.vlgmr.msrb.gmra.mxu3 %v6721_v47  ;;  %v4806_v34 = vld [vmem:[#allocation8 + $0x5a0] sm:$0xf]  ;;  %v4743_v40 = vor.u32 %v6424_v33, %v4742_v32  ;;  %v4208_v7 = vld [vmem:[#allocation8 + $0xf8] sm:$0xf0]  ;;  %v6305_v8 = vld [vmem:[#allocation8 + $0x174] sm:$0xf] }
  0x5b   :  { %1806 = vmatpush.bf16.msra.mxu3 %v4847_v38  ;;  %v4679_v38 = vor.u32 %v6408_v31, %v4678_v29  ;;  %v4807_v46 = vor.u32 %v6440_v35, %v4806_v34  ;;  %v4074_v16 = vld [vmem:[#allocation5 + $0x28] sm:$0xf]  ;;  %v6250_v19 = vld [vmem:[#allocation5 + $0x24] sm:$0xf]  ;;  %v4068_v22 = vld [vmem:[#allocation5 + $0x54] sm:$0xf0] }
  0x5c   :  { %1765 = vmatpush.bf16.msra.mxu0 %v4647_v48  ;;  %v4734_v48 = vld [vmem:[#allocation8 + $0x510] sm:$0xf]  ;;  %v6251_v23 = vld [vmem:[#allocation5 + $0x2c] sm:$0xf]  ;;  %v4870_v27 = vld [vmem:[#allocation8 + $0x620] sm:$0xf] }
  0x5d   :  { %1779 = vmatpush.bf16.msra.mxu1 %v4711_v49  ;;  %v6422_v49 = vld [vmem:[#allocation8 + $0x514] sm:$0xf0]  ;;  %v6456_v28 = vld [vmem:[#allocation8 + $0x624] sm:$0xf0]  ;;  %v6271_v29 = vld [vmem:[#allocation8 + $0x64] sm:$0xf] }
  0x5e   :  { %1793 = vmatpush.bf16.msra.mxu2 %v4775_v50  ;;  %v4798_v50 = vld [vmem:[#allocation8 + $0x590] sm:$0xf]  ;;  %v4136_v32 = vld [vmem:[#allocation8 + $0x68] sm:$0xf0]  ;;  %v6287_v33 = vld [vmem:[#allocation8 + $0xe4] sm:$0xf] }
  0x5f   :  { %1807 = vmatpush.bf16.msra.mxu3 %v4839_v54  ;;  %v4607_v54 = vor.u32 %v6390_v41, %v4606_v37  ;;  %v4799_v2 = vor.u32 %v6438_v51, %v4798_v50  ;;  %v4200_v34 = vld [vmem:[#allocation8 + $0xe8] sm:$0xf0]  ;;  %v6303_v37 = vld [vmem:[#allocation8 + $0x164] sm:$0xf]  ;;  %v4871_v41 = vor.u32 %v6456_v28, %v4870_v27  ;;  %v4139_v42 = vor.u32 %v6271_v29, %v4136_v32  ;;  %v4128_v51 = vld [vmem:[#allocation8 + $0x58] sm:$0xf0] }
  0x60   :  { %1766 = vmatpush.bf16.msra.mxu0 %v4639_v61  ;;  %v4735_v61 = vor.u32 %v6422_v49, %v4734_v48  ;;  %v4203_v45 = vor.u32 %v6287_v33, %v4200_v34  ;;  %v6454_v48 = vld [vmem:[#allocation8 + $0x614] sm:$0xf0]  ;;  %v6269_v49 = vld [vmem:[#allocation8 + $0x54] sm:$0xf]  ;;  %v4192_v53 = vld [vmem:[#allocation8 + $0xd8] sm:$0xf0] }
  0x61   :  { %1780 = vmatpush.bf16.msra.mxu1 %v4703_v62  ;;  %v4790_v62 = vld [vmem:[#allocation8 + $0x580] sm:$0xf]  ;;  %v6285_v52 = vld [vmem:[#allocation8 + $0xd4] sm:$0xf]  ;;  %v4256_v55 = vld [vmem:[#allocation8 + $0x158] sm:$0xf0]  ;;  %v4131_v59 = vor.u32 %v6269_v49, %v4128_v51 }
  0x62   :  { %1794 = vmatpush.bf16.msra.mxu2 %v4767_v63  ;;  %v6436_v63 = vld [vmem:[#allocation8 + $0x584] sm:$0xf0]  ;;  %v4854_v57 = vld [vmem:[#allocation8 + $0x600] sm:$0xf]  ;;  %v4184_v3 = vld [vmem:[#allocation8 + $0xc8] sm:$0xf0] }
  0x63   :  { %1808 = vmatpush.bf16.msra.mxu3 %v4831_v4  ;;  %v6273_v4 = vld [vmem:[#allocation8 + $0x74] sm:$0xf]  ;;  %v4791_v20 = vor.u32 %v6436_v63, %v4790_v62  ;;  %v6267_v62 = vld [vmem:[#allocation8 + $0x44] sm:$0xf]  ;;  %v4120_v63 = vld [vmem:[#allocation8 + $0x48] sm:$0xf0] }
  0x64   :  { %1767 = vmatpush.bf16.msra.mxu0 %v4631_v11  ;;  %v4272_v11 = vld [vmem:[#allocation8 + $0x178] sm:$0xf0]  ;;  %v6263_v27 = vld [vmem:[#allocation8 + $0x24] sm:$0xf]  ;;  %v4104_v28 = vld [vmem:[#allocation8 + $0x28] sm:$0xf0] }
  0x65   :  { %1781 = vmatpush.bf16.msra.mxu1 %v4695_v12  ;;  %v4066_v12 = vld [vmem:[#allocation5 + $0x20] sm:$0xf]  ;;  %v6279_v32 = vld [vmem:[#allocation8 + $0xa4] sm:$0xf]  ;;  %v4168_v33 = vld [vmem:[#allocation8 + $0xa8] sm:$0xf0] }
  0x66   :  { %1795 = vmatpush.bf16.msra.mxu2 %v4759_v13  ;;  %v6256_v13 = vld [vmem:[#allocation5 + $0x50] sm:$0xf0]  ;;  %v6295_v34 = vld [vmem:[#allocation8 + $0x124] sm:$0xf]  ;;  %vm1648_vm0 = vcmask 523264   ;;  %s4017_s1 = sshll.u32 %s6956_s9, 4  ;;  %s4018_s1 = int_to_ptr.hbm [resolvable:$true] %s4017_s1 }
  0x67   :  { %1809 = vmatpush.bf16.msra.mxu3 %v4823_v18  ;;  %v6257_v18 = vld [vmem:[#allocation5 + $0x58] sm:$0xf0]  ;;  %v6727_v31 = vor.u32 %v6256_v13, %v4066_v12  ;;  %v4112_v13 = vld [vmem:[#allocation8 + $0x38] sm:$0xf0] }
  0x68   :  { %1768 = vmatpush.bf16.msra.mxu0 %v4623_v24  ;;  %v4076_v24 = vld [vmem:[#allocation5 + $0x5c] sm:$0xf0]  ;;  %v6729_v35 = vor.u32 %v6257_v18, %v4074_v16  ;;  %v6265_v12 = vld [vmem:[#allocation8 + $0x34] sm:$0xf]  ;;  %v4176_v18 = vld [vmem:[#allocation8 + $0xb8] sm:$0xf0] }
  0x69   :  { %1782 = vmatpush.bf16.msra.mxu1 %v4687_v25  ;;  %v4147_v25 = vor.u32 %v6273_v4, %v4144_v5  ;;  %v6299_v4 = vld [vmem:[#allocation8 + $0x144] sm:$0xf]  ;;  %v4248_v5 = vld [vmem:[#allocation8 + $0x148] sm:$0xf0]  ;;  %v6281_v16 = vld [vmem:[#allocation8 + $0xb4] sm:$0xf] }
  0x6a   :  { %1796 = vmatpush.bf16.msra.mxu2 %v4751_v26  ;;  %v4211_v26 = vor.u32 %v6289_v6, %v4208_v7  ;;  %v6321_v6 = vld [vmem:[#allocation8 + $0x1f4] sm:$0xf]  ;;  %v4336_v7 = vld [vmem:[#allocation8 + $0x1f8] sm:$0xf0] }
  0x6b   :  { %1810 = vmatpush.bf16.msra.mxu3 %v4815_v30  ;;  %v4275_v30 = vor.u32 %v6305_v8, %v4272_v11  ;;  %v4096_v49 = vld [vmem:[#allocation8 + $0x18] sm:$0xf0] }
  0x6c   :  { %1769 = vmatpush.bf16.msra.mxu0 %v4615_v36  ;;  %v6731_v36 = vor.u32 %v6250_v19, %v4068_v22  ;;  %v6297_v19 = vld [vmem:[#allocation8 + $0x134] sm:$0xf]  ;;  %v4328_v22 = vld [vmem:[#allocation8 + $0x1e8] sm:$0xf0] }
  0x6d   :  { %1783 = vmatpush.bf16.msra.mxu1 %v4679_v38  ;;  %v4264_v38 = vld [vmem:[#allocation8 + $0x168] sm:$0xf0] }
  0x6e   :  { %1797 = vmatpush.bf16.msra.mxu2 %v4743_v40  ;;  %v6733_v40 = vor.u32 %v6251_v23, %v4076_v24  ;;  %v4267_v50 = vor.u32 %v6303_v37, %v4264_v38  ;;  %v4082_v23 = vld [vmem:[#allocation5 + $0x30] sm:$0xf]  ;;  %v6258_v24 = vld [vmem:[#allocation5 + $0x60] sm:$0xf0]  ;;  %v4232_v38 = vld [vmem:[#allocation8 + $0x128] sm:$0xf0] }
  0x6f   :  { %1811 = vmatpush.bf16.msra.mxu3 %v4807_v46  ;;  %v4862_v46 = vld [vmem:[#allocation8 + $0x610] sm:$0xf]  ;;  %v6739_v37 = vor.u32 %v6258_v24, %v4082_v23  ;;  %v4296_v23 = vld [vmem:[#allocation8 + $0x1a8] sm:$0xf0]  ;;  %v6335_v24 = vld [vmem:[#allocation8 + $0x264] sm:$0xf] }
  0x70   :  { %1770 = vmatpush.bf16.msra.mxu0 %v4607_v54  ;;  %v6301_v54 = vld [vmem:[#allocation8 + $0x154] sm:$0xf]  ;;  %v4863_v56 = vor.u32 %v6454_v48, %v4862_v46  ;;  %v4171_v46 = vor.u32 %v6279_v32, %v4168_v33 }
  0x71   :  { %1784 = vmatpush.bf16.msra.mxu1 %v4671_v60  ;;  %v4195_v60 = vor.u32 %v6285_v52, %v4192_v53  ;;  %v4259_v0 = vor.u32 %v6301_v54, %v4256_v55  ;;  %v6261_v48 = vld [vmem:[#allocation8 + $0x14] sm:$0xf]  ;;  %v4160_v53 = vld [vmem:[#allocation8 + $0x98] sm:$0xf0] }
  0x72   :  { %1798 = vmatpush.bf16.msra.mxu2 %v4735_v61  ;;  %v6452_v61 = vld [vmem:[#allocation8 + $0x604] sm:$0xf0]  ;;  %v6277_v52 = vld [vmem:[#allocation8 + $0x94] sm:$0xf]  ;;  %v4224_v55 = vld [vmem:[#allocation8 + $0x118] sm:$0xf0] }
  0x73   :  { %1812 = vmatpush.bf16.msra.mxu3 %v4799_v2  ;;  %v6283_v2 = vld [vmem:[#allocation8 + $0xc4] sm:$0xf]  ;;  %v4855_v8 = vor.u32 %v6452_v61, %v4854_v57  ;;  %v6293_v54 = vld [vmem:[#allocation8 + $0x114] sm:$0xf]  ;;  %v4312_v57 = vld [vmem:[#allocation8 + $0x1c8] sm:$0xf0] }
  0x74   :  { %1771 = vmatpush.bf16.msra.mxu0 %v4599_v9  ;;  %v4123_v9 = vor.u32 %v6267_v62, %v4120_v63  ;;  %v4187_v11 = vor.u32 %v6283_v2, %v4184_v3  ;;  %v6259_v61 = vld [vmem:[#allocation8 + $0x4] sm:$0xf]  ;;  %v4088_v62 = vld [vmem:[#allocation8 + $0x8] sm:$0xf0] }
  0x75   :  { %1785 = vmatpush.bf16.msra.mxu1 %v4663_v14  ;;  %v4251_v14 = vor.u32 %v6299_v4, %v4248_v5  ;;  %v6275_v63 = vld [vmem:[#allocation8 + $0x84] sm:$0xf]  ;;  %v4152_v3 = vld [vmem:[#allocation8 + $0x88] sm:$0xf0] }
  0x76   :  { %1799 = vmatpush.bf16.msra.mxu2 %v4727_v15  ;;  %v4339_v15 = vor.u32 %v6321_v6, %v4336_v7  ;;  %v6291_v4 = vld [vmem:[#allocation8 + $0x104] sm:$0xf]  ;;  %v4216_v5 = vld [vmem:[#allocation8 + $0x108] sm:$0xf0]  ;;  %v6313_v6 = vld [vmem:[#allocation8 + $0x1b4] sm:$0xf] }
  0x77   :  { %1813 = vmatpush.bf16.msra.mxu3 %v4791_v20  ;;  %1772 = vmatmul.bf16.vlgmr.msra.gmra.mxu0 %v6727_v31  ;;  %v4240_v20 = vld [vmem:[#allocation8 + $0x138] sm:$0xf0] }
  0x78   :  { %1824 = vmatpush.bf16.msrb.mxu0 %v4879_v21  ;;  %1786 = vmatmul.bf16.vlgmr.msra.gmra.mxu1 %v6731_v36  ;;  %v6319_v21 = vld [vmem:[#allocation8 + $0x1e4] sm:$0xf]  ;;  %v4243_v29 = vor.u32 %v6297_v19, %v4240_v20  ;;  %v4304_v7 = vld [vmem:[#allocation8 + $0x1b8] sm:$0xf0] }
  0x79   :  { %1834 = vmatpush.bf16.msrb.mxu1 %v4147_v25  ;;  %1800 = vmatmul.bf16.vlgmr.msra.gmra.mxu2 %v6729_v35  ;;  %v4115_v25 = vor.u32 %v6265_v12, %v4112_v13  ;;  %v4464_v12 = vld [vmem:[#allocation8 + $0x2f8] sm:$0xf0]  ;;  %v4091_v13 = vor.u32 %v6259_v61, %v4088_v62  ;;  %v4307_v19 = vor.u32 %v6313_v6, %v4304_v7  ;;  %v6347_v61 = vld [vmem:[#allocation8 + $0x2c4] sm:$0xf] }
  0x7a   :  { %1848 = vmatpush.bf16.msrb.mxu2 %v4211_v26  ;;  %1814 = vmatmul.bf16.vlgmr.msra.gmra.mxu3 %v6733_v40  ;;  %v4179_v26 = vor.u32 %v6281_v16, %v4176_v18  ;;  %v4528_v16 = vld [vmem:[#allocation8 + $0x378] sm:$0xf0]  ;;  %v4219_v18 = vor.u32 %v6291_v4, %v4216_v5  ;;  %v6363_v62 = vld [vmem:[#allocation8 + $0x344] sm:$0xf]  ;;  %v6329_v4 = vld [vmem:[#allocation8 + $0x234] sm:$0xf] }
  0x7b   :  { %1862 = vmatpush.bf16.msrb.mxu3 %v4275_v30  ;;  %v4331_v30 = vor.u32 %v6319_v21, %v4328_v22  ;;  %v6311_v22 = vld [vmem:[#allocation8 + $0x1a4] sm:$0xf]  ;;  %v4368_v5 = vld [vmem:[#allocation8 + $0x238] sm:$0xf0] }
  0x7c   :  { %1825 = vmatpush.bf16.msrb.mxu0 %v4871_v41  ;;  %v6317_v41 = vld [vmem:[#allocation8 + $0x1d4] sm:$0xf]  ;;  %v4299_v32 = vor.u32 %v6311_v22, %v4296_v23  ;;  %v6343_v22 = vld [vmem:[#allocation8 + $0x2a4] sm:$0xf]  ;;  %v4424_v23 = vld [vmem:[#allocation8 + $0x2a8] sm:$0xf0] }
  0x7d   :  { %1835 = vmatpush.bf16.msrb.mxu1 %v4139_v42  ;;  %v4320_v42 = vld [vmem:[#allocation8 + $0x1d8] sm:$0xf0] }
  0x7e   :  { %1849 = vmatpush.bf16.msrb.mxu2 %v4203_v45  ;;  %v4107_v45 = vor.u32 %v6263_v27, %v4104_v28  ;;  %v4323_v51 = vor.u32 %v6317_v41, %v4320_v42  ;;  %v6351_v27 = vld [vmem:[#allocation8 + $0x2e4] sm:$0xf]  ;;  %v4456_v28 = vld [vmem:[#allocation8 + $0x2e8] sm:$0xf0]  ;;  %v4288_v41 = vld [vmem:[#allocation8 + $0x198] sm:$0xf0] }
  0x7f   :  { %1863 = vmatpush.bf16.msrb.mxu3 %v4267_v50  ;;  %v4235_v50 = vor.u32 %v6295_v34, %v4232_v38  ;;  %v4459_v34 = vor.u32 %v6351_v27, %v4456_v28  ;;  %v6309_v38 = vld [vmem:[#allocation8 + $0x194] sm:$0xf]  ;;  %v4576_v27 = vld [vmem:[#allocation8 + $0x3d8] sm:$0xf0] }
  0x80   :  { %1826 = vmatpush.bf16.msrb.mxu0 %v4863_v56  ;;  %v6315_v56 = vld [vmem:[#allocation8 + $0x1c4] sm:$0xf]  ;;  %v6333_v42 = vld [vmem:[#allocation8 + $0x254] sm:$0xf] }
  0x81   :  { %1836 = vmatpush.bf16.msrb.mxu1 %v4131_v59  ;;  %v4099_v59 = vor.u32 %v6261_v48, %v4096_v49  ;;  %v4315_v2 = vor.u32 %v6315_v56, %v4312_v57  ;;  %v6349_v48 = vld [vmem:[#allocation8 + $0x2d4] sm:$0xf]  ;;  %v4448_v49 = vld [vmem:[#allocation8 + $0x2d8] sm:$0xf0]  ;;  %v4280_v56 = vld [vmem:[#allocation8 + $0x188] sm:$0xf0] }
  0x82   :  { %1850 = vmatpush.bf16.msrb.mxu2 %v4195_v60  ;;  %v4163_v60 = vor.u32 %v6277_v52, %v4160_v53  ;;  %v4291_v52 = vor.u32 %v6309_v38, %v4288_v41  ;;  %v6307_v53 = vld [vmem:[#allocation8 + $0x184] sm:$0xf]  ;;  %v6341_v38 = vld [vmem:[#allocation8 + $0x294] sm:$0xf]  ;;  %v4416_v41 = vld [vmem:[#allocation8 + $0x298] sm:$0xf0] }
  0x83   :  { %1864 = vmatpush.bf16.msrb.mxu3 %v4259_v0  ;;  %v4227_v0 = vor.u32 %v6293_v54, %v4224_v55  ;;  %v4451_v55 = vor.u32 %v6349_v48, %v4448_v49  ;;  %v6331_v57 = vld [vmem:[#allocation8 + $0x244] sm:$0xf]  ;;  %v4568_v48 = vld [vmem:[#allocation8 + $0x3c8] sm:$0xf0] }
  0x84   :  { %1827 = vmatpush.bf16.msrb.mxu0 %v4855_v8  ;;  %v6337_v8 = vld [vmem:[#allocation8 + $0x274] sm:$0xf] }
  0x85   :  { %1837 = vmatpush.bf16.msrb.mxu1 %v4123_v9  ;;  %v4400_v9 = vld [vmem:[#allocation8 + $0x278] sm:$0xf0] }
  0x86   :  { %1851 = vmatpush.bf16.msrb.mxu2 %v4187_v11  ;;  %v6353_v11 = vld [vmem:[#allocation8 + $0x2f4] sm:$0xf]  ;;  %v4403_v20 = vor.u32 %v6337_v8, %v4400_v9  ;;  %v4432_v9 = vld [vmem:[#allocation8 + $0x2b8] sm:$0xf0] }
  0x87   :  { %1865 = vmatpush.bf16.msrb.mxu3 %v4251_v14  ;;  %4884 = vmatmul.msk.bf16.vlgmr.msrb.gmra.mxu0 %vm1648_vm0, %v6739_v37  ;;  %v4155_v14 = vor.u32 %v6275_v63, %v4152_v3  ;;  %v4467_v21 = vor.u32 %v6353_v11, %v4464_v12  ;;  %v4504_v63 = vld [vmem:[#allocation8 + $0x348] sm:$0xf0]  ;;  %v6345_v8 = vld [vmem:[#allocation8 + $0x2b4] sm:$0xf]  ;;  %v4496_v12 = vld [vmem:[#allocation8 + $0x338] sm:$0xf0] }
  0x88   :  { %1876 = vmatpush.bf16.msra.mxu0 %v4339_v15  ;;  %v6369_v15 = vld [vmem:[#allocation8 + $0x374] sm:$0xf]  ;;  %v4507_v6 = vor.u32 %v6363_v62, %v4504_v63  ;;  %v4720_v63 = vld [vmem:[#allocation8 + $0x4f8] sm:$0xf0] }
  0x89   :  { %1838 = vmatpush.bf16.msrb.mxu1 %v4115_v25  ;;  %v4531_v25 = vor.u32 %v6369_v15, %v4528_v16  ;;  %v6361_v11 = vld [vmem:[#allocation8 + $0x334] sm:$0xf]  ;;  %v4371_v15 = vor.u32 %v6329_v4, %v4368_v5  ;;  %v4435_v16 = vor.u32 %v6345_v8, %v4432_v9  ;;  %v4552_v8 = vld [vmem:[#allocation8 + $0x3a8] sm:$0xf0]  ;;  %v6399_v9 = vld [vmem:[#allocation8 + $0x464] sm:$0xf] }
  0x8a   :  { %1852 = vmatpush.bf16.msrb.mxu2 %v4179_v26  ;;  %v4392_v26 = vld [vmem:[#allocation8 + $0x268] sm:$0xf0]  ;;  %v6417_v62 = vld [vmem:[#allocation8 + $0x4f4] sm:$0xf] }
  0x8b   :  { %1866 = vmatpush.bf16.msrb.mxu3 %v4243_v29  ;;  %v6367_v29 = vld [vmem:[#allocation8 + $0x364] sm:$0xf]  ;;  %v4395_v33 = vor.u32 %v6335_v24, %v4392_v26  ;;  %v6381_v26 = vld [vmem:[#allocation8 + $0x3d4] sm:$0xf] }
  0x8c   :  { %1877 = vmatpush.bf16.msra.mxu0 %v4331_v30  ;;  %v4520_v30 = vld [vmem:[#allocation8 + $0x368] sm:$0xf0]  ;;  %v6359_v24 = vld [vmem:[#allocation8 + $0x324] sm:$0xf] }
  0x8d   :  { %1839 = vmatpush.bf16.msrb.mxu1 %v4107_v45  ;;  %v4523_v45 = vor.u32 %v6367_v29, %v4520_v30  ;;  %v4427_v29 = vor.u32 %v6343_v22, %v4424_v23  ;;  %v6325_v30 = vld [vmem:[#allocation8 + $0x214] sm:$0xf]  ;;  %v4544_v22 = vld [vmem:[#allocation8 + $0x398] sm:$0xf0] }
  0x8e   :  { %1853 = vmatpush.bf16.msrb.mxu2 %v4171_v46  ;;  %v4384_v46 = vld [vmem:[#allocation8 + $0x258] sm:$0xf0]  ;;  %v6397_v23 = vld [vmem:[#allocation8 + $0x454] sm:$0xf] }
  0x8f   :  { %1867 = vmatpush.bf16.msrb.mxu3 %v4235_v50  ;;  %v6365_v50 = vld [vmem:[#allocation8 + $0x354] sm:$0xf]  ;;  %v4387_v54 = vor.u32 %v6333_v42, %v4384_v46  ;;  %v6379_v46 = vld [vmem:[#allocation8 + $0x3c4] sm:$0xf] }
  0x90   :  { %1878 = vmatpush.bf16.msra.mxu0 %v4323_v51  ;;  %v4512_v51 = vld [vmem:[#allocation8 + $0x358] sm:$0xf0]  ;;  %v6357_v42 = vld [vmem:[#allocation8 + $0x314] sm:$0xf] }
  0x91   :  { %1840 = vmatpush.bf16.msrb.mxu1 %v4099_v59  ;;  %v4376_v59 = vld [vmem:[#allocation8 + $0x248] sm:$0xf0] }
  0x92   :  { %1854 = vmatpush.bf16.msrb.mxu2 %v4163_v60  ;;  %v4515_v60 = vor.u32 %v6365_v50, %v4512_v51  ;;  %v6323_v50 = vld [vmem:[#allocation8 + $0x204] sm:$0xf]  ;;  %v4344_v51 = vld [vmem:[#allocation8 + $0x208] sm:$0xf0] }
  0x93   :  { %1868 = vmatpush.bf16.msrb.mxu3 %v4227_v0  ;;  %v6385_v0 = vld [vmem:[#allocation8 + $0x3f4] sm:$0xf] }
  0x94   :  { %1879 = vmatpush.bf16.msra.mxu0 %v4315_v2  ;;  %v4379_v2 = vor.u32 %v6331_v57, %v4376_v59  ;;  %v4472_v57 = vld [vmem:[#allocation8 + $0x308] sm:$0xf0]  ;;  %v6377_v59 = vld [vmem:[#allocation8 + $0x3b4] sm:$0xf] }
  0x95   :  { %1841 = vmatpush.bf16.msrb.mxu1 %v4091_v13  ;;  %v6383_v13 = vld [vmem:[#allocation8 + $0x3e4] sm:$0xf] }
  0x96   :  { %1855 = vmatpush.bf16.msrb.mxu2 %v4155_v14  ;;  %v4584_v14 = vld [vmem:[#allocation8 + $0x3e8] sm:$0xf0] }
  0x97   :  { %1869 = vmatpush.bf16.msrb.mxu3 %v4219_v18  ;;  %v6327_v18 = vld [vmem:[#allocation8 + $0x224] sm:$0xf] }
  0x98   :  { %1880 = vmatpush.bf16.msra.mxu0 %v4307_v19  ;;  %1842 = vmatmul.bf16.vlgmr.msrb.gmra.mxu1 %v6703_v58  ;;  %v4440_v58 = vld [vmem:[#allocation8 + $0x2c8] sm:$0xf0] }
  0x99   :  { %1890 = vmatpush.bf16.msra.mxu1 %v4403_v20  ;;  %1856 = vmatmul.bf16.vlgmr.msrb.gmra.mxu2 %v6709_v10  ;;  %v4592_v10 = vld [vmem:[#allocation8 + $0x3f8] sm:$0xf0]  ;;  %v4443_v3 = vor.u32 %v6347_v61, %v4440_v58  ;;  %v4360_v19 = vld [vmem:[#allocation8 + $0x228] sm:$0xf0]  ;;  %v4499_v20 = vor.u32 %v6361_v11, %v4496_v12  ;;  %v6401_v61 = vld [vmem:[#allocation8 + $0x474] sm:$0xf] }
  0x9a   :  { %1904 = vmatpush.bf16.msra.mxu2 %v4467_v21  ;;  %1870 = vmatmul.bf16.vlgmr.msrb.gmra.mxu3 %v6705_v1  ;;  %v4283_v1 = vor.u32 %v6307_v53, %v4280_v56  ;;  %v4595_v7 = vor.u32 %v6385_v0, %v4592_v10  ;;  %v4587_v21 = vor.u32 %v6383_v13, %v4584_v14  ;;  %v6355_v56 = vld [vmem:[#allocation8 + $0x304] sm:$0xf]  ;;  %v4656_v58 = vld [vmem:[#allocation8 + $0x478] sm:$0xf0]  ;;  %v4648_v12 = vld [vmem:[#allocation8 + $0x468] sm:$0xf0] }
  0x9b   :  { %1918 = vmatpush.bf16.msra.mxu3 %v4531_v25  ;;  %v4488_v25 = vld [vmem:[#allocation8 + $0x328] sm:$0xf0]  ;;  %v4363_v28 = vor.u32 %v6327_v18, %v4360_v19  ;;  %v4347_v0 = vor.u32 %v6323_v50, %v4344_v51  ;;  %v4659_v5 = vor.u32 %v6401_v61, %v4656_v58  ;;  %v6415_v13 = vld [vmem:[#allocation8 + $0x4e4] sm:$0xf]  ;;  %v4651_v19 = vor.u32 %v6399_v9, %v4648_v12  ;;  %v6445_v12 = vld [vmem:[#allocation8 + $0x5d4] sm:$0xf] }
  0x9c   :  { %1881 = vmatpush.bf16.msra.mxu0 %v4299_v32  ;;  %v4352_v32 = vld [vmem:[#allocation8 + $0x218] sm:$0xf0]  ;;  %v4712_v14 = vld [vmem:[#allocation8 + $0x4e8] sm:$0xf0]  ;;  %v6447_v61 = vld [vmem:[#allocation8 + $0x5e4] sm:$0xf] }
  0x9d   :  { %1891 = vmatpush.bf16.msra.mxu1 %v4395_v33  ;;  %v4491_v33 = vor.u32 %v6359_v24, %v4488_v25  ;;  %v4355_v49 = vor.u32 %v6325_v30, %v4352_v32  ;;  %v4640_v25 = vld [vmem:[#allocation8 + $0x458] sm:$0xf0]  ;;  %v6371_v32 = vld [vmem:[#allocation8 + $0x384] sm:$0xf]  ;;  %v4840_v58 = vld [vmem:[#allocation8 + $0x5e8] sm:$0xf0] }
  0x9e   :  { %1905 = vmatpush.bf16.msra.mxu2 %v4459_v34  ;;  %v4579_v34 = vor.u32 %v6381_v26, %v4576_v27  ;;  %v6413_v26 = vld [vmem:[#allocation8 + $0x4d4] sm:$0xf]  ;;  %v4704_v27 = vld [vmem:[#allocation8 + $0x4d8] sm:$0xf0] }
  0x9f   :  { %1919 = vmatpush.bf16.msra.mxu3 %v4523_v45  ;;  %v4480_v45 = vld [vmem:[#allocation8 + $0x318] sm:$0xf0] }
  0xa0   :  { %1882 = vmatpush.bf16.msra.mxu0 %v4291_v52  ;;  %v6339_v52 = vld [vmem:[#allocation8 + $0x284] sm:$0xf]  ;;  %v4483_v53 = vor.u32 %v6357_v42, %v4480_v45 }
  0xa1   :  { %1892 = vmatpush.bf16.msra.mxu1 %v4387_v54  ;;  %v4571_v54 = vor.u32 %v6379_v46, %v4568_v48  ;;  %v6411_v45 = vld [vmem:[#allocation8 + $0x4c4] sm:$0xf]  ;;  %v4696_v46 = vld [vmem:[#allocation8 + $0x4c8] sm:$0xf0] }
  0xa2   :  { %1906 = vmatpush.bf16.msra.mxu2 %v4451_v55  ;;  %v4408_v55 = vld [vmem:[#allocation8 + $0x288] sm:$0xf0]  ;;  %v6427_v48 = vld [vmem:[#allocation8 + $0x544] sm:$0xf]  ;;  %v4699_v51 = vor.u32 %v6411_v45, %v4696_v46  ;;  %v6441_v46 = vld [vmem:[#allocation8 + $0x5b4] sm:$0xf] }
  0xa3   :  { %1920 = vmatpush.bf16.msra.mxu3 %v4515_v60  ;;  %v4560_v60 = vld [vmem:[#allocation8 + $0x3b8] sm:$0xf0]  ;;  %v4411_v10 = vor.u32 %v6339_v52, %v4408_v55  ;;  %v6393_v52 = vld [vmem:[#allocation8 + $0x434] sm:$0xf]  ;;  %v4728_v45 = vld [vmem:[#allocation8 + $0x508] sm:$0xf0] }
  0xa4   :  { %1883 = vmatpush.bf16.msra.mxu0 %v4283_v1  ;;  %v6433_v1 = vld [vmem:[#allocation8 + $0x574] sm:$0xf]  ;;  %v4563_v4 = vor.u32 %v6377_v59, %v4560_v60  ;;  %v4752_v60 = vld [vmem:[#allocation8 + $0x538] sm:$0xf0] }
  0xa5   :  { %1893 = vmatpush.bf16.msra.mxu1 %v4379_v2  ;;  %v4784_v2 = vld [vmem:[#allocation8 + $0x578] sm:$0xf0]  ;;  %v6425_v59 = vld [vmem:[#allocation8 + $0x534] sm:$0xf] }
  0xa6   :  { %1907 = vmatpush.bf16.msra.mxu2 %v4443_v3  ;;  %v4475_v3 = vor.u32 %v6355_v56, %v4472_v57  ;;  %v4787_v11 = vor.u32 %v6433_v1, %v4784_v2  ;;  %v6409_v56 = vld [vmem:[#allocation8 + $0x4b4] sm:$0xf]  ;;  %v4688_v57 = vld [vmem:[#allocation8 + $0x4b8] sm:$0xf0]  ;;  %v6391_v2 = vld [vmem:[#allocation8 + $0x424] sm:$0xf] }
  0xa7   :  { %1921 = vmatpush.bf16.msra.mxu3 %v4507_v6  ;;  %1884 = vmatmul.bf16.vlgmr.msra.gmra.mxu0 %v6711_v17  ;;  %v4419_v17 = vor.u32 %v6341_v38, %v4416_v41  ;;  %v4723_v6 = vor.u32 %v6417_v62, %v4720_v63  ;;  %v4536_v38 = vld [vmem:[#allocation8 + $0x388] sm:$0xf0]  ;;  %v6395_v41 = vld [vmem:[#allocation8 + $0x444] sm:$0xf]  ;;  %v4691_v1 = vor.u32 %v6409_v56, %v4688_v57 }
  0xa8   :  { %1932 = vmatpush.bf16.msrb.mxu0 %v4595_v7  ;;  %v6375_v7 = vld [vmem:[#allocation8 + $0x3a4] sm:$0xf] }
  0xa9   :  { %1894 = vmatpush.bf16.msra.mxu1 %v4371_v15  ;;  %v6431_v15 = vld [vmem:[#allocation8 + $0x564] sm:$0xf]  ;;  %v4555_v18 = vor.u32 %v6375_v7, %v4552_v8  ;;  %v4680_v7 = vld [vmem:[#allocation8 + $0x4a8] sm:$0xf0] }
  0xaa   :  { %1908 = vmatpush.bf16.msra.mxu2 %v4435_v16  ;;  %v4776_v16 = vld [vmem:[#allocation8 + $0x568] sm:$0xf0]  ;;  %v6423_v8 = vld [vmem:[#allocation8 + $0x524] sm:$0xf] }
  0xab   :  { %1922 = vmatpush.bf16.msra.mxu3 %v4499_v20  ;;  %v4715_v20 = vor.u32 %v6415_v13, %v4712_v14  ;;  %v4779_v24 = vor.u32 %v6431_v15, %v4776_v16  ;;  %v4832_v13 = vld [vmem:[#allocation8 + $0x5d8] sm:$0xf0] }
  0xac   :  { %1933 = vmatpush.bf16.msrb.mxu0 %v4587_v21  ;;  %v6373_v21 = vld [vmem:[#allocation8 + $0x394] sm:$0xf] }
  0xad   :  { %1895 = vmatpush.bf16.msra.mxu1 %v4363_v28  ;;  %v6429_v28 = vld [vmem:[#allocation8 + $0x554] sm:$0xf]  ;;  %v4547_v30 = vor.u32 %v6373_v21, %v4544_v22  ;;  %v4835_v21 = vor.u32 %v6445_v12, %v4832_v13  ;;  %v4864_v12 = vld [vmem:[#allocation8 + $0x618] sm:$0xf0]  ;;  %v4992_v13 = vld [vmem:[#allocation7 + $0x50] sm:$0xf] }
  0xae   :  { %1909 = vmatpush.bf16.msra.mxu2 %v4427_v29  ;;  %v4768_v29 = vld [vmem:[#allocation8 + $0x558] sm:$0xf0]  ;;  %v6405_v22 = vld [vmem:[#allocation8 + $0x494] sm:$0xf] }
  0xaf   :  { %1923 = vmatpush.bf16.msra.mxu3 %v4491_v33  ;;  %v4643_v33 = vor.u32 %v6397_v23, %v4640_v25  ;;  %v4771_v42 = vor.u32 %v6429_v28, %v4768_v29  ;;  %v4672_v23 = vld [vmem:[#allocation8 + $0x498] sm:$0xf0] }
  0xb0   :  { %1934 = vmatpush.bf16.msrb.mxu0 %v4579_v34  ;;  %v4707_v34 = vor.u32 %v6413_v26, %v4704_v27  ;;  %v4736_v26 = vld [vmem:[#allocation8 + $0x518] sm:$0xf0]  ;;  %v4824_v27 = vld [vmem:[#allocation8 + $0x5c8] sm:$0xf0] }
  0xb1   :  { %1896 = vmatpush.bf16.msra.mxu1 %v4355_v49  ;;  %v6449_v49 = vld [vmem:[#allocation8 + $0x5f4] sm:$0xf] }
  0xb2   :  { %1910 = vmatpush.bf16.msra.mxu2 %v4419_v17  ;;  %v4539_v17 = vor.u32 %v6371_v32, %v4536_v38  ;;  %v6387_v32 = vld [vmem:[#allocation8 + $0x404] sm:$0xf] }
  0xb3   :  { %1924 = vmatpush.bf16.msra.mxu3 %v4483_v53  ;;  %v4624_v53 = vld [vmem:[#allocation8 + $0x438] sm:$0xf0] }
  0xb4   :  { %1935 = vmatpush.bf16.msrb.mxu0 %v4571_v54  ;;  %v1661_v62 = vpop.f32.mrf.mxu0 }
  0xb5   :  { %1897 = vmatpush.bf16.msra.mxu1 %v4347_v0  ;;  %v1675_v63 = vpop.f32.mrf.mxu1 }
  0xb6   :  { %1911 = vmatpush.bf16.msra.mxu2 %v4411_v10  ;;  %v1676_v0 = vadd.f32 %v1675_v63, %v1661_v62  ;;  %v4627_v10 = vor.u32 %v6393_v52, %v4624_v53  ;;  %v5072_v52 = vld [vmem:[#allocation7 + $0xf0] sm:$0xf]  ;;  %v6021_v53 = vld [vmem:[#allocation7 + $0xf4] sm:$0xf0]  ;;  %v4872_v63 = vld [vmem:[#allocation8 + $0x628] sm:$0xf0] }
  0xb7   :  { %1925 = vmatpush.bf16.msra.mxu3 %v4475_v3  ;;  %v4616_v3 = vld [vmem:[#allocation8 + $0x428] sm:$0xf0]  ;;  %v5073_v62 = vor.u32 %v6021_v53, %v5072_v52  ;;  %v5128_v52 = vld [vmem:[#allocation7 + $0x160] sm:$0xf]  ;;  %v6035_v53 = vld [vmem:[#allocation7 + $0x164] sm:$0xf0] }
  0xb8   :  { %1936 = vmatpush.bf16.msrb.mxu0 %v4563_v4  ;;  %1898 = vmatmul.bf16.vlgmr.msra.gmra.mxu1 %v6715_v39  ;;  %v4632_v39 = vld [vmem:[#allocation8 + $0x448] sm:$0xf0]  ;;  %v4755_v4 = vor.u32 %v6425_v59, %v4752_v60  ;;  %v4619_v15 = vor.u32 %v6391_v2, %v4616_v3  ;;  %v6439_v60 = vld [vmem:[#allocation8 + $0x5a4] sm:$0xf]  ;;  %v6019_v2 = vld [vmem:[#allocation7 + $0xe4] sm:$0xf0] }
  0xb9   :  { %1946 = vmatpush.bf16.msrb.mxu1 %v4659_v5  ;;  %1912 = vmatmul.bf16.vlgmr.msra.gmra.mxu2 %v6719_v44  ;;  %v4760_v44 = vld [vmem:[#allocation8 + $0x548] sm:$0xf0]  ;;  %v4635_v50 = vor.u32 %v6395_v41, %v4632_v39  ;;  %v4843_v5 = vor.u32 %v6447_v61, %v4840_v58  ;;  %v6455_v58 = vld [vmem:[#allocation8 + $0x624] sm:$0xf] }
  0xba   :  { %1960 = vmatpush.bf16.msrb.mxu2 %v4723_v6  ;;  %1926 = vmatmul.bf16.vlgmr.msra.gmra.mxu3 %v6717_v43  ;;  %v4848_v43 = vld [vmem:[#allocation8 + $0x5f8] sm:$0xf0]  ;;  %v4763_v54 = vor.u32 %v6427_v48, %v4760_v44  ;;  %v6407_v6 = vld [vmem:[#allocation8 + $0x4a4] sm:$0xf]  ;;  %v4664_v39 = vld [vmem:[#allocation8 + $0x488] sm:$0xf0] }
  0xbb   :  { %1974 = vmatpush.bf16.msrb.mxu3 %v4787_v11  ;;  %v4851_v55 = vor.u32 %v6449_v49, %v4848_v43  ;;  %v4744_v11 = vld [vmem:[#allocation8 + $0x528] sm:$0xf0]  ;;  %v4683_v16 = vor.u32 %v6407_v6, %v4680_v7  ;;  %v4816_v48 = vld [vmem:[#allocation8 + $0x5b8] sm:$0xf0]  ;;  %v6457_v44 = vld [vmem:[#allocation8 + $0x634] sm:$0xf] }
  0xbc   :  { %1937 = vmatpush.bf16.msrb.mxu0 %v4555_v18  ;;  %v1689_v9 = vpop.f32.mrf.mxu2  ;;  %v6389_v18 = vld [vmem:[#allocation8 + $0x414] sm:$0xf]  ;;  %v4880_v49 = vld [vmem:[#allocation8 + $0x638] sm:$0xf0]  ;;  %v5008_v43 = vld [vmem:[#allocation7 + $0x70] sm:$0xf]  ;;  %v6753_v59 = vpop.f32.mrf.mxu0 }
  0xbd   :  { %1947 = vmatpush.bf16.msrb.mxu1 %v4651_v19  ;;  %v1690_v14 = vadd.f32 %v1689_v9, %v1676_v0  ;;  %v4608_v19 = vld [vmem:[#allocation8 + $0x418] sm:$0xf0]  ;;  %v1703_v25 = vpop.f32.mrf.mxu3  ;;  %v4883_v56 = vor.u32 %v6457_v44, %v4880_v49  ;;  %v4808_v61 = vld [vmem:[#allocation8 + $0x5a8] sm:$0xf0]  ;;  %v5000_v0 = vld [vmem:[#allocation7 + $0x60] sm:$0xf]  ;;  %v6755_v3 = vpop.f32.mrf.mxu1 }
  0xbe   :  { %1961 = vmatpush.bf16.msrb.mxu2 %v4715_v20  ;;  %v4747_v20 = vor.u32 %v6423_v8, %v4744_v11  ;;  %v4611_v29 = vor.u32 %v6389_v18, %v4608_v19  ;;  %v6437_v7 = vld [vmem:[#allocation8 + $0x594] sm:$0xf]  ;;  %v4800_v8 = vld [vmem:[#allocation8 + $0x598] sm:$0xf0]  ;;  %v4976_v49 = vld [vmem:[#allocation7 + $0x30] sm:$0xf] }
  0xbf   :  { %1975 = vmatpush.bf16.msrb.mxu3 %v4779_v24  ;;  %v6421_v24 = vld [vmem:[#allocation8 + $0x514] sm:$0xf]  ;;  %v6751_v28 = vadd.f32 %v1703_v25, %v1690_v14  ;;  %v6001_v14 = vld [vmem:[#allocation7 + $0x54] sm:$0xf0]  ;;  %v4803_v18 = vor.u32 %v6437_v7, %v4800_v8 }
  0xc0   :  { %1938 = vmatpush.bf16.msrb.mxu0 %v4547_v30  ;;  %v4675_v30 = vor.u32 %v6405_v22, %v4672_v23  ;;  %v4739_v38 = vor.u32 %v6421_v24, %v4736_v26  ;;  %v6453_v9 = vld [vmem:[#allocation8 + $0x614] sm:$0xf]  ;;  %v4993_v22 = vor.u32 %v6001_v14, %v4992_v13  ;;  %v6451_v23 = vld [vmem:[#allocation8 + $0x604] sm:$0xf]  ;;  %v4856_v24 = vld [vmem:[#allocation8 + $0x608] sm:$0xf0] }
  0xc1   :  { %1948 = vmatpush.bf16.msrb.mxu1 %v4643_v33  ;;  %v4600_v33 = vld [vmem:[#allocation8 + $0x408] sm:$0xf0]  ;;  %v5993_v13 = vld [vmem:[#allocation7 + $0x14] sm:$0xf0]  ;;  %v5024_v14 = vld [vmem:[#allocation7 + $0x90] sm:$0xf] }
  0xc2   :  { %1962 = vmatpush.bf16.msrb.mxu2 %v4707_v34  ;;  %v6403_v34 = vld [vmem:[#allocation8 + $0x484] sm:$0xf] }
  0xc3   :  { %1976 = vmatpush.bf16.msrb.mxu3 %v4771_v42  ;;  %v6419_v42 = vld [vmem:[#allocation8 + $0x504] sm:$0xf] }
  0xc4   :  { %1939 = vmatpush.bf16.msrb.mxu0 %v4539_v17  ;;  %v6005_v17 = vld [vmem:[#allocation7 + $0x74] sm:$0xf0]  ;;  %v6760_v19 = vpop.f32.mrf.mxu2 }
  0xc5   :  { %1949 = vmatpush.bf16.msrb.mxu1 %v4635_v50  ;;  %v4603_v50 = vor.u32 %v6387_v32, %v4600_v33  ;;  %v5009_v57 = vor.u32 %v6005_v17, %v5008_v43  ;;  %v6762_v26 = vpop.f32.mrf.mxu3  ;;  %v6037_v32 = vld [vmem:[#allocation7 + $0x174] sm:$0xf0]  ;;  %v5040_v17 = vld [vmem:[#allocation7 + $0xb0] sm:$0xf] }
  0xc6   :  { %1963 = vmatpush.bf16.msrb.mxu2 %v4699_v51  ;;  %v4667_v51 = vor.u32 %v6403_v34, %v4664_v39  ;;  %v4859_v39 = vor.u32 %v6451_v23, %v4856_v24  ;;  %v5997_v43 = vld [vmem:[#allocation7 + $0x34] sm:$0xf0]  ;;  %v5991_v23 = vld [vmem:[#allocation7 + $0x4] sm:$0xf0] }
  0xc7   :  { %1977 = vmatpush.bf16.msrb.mxu3 %v4763_v54  ;;  %1940 = vmatmul.bf16.vlgmr.msrb.gmra.mxu0 %v6721_v47  ;;  %v6443_v47 = vld [vmem:[#allocation8 + $0x5c4] sm:$0xf]  ;;  %v4731_v54 = vor.u32 %v6419_v42, %v4728_v45 }
  0xc8   :  { %1988 = vmatpush.bf16.msra.mxu0 %v4851_v55  ;;  %v4827_v41 = vor.u32 %v6443_v47, %v4824_v27  ;;  %v4819_v55 = vor.u32 %v6441_v46, %v4816_v48  ;;  %v5048_v47 = vld [vmem:[#allocation7 + $0xc0] sm:$0xf] }
  0xc9   :  { %1950 = vmatpush.bf16.msrb.mxu1 %v4627_v10  ;;  %v6003_v10 = vld [vmem:[#allocation7 + $0x64] sm:$0xf0] }
  0xca   :  { %1964 = vmatpush.bf16.msrb.mxu2 %v4691_v1  ;;  %v5064_v1 = vld [vmem:[#allocation7 + $0xe0] sm:$0xf]  ;;  %v5001_v6 = vor.u32 %v6003_v10, %v5000_v0  ;;  %v6011_v10 = vld [vmem:[#allocation7 + $0xa4] sm:$0xf0] }
  0xcb   :  { %1978 = vmatpush.bf16.msrb.mxu3 %v4755_v4  ;;  %v4811_v4 = vor.u32 %v6439_v60, %v4808_v61  ;;  %v5065_v11 = vor.u32 %v6019_v2, %v5064_v1  ;;  %v5129_v60 = vor.u32 %v6035_v53, %v5128_v52  ;;  %v4968_v61 = vld [vmem:[#allocation7 + $0x20] sm:$0xf]  ;;  %v5120_v1 = vld [vmem:[#allocation7 + $0x150] sm:$0xf]  ;;  %v6033_v2 = vld [vmem:[#allocation7 + $0x154] sm:$0xf0] }
  0xcc   :  { %1989 = vmatpush.bf16.msra.mxu0 %v4843_v5  ;;  %v4875_v5 = vor.u32 %v6455_v58, %v4872_v63  ;;  %v5995_v58 = vld [vmem:[#allocation7 + $0x24] sm:$0xf0]  ;;  %v5160_v52 = vld [vmem:[#allocation7 + $0x1a0] sm:$0xf] }
  0xcd   :  { %1951 = vmatpush.bf16.msrb.mxu1 %v4619_v15  ;;  %v5056_v15 = vld [vmem:[#allocation7 + $0xd0] sm:$0xf]  ;;  %v4969_v8 = vor.u32 %v5995_v58, %v4968_v61  ;;  %v6083_v61 = vld [vmem:[#allocation7 + $0x2e4] sm:$0xf0] }
  0xce   :  { %1965 = vmatpush.bf16.msrb.mxu2 %v4683_v16  ;;  %v6017_v16 = vld [vmem:[#allocation7 + $0xd4] sm:$0xf0] }
  0xcf   :  { %1979 = vmatpush.bf16.msrb.mxu3 %v4747_v20  ;;  %v6435_v20 = vld [vmem:[#allocation8 + $0x584] sm:$0xf]  ;;  %v5057_v25 = vor.u32 %v6017_v16, %v5056_v15  ;;  %v6009_v15 = vld [vmem:[#allocation7 + $0x94] sm:$0xf0]  ;;  %v5112_v16 = vld [vmem:[#allocation7 + $0x140] sm:$0xf] }
  0xd0   :  { %1990 = vmatpush.bf16.msra.mxu0 %v4835_v21  ;;  %v4867_v21 = vor.u32 %v6453_v9, %v4864_v12  ;;  %v4960_v12 = vld [vmem:[#allocation7 + $0x10] sm:$0xf]  ;;  %v5025_v24 = vor.u32 %v6009_v15, %v5024_v14  ;;  %v6023_v14 = vld [vmem:[#allocation7 + $0x104] sm:$0xf0] }
  0xd1   :  { %1952 = vmatpush.bf16.msrb.mxu1 %v4611_v29  ;;  %v6015_v29 = vld [vmem:[#allocation7 + $0xc4] sm:$0xf0] }
  0xd2   :  { %1966 = vmatpush.bf16.msrb.mxu2 %v4675_v30  ;;  %v5136_v30 = vld [vmem:[#allocation7 + $0x170] sm:$0xf]  ;;  %v5049_v46 = vor.u32 %v6015_v29, %v5048_v47  ;;  %v6029_v29 = vld [vmem:[#allocation7 + $0x134] sm:$0xf0] }
  0xd3   :  { %1980 = vmatpush.bf16.msrb.mxu3 %v4739_v38  ;;  %v5200_v38 = vld [vmem:[#allocation7 + $0x1f0] sm:$0xf]  ;;  %v5137_v44 = vor.u32 %v6037_v32, %v5136_v30  ;;  %v6045_v32 = vld [vmem:[#allocation7 + $0x1b4] sm:$0xf0] }
  0xd4   :  { %1991 = vmatpush.bf16.msra.mxu0 %v4827_v41  ;;  %v1717_v27 = vpop.f32.mrf.mxu0  ;;  %v6053_v41 = vld [vmem:[#allocation7 + $0x1f4] sm:$0xf0]  ;;  %v5104_v47 = vld [vmem:[#allocation7 + $0x130] sm:$0xf] }
  0xd5   :  { %1953 = vmatpush.bf16.msrb.mxu1 %v4603_v50  ;;  %v1718_v33 = vadd.f32 %v1717_v27, %v6751_v28  ;;  %v1731_v45 = vpop.f32.mrf.mxu1  ;;  %v5201_v50 = vor.u32 %v6053_v41, %v5200_v38  ;;  %v5192_v28 = vld [vmem:[#allocation7 + $0x1e0] sm:$0xf]  ;;  %v5168_v30 = vld [vmem:[#allocation7 + $0x1b0] sm:$0xf]  ;;  %v1678_v38 = vadd.f32 %v6755_v3, %v6753_v59  ;;  %v6043_v59 = vld [vmem:[#allocation7 + $0x1a4] sm:$0xf0] }
  0xd6   :  { %1967 = vmatpush.bf16.msrb.mxu2 %v4667_v51  ;;  %v6013_v51 = vld [vmem:[#allocation7 + $0xb4] sm:$0xf0]  ;;  %v5256_v3 = vld [vmem:[#allocation7 + $0x260] sm:$0xf] }
  0xd7   :  { %1981 = vmatpush.bf16.msrb.mxu3 %v4731_v54  ;;  %v1732_v48 = vadd.f32 %v1731_v45, %v1718_v33  ;;  %v6051_v54 = vld [vmem:[#allocation7 + $0x1e4] sm:$0xf0]  ;;  %v5264_v33 = vld [vmem:[#allocation7 + $0x270] sm:$0xf]  ;;  %v5982_v45 = vld [vmem:[#allocation2 + $0x3c] sm:$0xf0] }
  0xd8   :  { %1992 = vmatpush.bf16.msra.mxu0 %v4819_v55  ;;  %1954 = vmatmul.bf16.vlgmr.msrb.gmra.mxu1 %v6727_v31  ;;  %v4792_v31 = vld [vmem:[#allocation8 + $0x588] sm:$0xf0]  ;;  %v4977_v55 = vor.u32 %v5997_v43, %v4976_v49  ;;  %v5193_v0 = vor.u32 %v6051_v54, %v5192_v28  ;;  %v4890_v49 = vld [vmem:[#allocation2 + $0x40] sm:$0xf0]  ;;  %v5169_v43 = vor.u32 %v6045_v32, %v5168_v30  ;;  %v6067_v54 = vld [vmem:[#allocation7 + $0x264] sm:$0xf0] }
  0xd9   :  { %2006 = vmatpush.bf16.msra.mxu1 %v4883_v56  ;;  %1968 = vmatmul.bf16.vlgmr.msrb.gmra.mxu2 %v6731_v36  ;;  %v4984_v36 = vld [vmem:[#allocation7 + $0x40] sm:$0xf]  ;;  %v4795_v34 = vor.u32 %v6435_v20, %v4792_v31  ;;  %v5041_v56 = vor.u32 %v6013_v51, %v5040_v17  ;;  %v6027_v51 = vld [vmem:[#allocation7 + $0x124] sm:$0xf0] }
  0xda   :  { %3376 = vmatpush.bf16.msra.mxu2 %v5009_v57  ;;  %1982 = vmatmul.bf16.vlgmr.msrb.gmra.mxu3 %v6729_v35  ;;  %v5999_v35 = vld [vmem:[#allocation7 + $0x44] sm:$0xf0]  ;;  %v5176_v20 = vld [vmem:[#allocation7 + $0x1c0] sm:$0xf] }
  0xdb   :  { %3390 = vmatpush.bf16.msra.mxu3 %v5073_v62  ;;  %v4985_v42 = vor.u32 %v5999_v35, %v4984_v36  ;;  %v5032_v62 = vld [vmem:[#allocation7 + $0xa0] sm:$0xf]  ;;  %v6007_v35 = vld [vmem:[#allocation7 + $0x84] sm:$0xf0] }
  0xdc   :  { %1993 = vmatpush.bf16.msra.mxu0 %v4811_v4  ;;  %v1745_v57 = vpop.f32.mrf.mxu2  ;;  %v5033_v9 = vor.u32 %v6011_v10, %v5032_v62  ;;  %v4952_v31 = vld [vmem:[#allocation7] sm:$0xf]  ;;  %v5088_v10 = vld [vmem:[#allocation7 + $0x110] sm:$0xf] }
  0xdd   :  { %2007 = vmatpush.bf16.msra.mxu1 %v4875_v5  ;;  %v1746_v63 = vadd.f32 %v1745_v57, %v1732_v48  ;;  %v1759_v4 = vpop.f32.mrf.mxu3  ;;  %v5184_v5 = vld [vmem:[#allocation7 + $0x1d0] sm:$0xf]  ;;  %v5016_v36 = vld [vmem:[#allocation7 + $0x80] sm:$0xf]  ;;  %v4953_v41 = vor.u32 %v5991_v23, %v4952_v31  ;;  %v5105_v48 = vor.u32 %v6029_v29, %v5104_v47  ;;  %v1733_v58 = vpop.f32.mrf.mxu1  ;;  %v6101_v47 = vld [vmem:[#allocation7 + $0x374] sm:$0xf0] }
  0xde   :  { %3377 = vmatpush.bf16.msra.mxu2 %v5001_v6  ;;  %v6049_v6 = vld [vmem:[#allocation7 + $0x1d4] sm:$0xf0]  ;;  %v5304_v23 = vld [vmem:[#allocation7 + $0x2c0] sm:$0xf] }
  0xdf   :  { %3391 = vmatpush.bf16.msra.mxu3 %v5065_v11  ;;  %v6766_v7 = vadd.f32 %v1759_v4, %v1746_v63  ;;  %v5121_v11 = vor.u32 %v6033_v2, %v5120_v1  ;;  %v5161_v63 = vor.u32 %v6043_v59, %v5160_v52  ;;  %v6025_v1 = vld [vmem:[#allocation7 + $0x114] sm:$0xf0]  ;;  %v5152_v2 = vld [vmem:[#allocation7 + $0x190] sm:$0xf]  ;;  %v6099_v59 = vld [vmem:[#allocation7 + $0x364] sm:$0xf0] }
  0xe0   :  { %1994 = vmatpush.bf16.msra.mxu0 %v4803_v18  ;;  %v6031_v18 = vld [vmem:[#allocation7 + $0x144] sm:$0xf0]  ;;  %v6041_v4 = vld [vmem:[#allocation7 + $0x194] sm:$0xf0] }
  0xe1   :  { %2008 = vmatpush.bf16.msra.mxu1 %v4867_v21  ;;  %v6047_v21 = vld [vmem:[#allocation7 + $0x1c4] sm:$0xf0]  ;;  %v5153_v15 = vor.u32 %v6041_v4, %v5152_v2  ;;  %v6077_v52 = vld [vmem:[#allocation7 + $0x2b4] sm:$0xf0] }
  0xe2   :  { %3378 = vmatpush.bf16.msra.mxu2 %v4993_v22  ;;  %v4961_v22 = vor.u32 %v5993_v13, %v4960_v12  ;;  %v5177_v27 = vor.u32 %v6047_v21, %v5176_v20  ;;  %v5089_v12 = vor.u32 %v6025_v1, %v5088_v10  ;;  %v5080_v13 = vld [vmem:[#allocation7 + $0x100] sm:$0xf]  ;;  %v6039_v20 = vld [vmem:[#allocation7 + $0x184] sm:$0xf0] }
  0xe3   :  { %3392 = vmatpush.bf16.msra.mxu3 %v5057_v25  ;;  %v5113_v25 = vor.u32 %v6031_v18, %v5112_v16  ;;  %v5144_v18 = vld [vmem:[#allocation7 + $0x180] sm:$0xf]  ;;  %v5081_v30 = vor.u32 %v6023_v14, %v5080_v13 }
  0xe4   :  { %1995 = vmatpush.bf16.msra.mxu0 %v4795_v34  ;;  %v5328_v34 = vld [vmem:[#allocation7 + $0x2f0] sm:$0xf]  ;;  %v5240_v21 = vld [vmem:[#allocation7 + $0x240] sm:$0xf] }
  0xe5   :  { %2009 = vmatpush.bf16.msra.mxu1 %v4859_v39  ;;  %v6085_v39 = vld [vmem:[#allocation7 + $0x2f4] sm:$0xf0] }
  0xe6   :  { %3379 = vmatpush.bf16.msra.mxu2 %v4985_v42  ;;  %v4888_v42 = vld [vmem:[#allocation2] sm:$0xf]  ;;  %v5329_v53 = vor.u32 %v6085_v39, %v5328_v34  ;;  %v5983_v34 = vld [vmem:[#allocation2 + $0x44] sm:$0xf0] }
  0xe7   :  { %3393 = vmatpush.bf16.msra.mxu3 %v5049_v46  ;;  %1996 = vmatmul.bf16.vlgmr.msra.gmra.mxu0 %v6733_v40  ;;  %v5185_v40 = vor.u32 %v6049_v6, %v5184_v5  ;;  %v5017_v46 = vor.u32 %v6007_v35, %v5016_v36  ;;  %v6772_v28 = vor.u32 %v5982_v45, %v4888_v42  ;;  %v5248_v5 = vld [vmem:[#allocation7 + $0x250] sm:$0xf]  ;;  %v6065_v6 = vld [vmem:[#allocation7 + $0x254] sm:$0xf0]  ;;  %v5975_v42 = vld [vmem:[#allocation2 + $0xc] sm:$0xf] }
  0xe8   :  { %3404 = vmatpush.bf16.msrb.mxu0 %v5137_v44  ;;  %4885 = vmatmul.msk.bf16.vlgmr.msra.gmra.mxu1 %vm1648_vm0, %v6739_v37  ;;  %v6069_v37 = vld [vmem:[#allocation7 + $0x274] sm:$0xf0]  ;;  %v5974_v44 = vld [vmem:[#allocation2 + $0x4] sm:$0xf]  ;;  %v5249_v16 = vor.u32 %v6065_v6, %v5248_v5  ;;  %v5392_v35 = vld [vmem:[#allocation7 + $0x370] sm:$0xf] }
  0xe9   :  { %3418 = vmatpush.bf16.msrb.mxu1 %v5201_v50  ;;  %v5265_v17 = vor.u32 %v6069_v37, %v5264_v33  ;;  %v5096_v50 = vld [vmem:[#allocation7 + $0x120] sm:$0xf]  ;;  %v6775_v57 = vor.u32 %v5974_v44, %v4890_v49  ;;  %v6117_v33 = vld [vmem:[#allocation7 + $0x3f4] sm:$0xf0]  ;;  %v4898_v45 = vld [vmem:[#allocation2 + $0x48] sm:$0xf0]  ;;  %v5393_v44 = vor.u32 %v6101_v47, %v5392_v35 }
  0xea   :  { %3380 = vmatpush.bf16.msra.mxu2 %v4977_v55  ;;  %v1692_v55 = vadd.f32 %v6760_v19, %v1678_v38  ;;  %v5097_v62 = vor.u32 %v6027_v51, %v5096_v50  ;;  %v4896_v37 = vld [vmem:[#allocation2 + $0x8] sm:$0xf]  ;;  %v5232_v49 = vld [vmem:[#allocation7 + $0x230] sm:$0xf]  ;;  %v6075_v5 = vld [vmem:[#allocation7 + $0x2a4] sm:$0xf0] }
  0xeb   :  { %3394 = vmatpush.bf16.msra.mxu3 %v5041_v56  ;;  %v1719_v56 = vpop.f32.mrf.mxu0  ;;  %v6781_v51 = vor.u32 %v5983_v34, %v4896_v37  ;;  %v5376_v6 = vld [vmem:[#allocation7 + $0x350] sm:$0xf]  ;;  %v5208_v47 = vld [vmem:[#allocation7 + $0x200] sm:$0xf]  ;;  %v6071_v37 = vld [vmem:[#allocation7 + $0x284] sm:$0xf0] }
  0xec   :  { %3405 = vmatpush.bf16.msrb.mxu0 %v5129_v60  ;;  %v5320_v60 = vld [vmem:[#allocation7 + $0x2e0] sm:$0xf]  ;;  %v5360_v34 = vld [vmem:[#allocation7 + $0x330] sm:$0xf] }
  0xed   :  { %3419 = vmatpush.bf16.msrb.mxu1 %v5193_v0  ;;  %v5257_v0 = vor.u32 %v6067_v54, %v5256_v3  ;;  %v5321_v19 = vor.u32 %v6083_v61, %v5320_v60  ;;  %v6783_v3 = vor.u32 %v5975_v42, %v4898_v45  ;;  %v5448_v54 = vld [vmem:[#allocation7 + $0x3e0] sm:$0xf]  ;;  %v6093_v42 = vld [vmem:[#allocation7 + $0x334] sm:$0xf0]  ;;  %v5424_v45 = vld [vmem:[#allocation7 + $0x3b0] sm:$0xf] }
  0xee   :  { %3381 = vmatpush.bf16.msra.mxu2 %v4969_v8  ;;  %v1706_v8 = vadd.f32 %v6762_v26, %v1692_v55  ;;  %v6063_v26 = vld [vmem:[#allocation7 + $0x244] sm:$0xf0] }
  0xef   :  { %3395 = vmatpush.bf16.msra.mxu3 %v5033_v9  ;;  %v5312_v9 = vld [vmem:[#allocation7 + $0x2d0] sm:$0xf]  ;;  %v5241_v39 = vor.u32 %v6063_v26, %v5240_v21  ;;  %v6115_v55 = vld [vmem:[#allocation7 + $0x3e4] sm:$0xf0]  ;;  %v5368_v26 = vld [vmem:[#allocation7 + $0x340] sm:$0xf] }
  0xf0   :  { %3406 = vmatpush.bf16.msrb.mxu0 %v5121_v11  ;;  %v6081_v11 = vld [vmem:[#allocation7 + $0x2d4] sm:$0xf0]  ;;  %v5449_v2 = vor.u32 %v6115_v55, %v5448_v54  ;;  %v5280_v21 = vld [vmem:[#allocation7 + $0x290] sm:$0xf]  ;;  %v5361_v55 = vor.u32 %v6093_v42, %v5360_v34 }
  0xf1   :  { %3420 = vmatpush.bf16.msrb.mxu1 %v5185_v40  ;;  %v1720_v40 = vadd.f32 %v1719_v56, %v1706_v8  ;;  %v5313_v31 = vor.u32 %v6081_v11, %v5312_v9  ;;  %v6097_v8 = vld [vmem:[#allocation7 + $0x354] sm:$0xf0]  ;;  %v5440_v9 = vld [vmem:[#allocation7 + $0x3d0] sm:$0xf] }
  0xf2   :  { %3382 = vmatpush.bf16.msra.mxu2 %v4961_v22  ;;  %v1747_v22 = vpop.f32.mrf.mxu2  ;;  %v6113_v11 = vld [vmem:[#allocation7 + $0x3d4] sm:$0xf0]  ;;  %v5648_v34 = vld [vmem:[#allocation7 + $0x570] sm:$0xf] }
  0xf3   :  { %3396 = vmatpush.bf16.msra.mxu3 %v5025_v24  ;;  %v6079_v24 = vld [vmem:[#allocation7 + $0x2c4] sm:$0xf0]  ;;  %v1734_v38 = vadd.f32 %v1733_v58, %v1720_v40  ;;  %v6181_v42 = vld [vmem:[#allocation7 + $0x5f4] sm:$0xf0] }
  0xf4   :  { %3407 = vmatpush.bf16.msrb.mxu0 %v5113_v25  ;;  %v1761_v25 = vpop.f32.mrf.mxu3  ;;  %v1773_v36 = vpop.f32.mrf.mxu0 }
  0xf5   :  { %3421 = vmatpush.bf16.msrb.mxu1 %v5177_v27  ;;  %v5456_v27 = vld [vmem:[#allocation7 + $0x3f0] sm:$0xf]  ;;  %v1774_v29 = vadd.f32 %v1773_v36, %v6766_v7  ;;  %v1787_v32 = vpop.f32.mrf.mxu1  ;;  %v1748_v7 = vadd.f32 %v1747_v22, %v1734_v38  ;;  %v5441_v22 = vor.u32 %v6113_v11, %v5440_v9 }
  0xf6   :  { %3383 = vmatpush.bf16.msra.mxu2 %v4953_v41  ;;  %v5145_v41 = vor.u32 %v6039_v20, %v5144_v18  ;;  %v5457_v50 = vor.u32 %v6117_v33, %v5456_v27  ;;  %v5216_v18 = vld [vmem:[#allocation7 + $0x210] sm:$0xf]  ;;  %v6057_v20 = vld [vmem:[#allocation7 + $0x214] sm:$0xf0]  ;;  %v6055_v27 = vld [vmem:[#allocation7 + $0x204] sm:$0xf0] }
  0xf7   :  { %3397 = vmatpush.bf16.msra.mxu3 %v5017_v46  ;;  %v5305_v46 = vor.u32 %v6079_v24, %v5304_v23  ;;  %v1762_v10 = vadd.f32 %v1761_v25, %v1748_v7  ;;  %v6095_v23 = vld [vmem:[#allocation7 + $0x344] sm:$0xf0]  ;;  %v5432_v24 = vld [vmem:[#allocation7 + $0x3c0] sm:$0xf]  ;;  %v5217_v35 = vor.u32 %v6057_v20, %v5216_v18  ;;  %v6105_v18 = vld [vmem:[#allocation7 + $0x394] sm:$0xf0] }
  0xf8   :  { %3408 = vmatpush.bf16.msrb.mxu0 %v5105_v48  ;;  %v1788_v48 = vadd.f32 %v1787_v32, %v1774_v29  ;;  %v6111_v25 = vld [vmem:[#allocation7 + $0x3c4] sm:$0xf0]  ;;  %v5369_v32 = vor.u32 %v6095_v23, %v5368_v26  ;;  %v5272_v33 = vld [vmem:[#allocation7 + $0x280] sm:$0xf]  ;;  %v5504_v20 = vld [vmem:[#allocation7 + $0x450] sm:$0xf] }
  0xf9   :  { %3422 = vmatpush.bf16.msrb.mxu1 %v5169_v43  ;;  %3384 = vmatmul.bf16.vlgmr.msra.gmra.mxu2 %v6772_v28  ;;  %v6061_v43 = vld [vmem:[#allocation7 + $0x234] sm:$0xf0]  ;;  %v5273_v54 = vor.u32 %v6071_v37, %v5272_v33  ;;  %v5560_v33 = vld [vmem:[#allocation7 + $0x4c0] sm:$0xf]  ;;  %v6143_v37 = vld [vmem:[#allocation7 + $0x4c4] sm:$0xf0] }
  0xfa   :  { %3432 = vmatpush.bf16.msrb.mxu2 %v5265_v17  ;;  %3398 = vmatmul.bf16.vlgmr.msra.gmra.mxu3 %v6775_v57  ;;  %v5296_v17 = vld [vmem:[#allocation7 + $0x2b0] sm:$0xf]  ;;  %v5233_v56 = vor.u32 %v6061_v43, %v5232_v49  ;;  %v6133_v49 = vld [vmem:[#allocation7 + $0x474] sm:$0xf0] }
  0xfb   :  { %3446 = vmatpush.bf16.msrb.mxu3 %v5329_v53  ;;  %v5384_v53 = vld [vmem:[#allocation7 + $0x360] sm:$0xf]  ;;  %v5297_v60 = vor.u32 %v6077_v52, %v5296_v17  ;;  %v5584_v43 = vld [vmem:[#allocation7 + $0x4f0] sm:$0xf]  ;;  %v6149_v52 = vld [vmem:[#allocation7 + $0x4f4] sm:$0xf0] }
  0xfc   :  { %3409 = vmatpush.bf16.msrb.mxu0 %v5097_v62  ;;  %v1801_v61 = vpop.f32.mrf.mxu2  ;;  %v5385_v58 = vor.u32 %v6099_v59, %v5384_v53  ;;  %v5224_v62 = vld [vmem:[#allocation7 + $0x220] sm:$0xf]  ;;  %v4904_v53 = vld [vmem:[#allocation2 + $0x10] sm:$0xf]  ;;  %v6145_v26 = vld [vmem:[#allocation7 + $0x4d4] sm:$0xf0] }
  0xfd   :  { %3423 = vmatpush.bf16.msrb.mxu1 %v5161_v63  ;;  %v6059_v63 = vld [vmem:[#allocation7 + $0x224] sm:$0xf0]  ;;  %v1802_v1 = vadd.f32 %v1801_v61, %v1788_v48  ;;  %v1815_v4 = vpop.f32.mrf.mxu3 }
  0xfe   :  { %3433 = vmatpush.bf16.msrb.mxu2 %v5257_v0  ;;  %v5288_v0 = vld [vmem:[#allocation7 + $0x2a0] sm:$0xf]  ;;  %v5225_v14 = vor.u32 %v6059_v63, %v5224_v62  ;;  %v5984_v59 = vld [vmem:[#allocation2 + $0x4c] sm:$0xf0] }
  0xff   :  { %3447 = vmatpush.bf16.msrb.mxu3 %v5321_v19  ;;  %v1775_v19 = vpop.f32.mrf.mxu0  ;;  %v1816_v13 = vadd.f32 %v1815_v4, %v1802_v1  ;;  %v5289_v40 = vor.u32 %v6075_v5, %v5288_v0  ;;  %v5352_v62 = vld [vmem:[#allocation7 + $0x320] sm:$0xf]  ;;  %v6091_v63 = vld [vmem:[#allocation7 + $0x324] sm:$0xf0]  ;;  %v6789_v1 = vor.u32 %v5984_v59, %v4904_v53  ;;  %v6125_v53 = vld [vmem:[#allocation7 + $0x434] sm:$0xf0] }
 0x100   :  { %3410 = vmatpush.bf16.msrb.mxu0 %v5089_v12  ;;  %v1776_v12 = vadd.f32 %v1775_v19, %v1762_v10  ;;  %v5416_v0 = vld [vmem:[#allocation7 + $0x3a0] sm:$0xf]  ;;  %v5585_v10 = vor.u32 %v6149_v52, %v5584_v43  ;;  %v6131_v4 = vld [vmem:[#allocation7 + $0x464] sm:$0xf0]  ;;  %v5353_v9 = vor.u32 %v6091_v63, %v5352_v62  ;;  %v4914_v43 = vld [vmem:[#allocation2 + $0x58] sm:$0xf0] }
 0x101   :  { %3424 = vmatpush.bf16.msrb.mxu1 %v5153_v15  ;;  %v1789_v15 = vpop.f32.mrf.mxu1  ;;  %v5512_v19 = vld [vmem:[#allocation7 + $0x460] sm:$0xf]  ;;  %v5488_v52 = vld [vmem:[#allocation7 + $0x430] sm:$0xf]  ;;  %v6179_v63 = vld [vmem:[#allocation7 + $0x5e4] sm:$0xf0] }
 0x102   :  { %3434 = vmatpush.bf16.msrb.mxu2 %v5249_v16  ;;  %v5377_v16 = vor.u32 %v6097_v8, %v5376_v6  ;;  %v1790_v36 = vadd.f32 %v1789_v15, %v1776_v12  ;;  %v5576_v6 = vld [vmem:[#allocation7 + $0x4e0] sm:$0xf]  ;;  %v6147_v8 = vld [vmem:[#allocation7 + $0x4e4] sm:$0xf0]  ;;  %v5513_v12 = vor.u32 %v6131_v4, %v5512_v19  ;;  %v5552_v59 = vld [vmem:[#allocation7 + $0x4b0] sm:$0xf] }
 0x103   :  { %3448 = vmatpush.bf16.msrb.mxu3 %v5313_v31  ;;  %v6073_v31 = vld [vmem:[#allocation7 + $0x294] sm:$0xf0]  ;;  %v5577_v15 = vor.u32 %v6147_v8, %v5576_v6  ;;  %v5704_v62 = vld [vmem:[#allocation7 + $0x5e0] sm:$0xf]  ;;  %v6123_v6 = vld [vmem:[#allocation7 + $0x424] sm:$0xf0] }
 0x104   :  { %3411 = vmatpush.bf16.msrb.mxu0 %v5081_v30  ;;  %v5281_v29 = vor.u32 %v6073_v31, %v5280_v21  ;;  %v1803_v30 = vpop.f32.mrf.mxu2  ;;  %v6129_v21 = vld [vmem:[#allocation7 + $0x454] sm:$0xf0]  ;;  %v5568_v31 = vld [vmem:[#allocation7 + $0x4d0] sm:$0xf]  ;;  %v5480_v4 = vld [vmem:[#allocation7 + $0x420] sm:$0xf] }
 0x105   :  { %3425 = vmatpush.bf16.msrb.mxu1 %v5145_v41  ;;  %v1804_v38 = vadd.f32 %v1803_v30, %v1790_v36  ;;  %v5433_v41 = vor.u32 %v6111_v25, %v5432_v24  ;;  %v5336_v24 = vld [vmem:[#allocation7 + $0x300] sm:$0xf]  ;;  %v6087_v25 = vld [vmem:[#allocation7 + $0x304] sm:$0xf0]  ;;  %v5569_v30 = vor.u32 %v6145_v26, %v5568_v31 }
 0x106   :  { %3435 = vmatpush.bf16.msrb.mxu2 %v5241_v39  ;;  %v1817_v39 = vpop.f32.mrf.mxu3  ;;  %v5544_v8 = vld [vmem:[#allocation7 + $0x4a0] sm:$0xf] }
 0x107   :  { %3449 = vmatpush.bf16.msrb.mxu3 %v5305_v46  ;;  %3412 = vmatmul.bf16.vlgmr.msrb.gmra.mxu0 %v6781_v51  ;;  %v6109_v46 = vld [vmem:[#allocation7 + $0x3b4] sm:$0xf0]  ;;  %v1829_v48 = vpop.f32.mrf.mxu0  ;;  %v1818_v17 = vadd.f32 %v1817_v39, %v1804_v38  ;;  %v5337_v39 = vor.u32 %v6087_v25, %v5336_v24  ;;  %v5536_v25 = vld [vmem:[#allocation7 + $0x490] sm:$0xf] }
 0x108   :  { %3460 = vmatpush.bf16.msra.mxu0 %v5393_v44  ;;  %3426 = vmatmul.bf16.vlgmr.msrb.gmra.mxu1 %v6783_v3  ;;  %v5520_v44 = vld [vmem:[#allocation7 + $0x470] sm:$0xf]  ;;  %v6787_v7 = vadd.f32 %v1829_v48, %v1816_v13  ;;  %v5425_v61 = vor.u32 %v6109_v46, %v5424_v45  ;;  %v6165_v38 = vld [vmem:[#allocation7 + $0x574] sm:$0xf0] }
 0x109   :  { %3474 = vmatpush.bf16.msra.mxu1 %v5457_v50  ;;  %v5209_v50 = vor.u32 %v6055_v27, %v5208_v47  ;;  %v5344_v13 = vld [vmem:[#allocation7 + $0x310] sm:$0xf]  ;;  %v5400_v47 = vld [vmem:[#allocation7 + $0x380] sm:$0xf]  ;;  %v6103_v27 = vld [vmem:[#allocation7 + $0x384] sm:$0xf0] }
 0x10a   :  { %3436 = vmatpush.bf16.msrb.mxu2 %v5233_v56  ;;  %v5976_v56 = vld [vmem:[#allocation2 + $0x14] sm:$0xf]  ;;  %v4912_v45 = vld [vmem:[#allocation2 + $0x18] sm:$0xf]  ;;  %v5401_v48 = vor.u32 %v6103_v27, %v5400_v47  ;;  %v6121_v24 = vld [vmem:[#allocation7 + $0x414] sm:$0xf0] }
 0x10b   :  { %3450 = vmatpush.bf16.msrb.mxu3 %v5297_v60  ;;  %v4906_v60 = vld [vmem:[#allocation2 + $0x50] sm:$0xf0]  ;;  %v5985_v46 = vld [vmem:[#allocation2 + $0x54] sm:$0xf0]  ;;  %v5624_v47 = vld [vmem:[#allocation7 + $0x540] sm:$0xf] }
 0x10c   :  { %3461 = vmatpush.bf16.msra.mxu0 %v5385_v58  ;;  %v5521_v58 = vor.u32 %v6133_v49, %v5520_v44  ;;  %v6791_v5 = vor.u32 %v5976_v56, %v4906_v60  ;;  %v5977_v49 = vld [vmem:[#allocation2 + $0x1c] sm:$0xf]  ;;  %v6141_v56 = vld [vmem:[#allocation7 + $0x4b4] sm:$0xf0]  ;;  %v5640_v60 = vld [vmem:[#allocation7 + $0x560] sm:$0xf] }
 0x10d   :  { %3475 = vmatpush.bf16.msra.mxu1 %v5449_v2  ;;  %v6107_v2 = vld [vmem:[#allocation7 + $0x3a4] sm:$0xf0] }
 0x10e   :  { %3437 = vmatpush.bf16.msrb.mxu2 %v5225_v14  ;;  %v5417_v11 = vor.u32 %v6107_v2, %v5416_v0  ;;  %v6089_v14 = vld [vmem:[#allocation7 + $0x314] sm:$0xf0]  ;;  %v5553_v2 = vor.u32 %v6141_v56, %v5552_v59  ;;  %v6159_v27 = vld [vmem:[#allocation7 + $0x544] sm:$0xf0] }
 0x10f   :  { %3451 = vmatpush.bf16.msrb.mxu3 %v5289_v40  ;;  %v5408_v40 = vld [vmem:[#allocation7 + $0x390] sm:$0xf]  ;;  %v5345_v23 = vor.u32 %v6089_v14, %v5344_v13  ;;  %v6139_v13 = vld [vmem:[#allocation7 + $0x4a4] sm:$0xf0]  ;;  %v6197_v59 = vld [vmem:[#allocation7 + $0x674] sm:$0xf0] }
 0x110   :  { %3462 = vmatpush.bf16.msra.mxu0 %v5377_v16  ;;  %v1831_v16 = vpop.f32.mrf.mxu0  ;;  %v5409_v36 = vor.u32 %v6105_v18, %v5408_v40  ;;  %v5632_v14 = vld [vmem:[#allocation7 + $0x550] sm:$0xf]  ;;  %v6161_v40 = vld [vmem:[#allocation7 + $0x554] sm:$0xf0]  ;;  %v5545_v31 = vor.u32 %v6139_v13, %v5544_v8 }
 0x111   :  { %3476 = vmatpush.bf16.msra.mxu1 %v5441_v22  ;;  %v6795_v22 = vadd.f32 %v1831_v16, %v1818_v17  ;;  %v5561_v17 = vor.u32 %v6143_v37, %v5560_v33  ;;  %v5696_v16 = vld [vmem:[#allocation7 + $0x5d0] sm:$0xf]  ;;  %v6177_v18 = vld [vmem:[#allocation7 + $0x5d4] sm:$0xf0]  ;;  %v5633_v26 = vor.u32 %v6161_v40, %v5632_v14  ;;  %v5464_v37 = vld [vmem:[#allocation7 + $0x400] sm:$0xf] }
 0x112   :  { %3438 = vmatpush.bf16.msrb.mxu2 %v5217_v35  ;;  %v5505_v35 = vor.u32 %v6129_v21, %v5504_v20  ;;  %v5481_v20 = vor.u32 %v6123_v6, %v5480_v4  ;;  %v4922_v4 = vld [vmem:[#allocation2 + $0x60] sm:$0xf0]  ;;  %v6171_v40 = vld [vmem:[#allocation7 + $0x5a4] sm:$0xf0] }
 0x113   :  { %3452 = vmatpush.bf16.msrb.mxu3 %v5281_v29  ;;  %v5496_v29 = vld [vmem:[#allocation7 + $0x440] sm:$0xf] }
 0x114   :  { %3463 = vmatpush.bf16.msra.mxu0 %v5369_v32  ;;  %v6127_v32 = vld [vmem:[#allocation7 + $0x444] sm:$0xf0] }
 0x115   :  { %3477 = vmatpush.bf16.msra.mxu1 %v5433_v41  ;;  %v5712_v41 = vld [vmem:[#allocation7 + $0x5f0] sm:$0xf]  ;;  %v5497_v44 = vor.u32 %v6127_v32, %v5496_v29  ;;  %v1843_v0 = vpop.f32.mrf.mxu1  ;;  %v5688_v29 = vld [vmem:[#allocation7 + $0x5c0] sm:$0xf] }
 0x116   :  { %3439 = vmatpush.bf16.msrb.mxu2 %v5209_v50  ;;  %v5649_v50 = vor.u32 %v6165_v38, %v5648_v34  ;;  %v6119_v34 = vld [vmem:[#allocation7 + $0x404] sm:$0xf0] }
 0x117   :  { %3453 = vmatpush.bf16.msrb.mxu3 %v5273_v54  ;;  %v5713_v54 = vor.u32 %v6181_v42, %v5712_v41  ;;  %v5528_v42 = vld [vmem:[#allocation7 + $0x480] sm:$0xf] }
 0x118   :  { %3464 = vmatpush.bf16.msra.mxu0 %v5361_v55  ;;  %v6797_v55 = vor.u32 %v5985_v46, %v4912_v45  ;;  %v6135_v45 = vld [vmem:[#allocation7 + $0x484] sm:$0xf0]  ;;  %v5616_v46 = vld [vmem:[#allocation7 + $0x530] sm:$0xf] }
 0x119   :  { %3478 = vmatpush.bf16.msra.mxu1 %v5425_v61  ;;  %3440 = vmatmul.bf16.vlgmr.msrb.gmra.mxu2 %v6789_v1  ;;  %v6163_v61 = vld [vmem:[#allocation7 + $0x564] sm:$0xf0] }
 0x11a   :  { %3488 = vmatpush.bf16.msra.mxu2 %v5521_v58  ;;  %3454 = vmatmul.bf16.vlgmr.msrb.gmra.mxu3 %v6791_v5  ;;  %v6799_v58 = vor.u32 %v5977_v49, %v4914_v43  ;;  %v5641_v19 = vor.u32 %v6163_v61, %v5640_v60  ;;  %v6157_v43 = vld [vmem:[#allocation7 + $0x534] sm:$0xf0]  ;;  %v5465_v60 = vor.u32 %v6119_v34, %v5464_v37 }
 0x11b   :  { %3502 = vmatpush.bf16.msra.mxu3 %v5585_v10  ;;  %v5489_v10 = vor.u32 %v6125_v53, %v5488_v52  ;;  %v5776_v53 = vld [vmem:[#allocation7 + $0x670] sm:$0xf]  ;;  %v6213_v61 = vld [vmem:[#allocation7 + $0x6f4] sm:$0xf0] }
 0x11c   :  { %3465 = vmatpush.bf16.msra.mxu0 %v5353_v9  ;;  %v1857_v9 = vpop.f32.mrf.mxu2  ;;  %v5777_v8 = vor.u32 %v6197_v59, %v5776_v53  ;;  %v6209_v37 = vld [vmem:[#allocation7 + $0x6d4] sm:$0xf0]  ;;  %v5904_v53 = vld [vmem:[#allocation7 + $0x770] sm:$0xf] }
 0x11d   :  { %3479 = vmatpush.bf16.msra.mxu1 %v5417_v11  ;;  %v1871_v11 = vpop.f32.mrf.mxu3  ;;  %v6229_v59 = vld [vmem:[#allocation7 + $0x774] sm:$0xf0] }
 0x11e   :  { %3489 = vmatpush.bf16.msra.mxu2 %v5513_v12  ;;  %v5705_v12 = vor.u32 %v6179_v63, %v5704_v62  ;;  %v4920_v62 = vld [vmem:[#allocation2 + $0x20] sm:$0xf] }
 0x11f   :  { %3503 = vmatpush.bf16.msra.mxu3 %v5577_v15  ;;  %v1858_v15 = vadd.f32 %v1857_v9, %v1843_v0  ;;  %v5986_v63 = vld [vmem:[#allocation2 + $0x5c] sm:$0xf0]  ;;  %v5608_v9 = vld [vmem:[#allocation7 + $0x520] sm:$0xf] }
 0x120   :  { %3466 = vmatpush.bf16.msra.mxu0 %v5345_v23  ;;  %v5472_v23 = vld [vmem:[#allocation7 + $0x410] sm:$0xf]  ;;  %v6805_v14 = vor.u32 %v5986_v63, %v4920_v62  ;;  %v4928_v62 = vld [vmem:[#allocation2 + $0x28] sm:$0xf] }
 0x121   :  { %3480 = vmatpush.bf16.msra.mxu1 %v5409_v36  ;;  %v1872_v21 = vadd.f32 %v1871_v11, %v1858_v15  ;;  %v5697_v36 = vor.u32 %v6177_v18, %v5696_v16  ;;  %v5473_v33 = vor.u32 %v6121_v24, %v5472_v23  ;;  %v6155_v11 = vld [vmem:[#allocation7 + $0x524] sm:$0xf0]  ;;  %v5768_v15 = vld [vmem:[#allocation7 + $0x660] sm:$0xf] }
 0x122   :  { %3490 = vmatpush.bf16.msra.mxu2 %v5505_v35  ;;  %v6137_v35 = vld [vmem:[#allocation7 + $0x494] sm:$0xf0]  ;;  %v6195_v16 = vld [vmem:[#allocation7 + $0x664] sm:$0xf0]  ;;  %v5609_v23 = vor.u32 %v6155_v11, %v5608_v9  ;;  %v5987_v63 = vld [vmem:[#allocation2 + $0x64] sm:$0xf0] }
 0x123   :  { %3504 = vmatpush.bf16.msra.mxu3 %v5569_v30  ;;  %v6175_v30 = vld [vmem:[#allocation7 + $0x5c4] sm:$0xf0]  ;;  %v5537_v41 = vor.u32 %v6137_v35, %v5536_v25  ;;  %v5769_v25 = vor.u32 %v6195_v16, %v5768_v15  ;;  %v6153_v35 = vld [vmem:[#allocation7 + $0x514] sm:$0xf0]  ;;  %v5808_v11 = vld [vmem:[#allocation7 + $0x6b0] sm:$0xf] }
 0x124   :  { %3467 = vmatpush.bf16.msra.mxu0 %v5337_v39  ;;  %v1885_v32 = vpop.f32.mrf.mxu0  ;;  %v5625_v39 = vor.u32 %v6159_v27, %v5624_v47  ;;  %v5689_v49 = vor.u32 %v6175_v30, %v5688_v29  ;;  %v5664_v47 = vld [vmem:[#allocation7 + $0x590] sm:$0xf]  ;;  %v6169_v29 = vld [vmem:[#allocation7 + $0x594] sm:$0xf0]  ;;  %v6227_v15 = vld [vmem:[#allocation7 + $0x764] sm:$0xf0] }
 0x125   :  { %3481 = vmatpush.bf16.msra.mxu1 %v5401_v48  ;;  %v6803_v38 = vadd.f32 %v1885_v32, %v1872_v21  ;;  %v1845_v48 = vpop.f32.mrf.mxu1  ;;  %v1873_v56 = vpop.f32.mrf.mxu3  ;;  %v5832_v21 = vld [vmem:[#allocation7 + $0x6e0] sm:$0xf]  ;;  %v5760_v30 = vld [vmem:[#allocation7 + $0x650] sm:$0xf]  ;;  %v6193_v32 = vld [vmem:[#allocation7 + $0x654] sm:$0xf0] }
 0x126   :  { %3491 = vmatpush.bf16.msra.mxu2 %v5497_v44  ;;  %v1859_v44 = vpop.f32.mrf.mxu2  ;;  %v6189_v9 = vld [vmem:[#allocation7 + $0x634] sm:$0xf0] }
 0x127   :  { %3505 = vmatpush.bf16.msra.mxu3 %v5561_v17  ;;  %3468 = vmatmul.bf16.vlgmr.msra.gmra.mxu0 %v6797_v55  ;;  %v5680_v17 = vld [vmem:[#allocation7 + $0x5b0] sm:$0xf]  ;;  %v1860_v52 = vadd.f32 %v1859_v44, %v1845_v48  ;;  %v6167_v48 = vld [vmem:[#allocation7 + $0x584] sm:$0xf0]  ;;  %v5752_v44 = vld [vmem:[#allocation7 + $0x640] sm:$0xf] }
 0x128   :  { %3516 = vmatpush.bf16.msrb.mxu0 %v5649_v50  ;;  %3482 = vmatmul.bf16.vlgmr.msra.gmra.mxu1 %v6799_v58  ;;  %v6173_v50 = vld [vmem:[#allocation7 + $0x5b4] sm:$0xf0] }
 0x129   :  { %3530 = vmatpush.bf16.msrb.mxu1 %v5713_v54  ;;  %v5840_v54 = vld [vmem:[#allocation7 + $0x6f0] sm:$0xf]  ;;  %v1874_v0 = vadd.f32 %v1873_v56, %v1860_v52  ;;  %v5681_v6 = vor.u32 %v6173_v50, %v5680_v17  ;;  %v5816_v17 = vld [vmem:[#allocation7 + $0x6c0] sm:$0xf]  ;;  %v6207_v50 = vld [vmem:[#allocation7 + $0x6c4] sm:$0xf0] }
 0x12a   :  { %3492 = vmatpush.bf16.msra.mxu2 %v5489_v10  ;;  %v5529_v10 = vor.u32 %v6135_v45, %v5528_v42  ;;  %v5841_v13 = vor.u32 %v6213_v61, %v5840_v54  ;;  %v5665_v42 = vor.u32 %v6169_v29, %v5664_v47  ;;  %v5761_v45 = vor.u32 %v6193_v32, %v5760_v30  ;;  %v5968_v54 = vld [vmem:[#allocation7 + $0x7f0] sm:$0xf]  ;;  %v6245_v61 = vld [vmem:[#allocation7 + $0x7f4] sm:$0xf0]  ;;  %v6187_v47 = vld [vmem:[#allocation7 + $0x624] sm:$0xf0] }
 0x12b   :  { %3506 = vmatpush.bf16.msra.mxu3 %v5553_v2  ;;  %v5617_v2 = vor.u32 %v6157_v43, %v5616_v46  ;;  %v5656_v46 = vld [vmem:[#allocation7 + $0x580] sm:$0xf]  ;;  %v6191_v43 = vld [vmem:[#allocation7 + $0x644] sm:$0xf0] }
 0x12c   :  { %3517 = vmatpush.bf16.msrb.mxu0 %v5641_v19  ;;  %v5978_v19 = vld [vmem:[#allocation2 + $0x24] sm:$0xf]  ;;  %v1887_v18 = vpop.f32.mrf.mxu0 }
 0x12d   :  { %3531 = vmatpush.bf16.msrb.mxu1 %v5705_v12  ;;  %v5672_v12 = vld [vmem:[#allocation7 + $0x5a0] sm:$0xf] }
 0x12e   :  { %3493 = vmatpush.bf16.msra.mxu2 %v5481_v20  ;;  %v6807_v20 = vor.u32 %v5978_v19, %v4922_v4  ;;  %v5673_v24 = vor.u32 %v6171_v40, %v5672_v12  ;;  %v4930_v19 = vld [vmem:[#allocation2 + $0x68] sm:$0xf0]  ;;  %v5817_v4 = vor.u32 %v6207_v50, %v5816_v17  ;;  %v5969_v12 = vor.u32 %v6245_v61, %v5968_v54  ;;  %v5896_v40 = vld [vmem:[#allocation7 + $0x760] sm:$0xf]  ;;  %v5728_v50 = vld [vmem:[#allocation7 + $0x610] sm:$0xf] }
 0x12f   :  { %3507 = vmatpush.bf16.msra.mxu3 %v5545_v31  ;;  %v6211_v31 = vld [vmem:[#allocation7 + $0x6e4] sm:$0xf0]  ;;  %v5880_v54 = vld [vmem:[#allocation7 + $0x740] sm:$0xf] }
 0x130   :  { %3518 = vmatpush.bf16.msrb.mxu0 %v5633_v26  ;;  %v6809_v26 = vadd.f32 %v1887_v18, %v1874_v0  ;;  %v5833_v27 = vor.u32 %v6211_v31, %v5832_v21  ;;  %v5657_v0 = vor.u32 %v6167_v48, %v5656_v46  ;;  %v5960_v18 = vld [vmem:[#allocation7 + $0x7e0] sm:$0xf]  ;;  %v6243_v21 = vld [vmem:[#allocation7 + $0x7e4] sm:$0xf0]  ;;  %v6824_v46 = vld [vmem:[%s6949_s2] sm:$0xff] }
 0x131   :  { %3532 = vmatpush.bf16.msrb.mxu1 %v5697_v36  ;;  %v5600_v36 = vld [vmem:[#allocation7 + $0x510] sm:$0xf]  ;;  %v5961_v30 = vor.u32 %v6243_v21, %v5960_v18  ;;  %v5944_v61 = vld [vmem:[#allocation7 + $0x7c0] sm:$0xf]  ;;  %v6237_v21 = vld [vmem:[#allocation7 + $0x7b4] sm:$0xf0] }
 0x132   :  { %3494 = vmatpush.bf16.msra.mxu2 %v5473_v33  ;;  %v5824_v33 = vld [vmem:[#allocation7 + $0x6d0] sm:$0xf]  ;;  %v5601_v34 = vor.u32 %v6153_v35, %v5600_v36  ;;  %v5736_v35 = vld [vmem:[#allocation7 + $0x620] sm:$0xf] }
 0x133   :  { %3508 = vmatpush.bf16.msra.mxu3 %v5537_v41  ;;  %v5592_v41 = vld [vmem:[#allocation7 + $0x500] sm:$0xf]  ;;  %v5936_v18 = vld [vmem:[#allocation7 + $0x7b0] sm:$0xf] }
 0x134   :  { %3519 = vmatpush.bf16.msrb.mxu0 %v5625_v39  ;;  %v6151_v39 = vld [vmem:[#allocation7 + $0x504] sm:$0xf0] }
 0x135   :  { %3533 = vmatpush.bf16.msrb.mxu1 %v5689_v49  ;;  %v5825_v49 = vor.u32 %v6209_v37, %v5824_v33  ;;  %v1899_v52 = vpop.f32.mrf.mxu1  ;;  %v6203_v33 = vld [vmem:[#allocation7 + $0x6a4] sm:$0xf0]  ;;  %v5888_v37 = vld [vmem:[#allocation7 + $0x750] sm:$0xf] }
 0x136   :  { %3495 = vmatpush.bf16.msra.mxu2 %v5465_v60  ;;  %v1900_v56 = vadd.f32 %v1899_v52, %v6803_v38  ;;  %v5593_v60 = vor.u32 %v6151_v39, %v5592_v41  ;;  %v6205_v38 = vld [vmem:[#allocation7 + $0x6b4] sm:$0xf0]  ;;  %v5952_v39 = vld [vmem:[#allocation7 + $0x7d0] sm:$0xf] }
 0x137   :  { %3509 = vmatpush.bf16.msra.mxu3 %v5529_v10  ;;  %v5753_v10 = vor.u32 %v6191_v43, %v5752_v44  ;;  %v5737_v44 = vor.u32 %v6187_v47, %v5736_v35  ;;  %v5792_v52 = vld [vmem:[#allocation7 + $0x690] sm:$0xf]  ;;  %v5074_v47 = vld [vmem:[#allocation7 + $0xf8] sm:$0xf0] }
 0x138   :  { %3520 = vmatpush.bf16.msrb.mxu0 %v5617_v2  ;;  %v5979_v2 = vld [vmem:[#allocation2 + $0x2c] sm:$0xf] }
 0x139   :  { %3534 = vmatpush.bf16.msrb.mxu1 %v5681_v6  ;;  %3496 = vmatmul.bf16.vlgmr.msra.gmra.mxu2 %v6805_v14  ;;  %v5905_v6 = vor.u32 %v6229_v59, %v5904_v53  ;;  %v6816_v16 = vor.u32 %v5979_v2, %v4930_v19  ;;  %v6201_v59 = vld [vmem:[#allocation7 + $0x694] sm:$0xf0]  ;;  %v6183_v2 = vld [vmem:[#allocation7 + $0x604] sm:$0xf0]  ;;  %v5784_v19 = vld [vmem:[#allocation7 + $0x680] sm:$0xf] }
 0x13a   :  { %3544 = vmatpush.bf16.msrb.mxu2 %v5777_v8  ;;  %3510 = vmatmul.bf16.vlgmr.msra.gmra.mxu3 %v6807_v20  ;;  %v5744_v8 = vld [vmem:[#allocation7 + $0x630] sm:$0xf] }
 0x13b   :  { %3558 = vmatpush.bf16.msrb.mxu3 %v5841_v13  ;;  %v6814_v13 = vor.u32 %v5987_v63, %v4928_v62  ;;  %v5745_v31 = vor.u32 %v6189_v9, %v5744_v8  ;;  %v6239_v62 = vld [vmem:[#allocation7 + $0x7c4] sm:$0xf0] }
 0x13c   :  { %3521 = vmatpush.bf16.msrb.mxu0 %v5609_v23  ;;  %v5809_v23 = vor.u32 %v6205_v38, %v5808_v11  ;;  %v6199_v11 = vld [vmem:[#allocation7 + $0x684] sm:$0xf0]  ;;  %v6221_v38 = vld [vmem:[#allocation7 + $0x734] sm:$0xf0] }
 0x13d   :  { %3535 = vmatpush.bf16.msrb.mxu1 %v5673_v24  ;;  %v1913_v24 = vpop.f32.mrf.mxu2  ;;  %v1927_v36 = vpop.f32.mrf.mxu3 }
 0x13e   :  { %3545 = vmatpush.bf16.msrb.mxu2 %v5769_v25  ;;  %v5897_v25 = vor.u32 %v6227_v15, %v5896_v40  ;;  %v1914_v29 = vadd.f32 %v1913_v24, %v1900_v56  ;;  %v1901_v32 = vpop.f32.mrf.mxu1  ;;  %v6223_v56 = vld [vmem:[#allocation7 + $0x744] sm:$0xf0]  ;;  %v5945_v15 = vor.u32 %v6239_v62, %v5944_v61  ;;  %v6020_v24 = vld [vmem:[#allocation7 + $0xf4] sm:$0xf]  ;;  %v5856_v61 = vld [vmem:[#allocation7 + $0x710] sm:$0xf] }
 0x13f   :  { %3559 = vmatpush.bf16.msrb.mxu3 %v5833_v27  ;;  %v5800_v27 = vld [vmem:[#allocation7 + $0x6a0] sm:$0xf]  ;;  %v1902_v41 = vadd.f32 %v1901_v32, %v6809_v26  ;;  %v6185_v26 = vld [vmem:[#allocation7 + $0x614] sm:$0xf0]  ;;  %v5881_v8 = vor.u32 %v6223_v56, %v5880_v54 }
 0x140   :  { %3522 = vmatpush.bf16.msrb.mxu0 %v5601_v34  ;;  %v6225_v34 = vld [vmem:[#allocation7 + $0x754] sm:$0xf0]  ;;  %v1928_v48 = vadd.f32 %v1927_v36, %v1914_v29  ;;  %v5801_v43 = vor.u32 %v6203_v33, %v5800_v27  ;;  %v4936_v27 = vld [vmem:[#allocation2 + $0x30] sm:$0xf]  ;;  %v5980_v33 = vld [vmem:[#allocation2 + $0x34] sm:$0xf] }
 0x141   :  { %3536 = vmatpush.bf16.msrb.mxu1 %v5665_v42  ;;  %v6241_v42 = vld [vmem:[#allocation7 + $0x7d4] sm:$0xf0]  ;;  %v5889_v17 = vor.u32 %v6225_v34, %v5888_v37  ;;  %v5988_v29 = vld [vmem:[#allocation2 + $0x6c] sm:$0xf0]  ;;  %v4938_v37 = vld [vmem:[#allocation2 + $0x70] sm:$0xf0]  ;;  %v5937_v34 = vor.u32 %v6237_v21, %v5936_v18 }
 0x142   :  { %3546 = vmatpush.bf16.msrb.mxu2 %v5761_v45  ;;  %v6628_v45 = vmov 0   ;;  %v5953_v53 = vor.u32 %v6241_v42, %v5952_v39  ;;  %v5864_v39 = vld [vmem:[#allocation7 + $0x720] sm:$0xf]  ;;  %v6219_v42 = vld [vmem:[#allocation7 + $0x724] sm:$0xf0] }
 0x143   :  { %3560 = vmatpush.bf16.msrb.mxu3 %v5825_v49  ;;  %6476 = vset.pattern.permute.xlu0 %v6628_v45  ;;  %v6629_v49 = vmov 1   ;;  %v5928_v45 = vld [vmem:[#allocation7 + $0x7a0] sm:$0xf]  ;;  %v5865_v54 = vor.u32 %v6219_v42, %v5864_v39  ;;  %v6217_v62 = vld [vmem:[#allocation7 + $0x714] sm:$0xf0] }
 0x144   :  { %3523 = vmatpush.bf16.msrb.mxu0 %v5593_v60  ;;  %6477 = vset.pattern.permute.xlu1 %v6629_v49  ;;  %v1941_v60 = vpop.f32.mrf.mxu0  ;;  %v6231_v18 = vld [vmem:[#allocation7 + $0x784] sm:$0xf0]  ;;  %v5998_v21 = vld [vmem:[#allocation7 + $0x44] sm:$0xf] }
 0x145   :  { %3537 = vmatpush.bf16.msrb.mxu1 %v5657_v0  ;;  %3830 = vperm.xlu0 %6476, %v6824_v46   ;;  %v6828_v63 = vadd.f32 %v1941_v60, %v1928_v48  ;;  %v5729_v0 = vor.u32 %v6185_v26, %v5728_v50  ;;  %v1929_v9 = vpop.f32.mrf.mxu3  ;;  %v5077_v48 = vor.u32 %v6020_v24, %v5074_v47  ;;  %v5002_v50 = vld [vmem:[#allocation7 + $0x68] sm:$0xf0]  ;;  %v6014_v24 = vld [vmem:[#allocation7 + $0xc4] sm:$0xf] }
 0x146   :  { %3547 = vmatpush.bf16.msrb.mxu2 %v5753_v10  ;;  %3849 = vperm.xlu1 %6477, %v6824_v46   ;;  %v5720_v10 = vld [vmem:[#allocation7 + $0x600] sm:$0xf] }
 0x147   :  { %3561 = vmatpush.bf16.msrb.mxu3 %v5817_v4  ;;  %3524 = vmatmul.bf16.vlgmr.msrb.gmra.mxu0 %v6814_v13  ;;  %v5793_v4 = vor.u32 %v6201_v59, %v5792_v52  ;;  %v5721_v35 = vor.u32 %v6183_v2, %v5720_v10  ;;  %v6841_v52 = vor.u32 %v5980_v33, %v4938_v37  ;;  %v5066_v59 = vld [vmem:[#allocation7 + $0xe8] sm:$0xf0]  ;;  %v6233_v2 = vld [vmem:[#allocation7 + $0x794] sm:$0xf0]  ;;  %v5202_v37 = vld [vmem:[#allocation7 + $0x1f8] sm:$0xf0] }
 0x148   :  { %3572 = vmatpush.bf16.msra.mxu0 %v5905_v6  ;;  %3538 = vmatmul.bf16.vlgmr.msrb.gmra.mxu1 %v6816_v16  ;;  %v1915_v6 = vpop.f32.mrf.mxu2 }
 0x149   :  { %3586 = vmatpush.bf16.msra.mxu1 %v5969_v12  ;;  %v5872_v12 = vld [vmem:[#allocation7 + $0x730] sm:$0xf]  ;;  %v1916_v40 = vadd.f32 %v1915_v6, %v1902_v41  ;;  %v6016_v6 = vld [vmem:[#allocation7 + $0xd4] sm:$0xf] }
 0x14a   :  { %3548 = vmatpush.bf16.msrb.mxu2 %v5745_v31  ;;  %v6004_v31 = vld [vmem:[#allocation7 + $0x74] sm:$0xf]  ;;  %v5873_v32 = vor.u32 %v6221_v38, %v5872_v12  ;;  %v6215_v12 = vld [vmem:[#allocation7 + $0x704] sm:$0xf0] }
 0x14b   :  { %3562 = vmatpush.bf16.msrb.mxu3 %v5809_v23  ;;  %v5010_v23 = vld [vmem:[#allocation7 + $0x78] sm:$0xf0]  ;;  %v1930_v36 = vadd.f32 %v1929_v9, %v1916_v40  ;;  %v5857_v9 = vor.u32 %v6217_v62, %v5856_v61  ;;  %v6050_v62 = vld [vmem:[#allocation7 + $0x1e4] sm:$0xf] }
 0x14c   :  { %3573 = vmatpush.bf16.msra.mxu0 %v5897_v25  ;;  %v6833_v25 = vld [vmem:[%s6949_s2 + $0x8] sm:$0xff]  ;;  %v5013_v41 = vor.u32 %v6004_v31, %v5010_v23  ;;  %v1943_v49 = vpop.f32.mrf.mxu0  ;;  %v4986_v23 = vld [vmem:[#allocation7 + $0x48] sm:$0xf0] }
 0x14d   :  { %3587 = vmatpush.bf16.msra.mxu1 %v5961_v30  ;;  %v5785_v30 = vor.u32 %v6199_v11, %v5784_v19  ;;  %3835 = vperm.xlu0 %6476, %v6833_v25   ;;  %v6839_v26 = vadd.f32 %v1943_v49, %v1930_v36  ;;  %v6000_v19 = vld [vmem:[#allocation7 + $0x54] sm:$0xf]  ;;  %v5848_v11 = vld [vmem:[#allocation7 + $0x700] sm:$0xf]  ;;  %v5050_v36 = vld [vmem:[#allocation7 + $0xc8] sm:$0xf0]  ;;  %v4989_v42 = vor.u32 %v5998_v21, %v4986_v23 }
 0x14e   :  { %3549 = vmatpush.bf16.msrb.mxu2 %v5737_v44  ;;  %v6836_v44 = vor.u32 %v5988_v29, %v4936_v27  ;;  %3853 = vperm.xlu1 %6477, %v6833_v25   ;;  %v6036_v27 = vld [vmem:[#allocation7 + $0x174] sm:$0xf]  ;;  %v5138_v29 = vld [vmem:[#allocation7 + $0x178] sm:$0xf0]  ;;  %v5849_v33 = vor.u32 %v6215_v12, %v5848_v11  ;;  %v5053_v49 = vor.u32 %v6014_v24, %v5050_v36  ;;  %v6010_v11 = vld [vmem:[#allocation7 + $0xa4] sm:$0xf] }
 0x14f   :  { %3563 = vmatpush.bf16.msrb.mxu3 %v5801_v43  ;;  %v6235_v43 = vld [vmem:[#allocation7 + $0x7a4] sm:$0xf0]  ;;  %v5122_v21 = vld [vmem:[#allocation7 + $0x158] sm:$0xf0]  ;;  %v6048_v23 = vld [vmem:[#allocation7 + $0x1d4] sm:$0xf] }
 0x150   :  { %3574 = vmatpush.bf16.msra.mxu0 %v5889_v17  ;;  %v6002_v17 = vld [vmem:[#allocation7 + $0x64] sm:$0xf]  ;;  %v5929_v56 = vor.u32 %v6235_v43, %v5928_v45  ;;  %v5981_v45 = vld [vmem:[#allocation2 + $0x3c] sm:$0xf]  ;;  %v5141_v43 = vor.u32 %v6036_v27, %v5138_v29  ;;  %v5186_v24 = vld [vmem:[#allocation7 + $0x1d8] sm:$0xf0] }
 0x151   :  { %3588 = vmatpush.bf16.msra.mxu1 %v5953_v53  ;;  %v6018_v53 = vld [vmem:[#allocation7 + $0xe4] sm:$0xf]  ;;  %v5005_v60 = vor.u32 %v6002_v17, %v5002_v50  ;;  %v5996_v17 = vld [vmem:[#allocation7 + $0x34] sm:$0xf]  ;;  %v4978_v50 = vld [vmem:[#allocation7 + $0x38] sm:$0xf0] }
 0x152   :  { %3550 = vmatpush.bf16.msrb.mxu2 %v5729_v0  ;;  %v5920_v0 = vld [vmem:[#allocation7 + $0x790] sm:$0xf]  ;;  %v5069_v10 = vor.u32 %v6018_v53, %v5066_v59  ;;  %v6012_v53 = vld [vmem:[#allocation7 + $0xb4] sm:$0xf]  ;;  %v6631_v36 = vmov 2  }
 0x153   :  { %3564 = vmatpush.bf16.msrb.mxu3 %v5793_v4  ;;  %v4994_v4 = vld [vmem:[#allocation7 + $0x58] sm:$0xf0]  ;;  %v5921_v38 = vor.u32 %v6233_v2, %v5920_v0  ;;  %v5194_v0 = vld [vmem:[#allocation7 + $0x1e8] sm:$0xf0]  ;;  %6478 = vset.pattern.permute.xlu2 %v6631_v36  ;;  %v6026_v36 = vld [vmem:[#allocation7 + $0x124] sm:$0xf] }
 0x154   :  { %3575 = vmatpush.bf16.msra.mxu0 %v5881_v8  ;;  %v5058_v8 = vld [vmem:[#allocation7 + $0xd8] sm:$0xf0]  ;;  %v4997_v40 = vor.u32 %v6000_v19, %v4994_v4  ;;  %3867 = vperm.xlu2 %6478, %v6824_v46  }
 0x155   :  { %3589 = vmatpush.bf16.msra.mxu1 %v5945_v15  ;;  %v5912_v15 = vld [vmem:[#allocation7 + $0x780] sm:$0xf]  ;;  %v5061_v31 = vor.u32 %v6016_v6, %v5058_v8  ;;  %v1955_v47 = vpop.f32.mrf.mxu1  ;;  %v5994_v8 = vld [vmem:[#allocation7 + $0x24] sm:$0xf] }
 0x156   :  { %3551 = vmatpush.bf16.msrb.mxu2 %v5721_v35  ;;  %v6630_v35 = vmov 3   ;;  %v5913_v39 = vor.u32 %v6231_v18, %v5912_v15  ;;  %v5034_v15 = vld [vmem:[#allocation7 + $0xa8] sm:$0xf0]  ;;  %v6032_v18 = vld [vmem:[#allocation7 + $0x154] sm:$0xf] }
 0x157   :  { %3565 = vmatpush.bf16.msrb.mxu3 %v5785_v30  ;;  %6479 = vset.pattern.permute.xlu0 %v6630_v35  ;;  %v6052_v30 = vld [vmem:[#allocation7 + $0x1f4] sm:$0xf]  ;;  %v5037_v27 = vor.u32 %v6010_v11, %v5034_v15  ;;  %v5125_v29 = vor.u32 %v6032_v18, %v5122_v21  ;;  %v5330_v15 = vld [vmem:[#allocation7 + $0x2f8] sm:$0xf0] }
 0x158   :  { %3576 = vmatpush.bf16.msra.mxu0 %v5873_v32  ;;  %6480 = vset.pattern.permute.xlu1 %v6630_v35  ;;  %v1956_v32 = vadd.f32 %v1955_v47, %v6828_v63  ;;  %v5205_v59 = vor.u32 %v6052_v30, %v5202_v37  ;;  %v5992_v30 = vld [vmem:[#allocation7 + $0x14] sm:$0xf]  ;;  %v5189_v37 = vor.u32 %v6048_v23, %v5186_v24 }
 0x159   :  { %3590 = vmatpush.bf16.msra.mxu1 %v5937_v34  ;;  %3552 = vmatmul.bf16.vlgmr.msrb.gmra.mxu2 %v6836_v44  ;;  %v4944_v34 = vld [vmem:[#allocation2 + $0x38] sm:$0xf] }
 0x15a   :  { %3600 = vmatpush.bf16.msra.mxu2 %v5013_v41  ;;  %3566 = vmatmul.bf16.vlgmr.msrb.gmra.mxu3 %v6841_v52  ;;  %v5989_v41 = vld [vmem:[#allocation2 + $0x74] sm:$0xf0] }
 0x15b   :  { %3614 = vmatpush.bf16.msra.mxu3 %v5077_v48  ;;  %3885 = vperm.xlu0 %6479, %v6824_v46   ;;  %v4946_v48 = vld [vmem:[#allocation2 + $0x78] sm:$0xf0]  ;;  %v6848_v63 = vor.u32 %v5989_v41, %v4944_v34  ;;  %v5026_v34 = vld [vmem:[#allocation7 + $0x98] sm:$0xf0]  ;;  %v5114_v41 = vld [vmem:[#allocation7 + $0x148] sm:$0xf0] }
 0x15c   :  { %3577 = vmatpush.bf16.msra.mxu0 %v5865_v54  ;;  %3889 = vperm.xlu1 %6480, %v6833_v25   ;;  %v5042_v54 = vld [vmem:[#allocation7 + $0xb8] sm:$0xf0]  ;;  %v6850_v61 = vor.u32 %v5981_v45, %v4946_v48  ;;  %v1969_v19 = vpop.f32.mrf.mxu2  ;;  %v6046_v45 = vld [vmem:[#allocation7 + $0x1c4] sm:$0xf]  ;;  %v5178_v48 = vld [vmem:[#allocation7 + $0x1c8] sm:$0xf0] }
 0x15d   :  { %3591 = vmatpush.bf16.msra.mxu1 %v5929_v56  ;;  %v6034_v56 = vld [vmem:[#allocation7 + $0x164] sm:$0xf]  ;;  %v5045_v2 = vor.u32 %v6012_v53, %v5042_v54  ;;  %v1983_v6 = vpop.f32.mrf.mxu3  ;;  %v1970_v12 = vadd.f32 %v1969_v19, %v1956_v32  ;;  %v4962_v32 = vld [vmem:[#allocation7 + $0x18] sm:$0xf0]  ;;  %3871 = vperm.xlu2 %6478, %v6833_v25  }
 0x15e   :  { %3601 = vmatpush.bf16.msra.mxu2 %v5005_v60  ;;  %v5130_v60 = vld [vmem:[#allocation7 + $0x168] sm:$0xf0]  ;;  %v5106_v19 = vld [vmem:[#allocation7 + $0x138] sm:$0xf0] }
 0x15f   :  { %3615 = vmatpush.bf16.msra.mxu3 %v5069_v10  ;;  %v4981_v10 = vor.u32 %v5996_v17, %v4978_v50  ;;  %v5133_v4 = vor.u32 %v6034_v56, %v5130_v60  ;;  %v1984_v35 = vadd.f32 %v1983_v6, %v1970_v12  ;;  %v5990_v17 = vld [vmem:[#allocation7 + $0x4] sm:$0xf]  ;;  %v4954_v56 = vld [vmem:[#allocation7 + $0x8] sm:$0xf0]  ;;  %v5170_v6 = vld [vmem:[#allocation7 + $0x1b8] sm:$0xf0] }
 0x160   :  { %3578 = vmatpush.bf16.msra.mxu0 %v5857_v9  ;;  %v4970_v9 = vld [vmem:[#allocation7 + $0x28] sm:$0xf0]  ;;  %v6006_v60 = vld [vmem:[#allocation7 + $0x84] sm:$0xf] }
 0x161   :  { %3592 = vmatpush.bf16.msra.mxu1 %v5921_v38  ;;  %v5197_v38 = vor.u32 %v6050_v62, %v5194_v0  ;;  %v4973_v47 = vor.u32 %v5994_v8, %v4970_v9  ;;  %v5018_v62 = vld [vmem:[#allocation7 + $0x88] sm:$0xf0]  ;;  %v6068_v8 = vld [vmem:[#allocation7 + $0x274] sm:$0xf]  ;;  %v5266_v9 = vld [vmem:[#allocation7 + $0x278] sm:$0xf0] }
 0x162   :  { %3602 = vmatpush.bf16.msra.mxu2 %v4997_v40  ;;  %v1957_v40 = vpop.f32.mrf.mxu1  ;;  %v5021_v21 = vor.u32 %v6006_v60, %v5018_v62  ;;  %v5269_v24 = vor.u32 %v6068_v8, %v5266_v9  ;;  %v5242_v8 = vld [vmem:[#allocation7 + $0x248] sm:$0xf0]  ;;  %v6078_v9 = vld [vmem:[#allocation7 + $0x2c4] sm:$0xf] }
 0x163   :  { %3616 = vmatpush.bf16.msra.mxu3 %v5061_v31  ;;  %v1958_v31 = vadd.f32 %v1957_v40, %v6839_v26  ;;  %v6030_v26 = vld [vmem:[#allocation7 + $0x144] sm:$0xf]  ;;  %v6084_v40 = vld [vmem:[#allocation7 + $0x2f4] sm:$0xf] }
 0x164   :  { %3579 = vmatpush.bf16.msra.mxu0 %v5849_v33  ;;  %v6008_v33 = vld [vmem:[#allocation7 + $0x94] sm:$0xf]  ;;  %v1971_v53 = vpop.f32.mrf.mxu2 }
 0x165   :  { %3593 = vmatpush.bf16.msra.mxu1 %v5913_v39  ;;  %v6632_v39 = vmov 4   ;;  %v5029_v50 = vor.u32 %v6008_v33, %v5026_v34  ;;  %v1985_v54 = vpop.f32.mrf.mxu3  ;;  %v1972_v0 = vadd.f32 %v1971_v53, %v1958_v31  ;;  %v5258_v33 = vld [vmem:[#allocation7 + $0x268] sm:$0xf0]  ;;  %v5250_v53 = vld [vmem:[#allocation7 + $0x258] sm:$0xf0] }
 0x166   :  { %3603 = vmatpush.bf16.msra.mxu2 %v4989_v42  ;;  %6482 = vset.pattern.permute.xlu1 %v6632_v39  ;;  %v1997_v42 = vpop.f32.mrf.mxu0  ;;  %v5322_v34 = vld [vmem:[#allocation7 + $0x2e8] sm:$0xf0] }
 0x167   :  { %3617 = vmatpush.bf16.msra.mxu3 %v5053_v49  ;;  %3580 = vmatmul.bf16.vlgmr.msra.gmra.mxu0 %v6848_v63  ;;  %v1998_v49 = vadd.f32 %v1997_v42, %v1984_v35  ;;  %v1986_v11 = vadd.f32 %v1985_v54, %v1972_v0  ;;  %v5098_v35 = vld [vmem:[#allocation7 + $0x128] sm:$0xf0]  ;;  %v6080_v54 = vld [vmem:[#allocation7 + $0x2d4] sm:$0xf]  ;;  %v6022_v0 = vld [vmem:[#allocation7 + $0x104] sm:$0xf] }
 0x168   :  { %3628 = vmatpush.bf16.msrb.mxu0 %v5141_v43  ;;  %3594 = vmatmul.bf16.vlgmr.msra.gmra.mxu1 %v6850_v61  ;;  %v4965_v43 = vor.u32 %v5992_v30, %v4962_v32  ;;  %v5162_v30 = vld [vmem:[#allocation7 + $0x1a8] sm:$0xf0]  ;;  %v6066_v32 = vld [vmem:[#allocation7 + $0x264] sm:$0xf] }
 0x169   :  { %3642 = vmatpush.bf16.msrb.mxu1 %v5205_v59  ;;  %3907 = vperm.xlu1 %6482, %v6833_v25   ;;  %v5117_v59 = vor.u32 %v6030_v26, %v5114_v41  ;;  %v6082_v25 = vld [vmem:[#allocation7 + $0x2e4] sm:$0xf]  ;;  %v5101_v26 = vor.u32 %v6026_v36, %v5098_v35  ;;  %v5261_v42 = vor.u32 %v6066_v32, %v5258_v33  ;;  %v5234_v36 = vld [vmem:[#allocation7 + $0x238] sm:$0xf0]  ;;  %v6076_v35 = vld [vmem:[#allocation7 + $0x2b4] sm:$0xf] }
 0x16a   :  { %3604 = vmatpush.bf16.msra.mxu2 %v4981_v10  ;;  %6483 = vset.pattern.permute.xlu0 %v6632_v39  ;;  %v5181_v10 = vor.u32 %v6046_v45, %v5178_v48  ;;  %v2011_v12 = vpop.f32.mrf.mxu1  ;;  %v6024_v45 = vld [vmem:[#allocation7 + $0x114] sm:$0xf]  ;;  %v5090_v48 = vld [vmem:[#allocation7 + $0x118] sm:$0xf0]  ;;  %v6114_v32 = vld [vmem:[#allocation7 + $0x3e4] sm:$0xf] }
 0x16b   :  { %3618 = vmatpush.bf16.msra.mxu3 %v5045_v2  ;;  %v6028_v2 = vld [vmem:[#allocation7 + $0x134] sm:$0xf]  ;;  %v6860_v18 = vadd.f32 %v2011_v12, %v1998_v49  ;;  %6481 = vset.pattern.permute.xlu2 %v6632_v39  ;;  %v5093_v62 = vor.u32 %v6024_v45, %v5090_v48  ;;  %v5306_v39 = vld [vmem:[#allocation7 + $0x2c8] sm:$0xf0]  ;;  %v5394_v12 = vld [vmem:[#allocation7 + $0x378] sm:$0xf0] }
 0x16c   :  { %3629 = vmatpush.bf16.msrb.mxu0 %v5133_v4  ;;  %v6044_v4 = vld [vmem:[#allocation7 + $0x1b4] sm:$0xf]  ;;  %v5109_v31 = vor.u32 %v6028_v2, %v5106_v19  ;;  %3903 = vperm.xlu2 %6481, %v6824_v46   ;;  %v5082_v2 = vld [vmem:[#allocation7 + $0x108] sm:$0xf0]  ;;  %v6038_v19 = vld [vmem:[#allocation7 + $0x184] sm:$0xf] }
 0x16d   :  { %3643 = vmatpush.bf16.msrb.mxu1 %v5197_v38  ;;  %v4957_v38 = vor.u32 %v5990_v17, %v4954_v56  ;;  %v5173_v23 = vor.u32 %v6044_v4, %v5170_v6  ;;  %v6040_v49 = vld [vmem:[#allocation7 + $0x194] sm:$0xf]  ;;  %v5154_v17 = vld [vmem:[#allocation7 + $0x198] sm:$0xf0]  ;;  %v5146_v4 = vld [vmem:[#allocation7 + $0x188] sm:$0xf0] }
 0x16e   :  { %3605 = vmatpush.bf16.msra.mxu2 %v4973_v47  ;;  %v6042_v47 = vld [vmem:[#allocation7 + $0x1a4] sm:$0xf]  ;;  %v5314_v56 = vld [vmem:[#allocation7 + $0x2d8] sm:$0xf0]  ;;  %v5149_v46 = vor.u32 %v6038_v19, %v5146_v4  ;;  %v5450_v33 = vld [vmem:[#allocation7 + $0x3e8] sm:$0xf0] }
 0x16f   :  { %3619 = vmatpush.bf16.msra.mxu3 %v5037_v27  ;;  %v5333_v27 = vor.u32 %v6084_v40, %v5330_v15  ;;  %v5165_v41 = vor.u32 %v6042_v47, %v5162_v30  ;;  %v6062_v6 = vld [vmem:[#allocation7 + $0x244] sm:$0xf]  ;;  %v6116_v40 = vld [vmem:[#allocation7 + $0x3f4] sm:$0xf]  ;;  %v5458_v15 = vld [vmem:[#allocation7 + $0x3f8] sm:$0xf0] }
 0x170   :  { %3630 = vmatpush.bf16.msrb.mxu0 %v5125_v29  ;;  %v1999_v29 = vpop.f32.mrf.mxu0  ;;  %v5461_v47 = vor.u32 %v6116_v40, %v5458_v15  ;;  %v5386_v30 = vld [vmem:[#allocation7 + $0x368] sm:$0xf0]  ;;  %v6058_v45 = vld [vmem:[#allocation7 + $0x224] sm:$0xf]  ;;  %v5282_v19 = vld [vmem:[#allocation7 + $0x298] sm:$0xf0] }
 0x171   :  { %3644 = vmatpush.bf16.msrb.mxu1 %v5189_v37  ;;  %v2000_v37 = vadd.f32 %v1999_v29, %v1986_v11  ;;  %v6100_v11 = vld [vmem:[#allocation7 + $0x374] sm:$0xf]  ;;  %v6098_v29 = vld [vmem:[#allocation7 + $0x364] sm:$0xf]  ;;  %v5226_v48 = vld [vmem:[#allocation7 + $0x228] sm:$0xf0] }
 0x172   :  { %3606 = vmatpush.bf16.msra.mxu2 %v4965_v43  ;;  %v5325_v43 = vor.u32 %v6082_v25, %v5322_v34  ;;  %v6094_v4 = vld [vmem:[#allocation7 + $0x344] sm:$0xf] }
 0x173   :  { %3620 = vmatpush.bf16.msra.mxu3 %v5029_v50  ;;  %v6064_v50 = vld [vmem:[#allocation7 + $0x254] sm:$0xf] }
 0x174   :  { %3631 = vmatpush.bf16.msrb.mxu0 %v5117_v59  ;;  %v2013_v59 = vpop.f32.mrf.mxu1 }
 0x175   :  { %3645 = vmatpush.bf16.msrb.mxu1 %v5181_v10  ;;  %v6865_v60 = vadd.f32 %v2013_v59, %v2000_v37  ;;  %v5253_v10 = vor.u32 %v6064_v50, %v5250_v53  ;;  %v6096_v50 = vld [vmem:[#allocation7 + $0x354] sm:$0xf]  ;;  %v5378_v53 = vld [vmem:[#allocation7 + $0x358] sm:$0xf0] }
 0x176   :  { %3607 = vmatpush.bf16.msra.mxu2 %v4957_v38  ;;  %v5085_v38 = vor.u32 %v6022_v0, %v5082_v2  ;;  %v5381_v0 = vor.u32 %v6096_v50, %v5378_v53  ;;  %v6072_v2 = vld [vmem:[#allocation7 + $0x294] sm:$0xf]  ;;  %v5418_v53 = vld [vmem:[#allocation7 + $0x3a8] sm:$0xf0] }
 0x177   :  { %3621 = vmatpush.bf16.msra.mxu3 %v5021_v21  ;;  %v5245_v21 = vor.u32 %v6062_v6, %v5242_v8  ;;  %v6110_v8 = vld [vmem:[#allocation7 + $0x3c4] sm:$0xf]  ;;  %v5285_v40 = vor.u32 %v6072_v2, %v5282_v19  ;;  %v6088_v19 = vld [vmem:[#allocation7 + $0x314] sm:$0xf] }
 0x178   :  { %3632 = vmatpush.bf16.msrb.mxu0 %v5109_v31  ;;  %v5309_v31 = vor.u32 %v6078_v9, %v5306_v39 }
 0x179   :  { %3646 = vmatpush.bf16.msrb.mxu1 %v5173_v23  ;;  %3608 = vmatmul.bf16.vlgmr.msra.gmra.mxu2 %v6772_v28  ;;  %v5157_v28 = vor.u32 %v6040_v49, %v5154_v17  ;;  %v5397_v23 = vor.u32 %v6100_v11, %v5394_v12  ;;  %v6074_v49 = vld [vmem:[#allocation7 + $0x2a4] sm:$0xf]  ;;  %v5290_v17 = vld [vmem:[#allocation7 + $0x2a8] sm:$0xf0] }
 0x17a   :  { %3656 = vmatpush.bf16.msrb.mxu2 %v5269_v24  ;;  %3622 = vmatmul.bf16.vlgmr.msra.gmra.mxu3 %v6775_v57  ;;  %v5317_v57 = vor.u32 %v6080_v54, %v5314_v56  ;;  %v6060_v24 = vld [vmem:[#allocation7 + $0x234] sm:$0xf]  ;;  %v5442_v56 = vld [vmem:[#allocation7 + $0x3d8] sm:$0xf0] }
 0x17b   :  { %3670 = vmatpush.bf16.msrb.mxu3 %v5333_v27  ;;  %v5298_v27 = vld [vmem:[#allocation7 + $0x2b8] sm:$0xf0]  ;;  %v5237_v37 = vor.u32 %v6060_v24, %v5234_v36  ;;  %v6112_v54 = vld [vmem:[#allocation7 + $0x3d4] sm:$0xf]  ;;  %v5274_v24 = vld [vmem:[#allocation7 + $0x288] sm:$0xf0] }
 0x17c   :  { %3633 = vmatpush.bf16.msrb.mxu0 %v5101_v26  ;;  %v3385_v25 = vpop.f32.mrf.mxu2  ;;  %v5301_v34 = vor.u32 %v6076_v35, %v5298_v27  ;;  %v5362_v27 = vld [vmem:[#allocation7 + $0x338] sm:$0xf0] }
 0x17d   :  { %3647 = vmatpush.bf16.msrb.mxu1 %v5165_v41  ;;  %v3386_v26 = vadd.f32 %v3385_v25, %v6787_v7  ;;  %v5389_v41 = vor.u32 %v6098_v29, %v5386_v30  ;;  %v5293_v7 = vor.u32 %v6074_v49, %v5290_v17  ;;  %v6108_v29 = vld [vmem:[#allocation7 + $0x3b4] sm:$0xf]  ;;  %v5354_v49 = vld [vmem:[#allocation7 + $0x328] sm:$0xf0] }
 0x17e   :  { %3657 = vmatpush.bf16.msrb.mxu2 %v5261_v42  ;;  %v3399_v42 = vpop.f32.mrf.mxu3 }
 0x17f   :  { %3671 = vmatpush.bf16.msrb.mxu3 %v5325_v43  ;;  %v5453_v43 = vor.u32 %v6114_v32, %v5450_v33  ;;  %v3400_v59 = vadd.f32 %v3399_v42, %v3386_v26  ;;  %v5426_v32 = vld [vmem:[#allocation7 + $0x3b8] sm:$0xf0]  ;;  %v6132_v33 = vld [vmem:[#allocation7 + $0x474] sm:$0xf] }
 0x180   :  { %3634 = vmatpush.bf16.msrb.mxu0 %v5093_v62  ;;  %v5229_v62 = vor.u32 %v6058_v45, %v5226_v48  ;;  %v5429_v42 = vor.u32 %v6108_v29, %v5426_v32  ;;  %v6090_v48 = vld [vmem:[#allocation7 + $0x324] sm:$0xf]  ;;  %v5714_v32 = vld [vmem:[#allocation7 + $0x5f8] sm:$0xf0] }
 0x181   :  { %3648 = vmatpush.bf16.msrb.mxu1 %v5157_v28  ;;  %v6056_v28 = vld [vmem:[#allocation7 + $0x214] sm:$0xf] }
 0x182   :  { %3658 = vmatpush.bf16.msrb.mxu2 %v5253_v10  ;;  %v5218_v10 = vld [vmem:[#allocation7 + $0x218] sm:$0xf0] }
 0x183   :  { %3672 = vmatpush.bf16.msrb.mxu3 %v5317_v57  ;;  %v5370_v57 = vld [vmem:[#allocation7 + $0x348] sm:$0xf0]  ;;  %v5221_v39 = vor.u32 %v6056_v28, %v5218_v10  ;;  %v5357_v28 = vor.u32 %v6090_v48, %v5354_v49  ;;  %v6162_v48 = vld [vmem:[#allocation7 + $0x564] sm:$0xf] }
 0x184   :  { %3635 = vmatpush.bf16.msrb.mxu0 %v5085_v38  ;;  %v3413_v6 = vpop.f32.mrf.mxu0  ;;  %v3387_v11 = vpop.f32.mrf.mxu2  ;;  %v6054_v38 = vld [vmem:[#allocation7 + $0x204] sm:$0xf]  ;;  %v5642_v49 = vld [vmem:[#allocation7 + $0x568] sm:$0xf0] }
 0x185   :  { %3649 = vmatpush.bf16.msrb.mxu1 %v5149_v46  ;;  %v3414_v9 = vadd.f32 %v3413_v6, %v3400_v59  ;;  %v3427_v12 = vpop.f32.mrf.mxu1  ;;  %v3388_v15 = vadd.f32 %v3387_v11, %v6795_v22  ;;  %v5373_v46 = vor.u32 %v6094_v4, %v5370_v57  ;;  %v5586_v22 = vld [vmem:[#allocation7 + $0x4f8] sm:$0xf0]  ;;  %v6130_v59 = vld [vmem:[#allocation7 + $0x464] sm:$0xf]  ;;  %v6104_v57 = vld [vmem:[#allocation7 + $0x394] sm:$0xf] }
 0x186   :  { %3659 = vmatpush.bf16.msrb.mxu2 %v5245_v21  ;;  %v3401_v21 = vpop.f32.mrf.mxu3  ;;  %v5346_v4 = vld [vmem:[#allocation7 + $0x318] sm:$0xf0] }
 0x187   :  { %3673 = vmatpush.bf16.msrb.mxu3 %v5309_v31  ;;  %3636 = vmatmul.bf16.vlgmr.msrb.gmra.mxu0 %v6781_v51  ;;  %v5445_v51 = vor.u32 %v6112_v54, %v5442_v56  ;;  %v5210_v31 = vld [vmem:[#allocation7 + $0x208] sm:$0xf0]  ;;  %v6872_v35 = vadd.f32 %v3427_v12, %v3414_v9  ;;  %v3402_v30 = vadd.f32 %v3401_v21, %v3388_v15  ;;  %v5506_v9 = vld [vmem:[#allocation7 + $0x458] sm:$0xf0]  ;;  %v6102_v21 = vld [vmem:[#allocation7 + $0x384] sm:$0xf] }
 0x188   :  { %3684 = vmatpush.bf16.msra.mxu0 %v5397_v23  ;;  %3650 = vmatmul.bf16.vlgmr.msrb.gmra.mxu1 %v6783_v3  ;;  %v5434_v3 = vld [vmem:[#allocation7 + $0x3c8] sm:$0xf0]  ;;  %v6070_v23 = vld [vmem:[#allocation7 + $0x284] sm:$0xf]  ;;  %v5213_v25 = vor.u32 %v6054_v38, %v5210_v31  ;;  %v5570_v11 = vld [vmem:[#allocation7 + $0x4d8] sm:$0xf0]  ;;  %v5349_v12 = vor.u32 %v6088_v19, %v5346_v4 }
 0x189   :  { %3698 = vmatpush.bf16.msra.mxu1 %v5461_v47  ;;  %v5437_v36 = vor.u32 %v6110_v8, %v5434_v3  ;;  %v6092_v47 = vld [vmem:[#allocation7 + $0x334] sm:$0xf]  ;;  %v5277_v26 = vor.u32 %v6070_v23, %v5274_v24  ;;  %v5514_v54 = vld [vmem:[#allocation7 + $0x468] sm:$0xf0]  ;;  %v5410_v8 = vld [vmem:[#allocation7 + $0x398] sm:$0xf0] }
 0x18a   :  { %3660 = vmatpush.bf16.msrb.mxu2 %v5237_v37  ;;  %v5522_v37 = vld [vmem:[#allocation7 + $0x478] sm:$0xf0]  ;;  %v5517_v2 = vor.u32 %v6130_v59, %v5514_v54  ;;  %v6128_v3 = vld [vmem:[#allocation7 + $0x454] sm:$0xf]  ;;  %v6086_v38 = vld [vmem:[#allocation7 + $0x304] sm:$0xf] }
 0x18b   :  { %3674 = vmatpush.bf16.msrb.mxu3 %v5301_v34  ;;  %v6148_v34 = vld [vmem:[#allocation7 + $0x4f4] sm:$0xf]  ;;  %v5525_v45 = vor.u32 %v6132_v33, %v5522_v37  ;;  %v5509_v15 = vor.u32 %v6128_v3, %v5506_v9  ;;  %v5402_v31 = vld [vmem:[#allocation7 + $0x388] sm:$0xf0]  ;;  %v6126_v23 = vld [vmem:[#allocation7 + $0x444] sm:$0xf] }
 0x18c   :  { %3685 = vmatpush.bf16.msra.mxu0 %v5389_v41  ;;  %v5365_v41 = vor.u32 %v6092_v47, %v5362_v27  ;;  %v5589_v17 = vor.u32 %v6148_v34, %v5586_v22  ;;  %v3415_v50 = vpop.f32.mrf.mxu0  ;;  %v5498_v24 = vld [vmem:[#allocation7 + $0x448] sm:$0xf0]  ;;  %v6164_v27 = vld [vmem:[#allocation7 + $0x574] sm:$0xf]  ;;  %v5405_v33 = vor.u32 %v6102_v21, %v5402_v31  ;;  %v5634_v4 = vld [vmem:[#allocation7 + $0x558] sm:$0xf0] }
 0x18d   :  { %3699 = vmatpush.bf16.msra.mxu1 %v5453_v43  ;;  %v6106_v43 = vld [vmem:[#allocation7 + $0x3a4] sm:$0xf]  ;;  %v3416_v56 = vadd.f32 %v3415_v50, %v3402_v30  ;;  %v5562_v47 = vld [vmem:[#allocation7 + $0x4c8] sm:$0xf0]  ;;  %v6180_v30 = vld [vmem:[#allocation7 + $0x5f4] sm:$0xf]  ;;  %v5501_v37 = vor.u32 %v6126_v23, %v5498_v24 }
 0x18e   :  { %3661 = vmatpush.bf16.msrb.mxu2 %v5229_v62  ;;  %v6146_v62 = vld [vmem:[#allocation7 + $0x4e4] sm:$0xf]  ;;  %v5421_v10 = vor.u32 %v6106_v43, %v5418_v53  ;;  %v6124_v22 = vld [vmem:[#allocation7 + $0x434] sm:$0xf] }
 0x18f   :  { %3675 = vmatpush.bf16.msrb.mxu3 %v5293_v7  ;;  %v5578_v7 = vld [vmem:[#allocation7 + $0x4e8] sm:$0xf0]  ;;  %v6178_v43 = vld [vmem:[#allocation7 + $0x5e4] sm:$0xf]  ;;  %v6160_v19 = vld [vmem:[#allocation7 + $0x554] sm:$0xf] }
 0x190   :  { %3686 = vmatpush.bf16.msra.mxu0 %v5381_v0  ;;  %v3429_v0 = vpop.f32.mrf.mxu1  ;;  %v5581_v6 = vor.u32 %v6146_v62, %v5578_v7  ;;  %v6122_v7 = vld [vmem:[#allocation7 + $0x424] sm:$0xf]  ;;  %v5637_v9 = vor.u32 %v6160_v19, %v5634_v4 }
 0x191   :  { %3700 = vmatpush.bf16.msra.mxu1 %v5445_v51  ;;  %v6874_v51 = vadd.f32 %v3429_v0, %v3416_v56  ;;  %v5645_v56 = vor.u32 %v6162_v48, %v5642_v49  ;;  %v5482_v0 = vld [vmem:[#allocation7 + $0x428] sm:$0xf0]  ;;  %v6174_v21 = vld [vmem:[#allocation7 + $0x5c4] sm:$0xf]  ;;  %v5778_v48 = vld [vmem:[#allocation7 + $0x678] sm:$0xf0] }
 0x192   :  { %3662 = vmatpush.bf16.msrb.mxu2 %v5221_v39  ;;  %v6144_v39 = vld [vmem:[#allocation7 + $0x4d4] sm:$0xf]  ;;  %v5485_v3 = vor.u32 %v6122_v7, %v5482_v0  ;;  %v6210_v4 = vld [vmem:[#allocation7 + $0x6e4] sm:$0xf] }
 0x193   :  { %3676 = vmatpush.bf16.msrb.mxu3 %v5285_v40  ;;  %v5413_v40 = vor.u32 %v6104_v57, %v5410_v8  ;;  %v5698_v8 = vld [vmem:[#allocation7 + $0x5d8] sm:$0xf0] }
 0x194   :  { %3687 = vmatpush.bf16.msra.mxu0 %v5373_v46  ;;  %v5338_v46 = vld [vmem:[#allocation7 + $0x308] sm:$0xf0] }
 0x195   :  { %3701 = vmatpush.bf16.msra.mxu1 %v5437_v36  ;;  %v6142_v36 = vld [vmem:[#allocation7 + $0x4c4] sm:$0xf]  ;;  %v5341_v29 = vor.u32 %v6086_v38, %v5338_v46  ;;  %v5538_v38 = vld [vmem:[#allocation7 + $0x498] sm:$0xf0] }
 0x196   :  { %3663 = vmatpush.bf16.msrb.mxu2 %v5213_v25  ;;  %v5565_v25 = vor.u32 %v6142_v36, %v5562_v47  ;;  %v6118_v36 = vld [vmem:[#allocation7 + $0x404] sm:$0xf] }
 0x197   :  { %3677 = vmatpush.bf16.msrb.mxu3 %v5277_v26  ;;  %v5490_v26 = vld [vmem:[#allocation7 + $0x438] sm:$0xf0] }
 0x198   :  { %3688 = vmatpush.bf16.msra.mxu0 %v5365_v41  ;;  %v6140_v41 = vld [vmem:[#allocation7 + $0x4b4] sm:$0xf]  ;;  %v5493_v50 = vor.u32 %v6124_v22, %v5490_v26  ;;  %v5618_v22 = vld [vmem:[#allocation7 + $0x538] sm:$0xf0] }
 0x199   :  { %3702 = vmatpush.bf16.msra.mxu1 %v5429_v42  ;;  %3664 = vmatmul.bf16.vlgmr.msrb.gmra.mxu2 %v6789_v1  ;;  %v5573_v1 = vor.u32 %v6144_v39, %v5570_v11  ;;  %v5717_v42 = vor.u32 %v6180_v30, %v5714_v32  ;;  %v6120_v39 = vld [vmem:[#allocation7 + $0x414] sm:$0xf]  ;;  %v5474_v11 = vld [vmem:[#allocation7 + $0x418] sm:$0xf0]  ;;  %v5466_v30 = vld [vmem:[#allocation7 + $0x408] sm:$0xf0] }
 0x19a   :  { %3712 = vmatpush.bf16.msra.mxu2 %v5525_v45  ;;  %3678 = vmatmul.bf16.vlgmr.msrb.gmra.mxu3 %v6791_v5  ;;  %v5650_v5 = vld [vmem:[#allocation7 + $0x578] sm:$0xf0]  ;;  %v6134_v32 = vld [vmem:[#allocation7 + $0x484] sm:$0xf]  ;;  %v6172_v26 = vld [vmem:[#allocation7 + $0x5b4] sm:$0xf]  ;;  %v5469_v49 = vor.u32 %v6118_v36, %v5466_v30 }
 0x19b   :  { %3726 = vmatpush.bf16.msra.mxu3 %v5589_v17  ;;  %v5653_v34 = vor.u32 %v6164_v27, %v5650_v5  ;;  %v5554_v45 = vld [vmem:[#allocation7 + $0x4b8] sm:$0xf0]  ;;  %v5706_v17 = vld [vmem:[#allocation7 + $0x5e8] sm:$0xf0]  ;;  %v6166_v36 = vld [vmem:[#allocation7 + $0x584] sm:$0xf] }
 0x19c   :  { %3689 = vmatpush.bf16.msra.mxu0 %v5357_v28  ;;  %v3441_v53 = vpop.f32.mrf.mxu2  ;;  %v5557_v59 = vor.u32 %v6140_v41, %v5554_v45  ;;  %v6138_v28 = vld [vmem:[#allocation7 + $0x4a4] sm:$0xf]  ;;  %v6196_v45 = vld [vmem:[#allocation7 + $0x674] sm:$0xf]  ;;  %v5818_v30 = vld [vmem:[#allocation7 + $0x6c8] sm:$0xf0] }
 0x19d   :  { %3703 = vmatpush.bf16.msra.mxu1 %v5421_v10  ;;  %v3442_v54 = vadd.f32 %v3441_v53, %v6872_v35  ;;  %v3455_v62 = vpop.f32.mrf.mxu3  ;;  %v5709_v10 = vor.u32 %v6178_v43, %v5706_v17  ;;  %v6212_v43 = vld [vmem:[#allocation7 + $0x6f4] sm:$0xf] }
 0x19e   :  { %3713 = vmatpush.bf16.msra.mxu2 %v5517_v2  ;;  %v5546_v2 = vld [vmem:[#allocation7 + $0x4a8] sm:$0xf0] }
 0x19f   :  { %3727 = vmatpush.bf16.msra.mxu3 %v5581_v6  ;;  %v3456_v57 = vadd.f32 %v3455_v62, %v3442_v54  ;;  %v6176_v6 = vld [vmem:[#allocation7 + $0x5d4] sm:$0xf]  ;;  %v5549_v35 = vor.u32 %v6138_v28, %v5546_v2  ;;  %v6154_v54 = vld [vmem:[#allocation7 + $0x524] sm:$0xf]  ;;  %v5674_v28 = vld [vmem:[#allocation7 + $0x5a8] sm:$0xf0] }
 0x1a0   :  { %3690 = vmatpush.bf16.msra.mxu0 %v5349_v12  ;;  %v6136_v12 = vld [vmem:[#allocation7 + $0x494] sm:$0xf]  ;;  %v6170_v62 = vld [vmem:[#allocation7 + $0x5a4] sm:$0xf]  ;;  %v5770_v2 = vld [vmem:[#allocation7 + $0x668] sm:$0xf0] }
 0x1a1   :  { %3704 = vmatpush.bf16.msra.mxu1 %v5413_v40  ;;  %v6158_v40 = vld [vmem:[#allocation7 + $0x544] sm:$0xf]  ;;  %v5541_v47 = vor.u32 %v6136_v12, %v5538_v38  ;;  %v6168_v12 = vld [vmem:[#allocation7 + $0x594] sm:$0xf]  ;;  %v5666_v38 = vld [vmem:[#allocation7 + $0x598] sm:$0xf0] }
 0x1a2   :  { %3714 = vmatpush.bf16.msra.mxu2 %v5509_v15  ;;  %v5626_v15 = vld [vmem:[#allocation7 + $0x548] sm:$0xf0] }
 0x1a3   :  { %3728 = vmatpush.bf16.msra.mxu3 %v5573_v1  ;;  %v5477_v1 = vor.u32 %v6120_v39, %v5474_v11  ;;  %v5629_v5 = vor.u32 %v6158_v40, %v5626_v15  ;;  %v6152_v39 = vld [vmem:[#allocation7 + $0x514] sm:$0xf]  ;;  %v5602_v11 = vld [vmem:[#allocation7 + $0x518] sm:$0xf0] }
 0x1a4   :  { %3691 = vmatpush.bf16.msra.mxu0 %v5341_v29  ;;  %v3469_v46 = vpop.f32.mrf.mxu0  ;;  %v3443_v23 = vpop.f32.mrf.mxu2  ;;  %v6192_v40 = vld [vmem:[#allocation7 + $0x654] sm:$0xf]  ;;  %v5762_v15 = vld [vmem:[#allocation7 + $0x658] sm:$0xf0] }
 0x1a5   :  { %3705 = vmatpush.bf16.msra.mxu1 %v5405_v33  ;;  %v3470_v31 = vadd.f32 %v3469_v46, %v3456_v57  ;;  %v3483_v24 = vpop.f32.mrf.mxu1  ;;  %v3444_v27 = vadd.f32 %v3443_v23, %v6874_v51  ;;  %v3457_v29 = vpop.f32.mrf.mxu3  ;;  %v5530_v33 = vld [vmem:[#allocation7 + $0x488] sm:$0xf0]  ;;  %v5842_v51 = vld [vmem:[#allocation7 + $0x6f8] sm:$0xf0]  ;;  %v6208_v46 = vld [vmem:[#allocation7 + $0x6d4] sm:$0xf]  ;;  %v5765_v23 = vor.u32 %v6192_v40, %v5762_v15 }
 0x1a6   :  { %3715 = vmatpush.bf16.msra.mxu2 %v5501_v37  ;;  %v5533_v17 = vor.u32 %v6134_v32, %v5530_v33  ;;  %v5845_v7 = vor.u32 %v6212_v43, %v5842_v51  ;;  %v5834_v57 = vld [vmem:[#allocation7 + $0x6e8] sm:$0xf0]  ;;  %v6228_v32 = vld [vmem:[#allocation7 + $0x774] sm:$0xf]  ;;  %v5810_v51 = vld [vmem:[#allocation7 + $0x6b8] sm:$0xf0] }
 0x1a7   :  { %3729 = vmatpush.bf16.msra.mxu3 %v5565_v25  ;;  %3692 = vmatmul.bf16.vlgmr.msra.gmra.mxu0 %v6797_v55  ;;  %v5701_v55 = vor.u32 %v6176_v6, %v5698_v8  ;;  %v6882_v25 = vadd.f32 %v3483_v24, %v3470_v31  ;;  %v3458_v41 = vadd.f32 %v3457_v29, %v3444_v27  ;;  %v6150_v31 = vld [vmem:[#allocation7 + $0x504] sm:$0xf]  ;;  %v5594_v24 = vld [vmem:[#allocation7 + $0x508] sm:$0xf0]  ;;  %v6200_v40 = vld [vmem:[#allocation7 + $0x694] sm:$0xf] }
 0x1a8   :  { %3740 = vmatpush.bf16.msrb.mxu0 %v5653_v34  ;;  %3706 = vmatmul.bf16.vlgmr.msra.gmra.mxu1 %v6799_v58  ;;  %v5690_v58 = vld [vmem:[#allocation7 + $0x5c8] sm:$0xf0]  ;;  %v6156_v34 = vld [vmem:[#allocation7 + $0x534] sm:$0xf]  ;;  %v6190_v27 = vld [vmem:[#allocation7 + $0x644] sm:$0xf]  ;;  %v5597_v33 = vor.u32 %v6150_v31, %v5594_v24 }
 0x1a9   :  { %3754 = vmatpush.bf16.msrb.mxu1 %v5717_v42  ;;  %v5693_v37 = vor.u32 %v6174_v21, %v5690_v58  ;;  %v5682_v42 = vld [vmem:[#allocation7 + $0x5b8] sm:$0xf0]  ;;  %v5605_v58 = vor.u32 %v6152_v39, %v5602_v11  ;;  %v6206_v29 = vld [vmem:[#allocation7 + $0x6c4] sm:$0xf] }
 0x1aa   :  { %3716 = vmatpush.bf16.msra.mxu2 %v5493_v50  ;;  %v5621_v50 = vor.u32 %v6156_v34, %v5618_v22  ;;  %v5685_v53 = vor.u32 %v6172_v26, %v5682_v42  ;;  %v5826_v21 = vld [vmem:[#allocation7 + $0x6d8] sm:$0xf0]  ;;  %v6238_v31 = vld [vmem:[#allocation7 + $0x7c4] sm:$0xf] }
 0x1ab   :  { %3730 = vmatpush.bf16.msra.mxu3 %v5557_v59  ;;  %v5781_v59 = vor.u32 %v6196_v45, %v5778_v48  ;;  %v5970_v34 = vld [vmem:[#allocation7 + $0x7f8] sm:$0xf0]  ;;  %v6188_v45 = vld [vmem:[#allocation7 + $0x634] sm:$0xf] }
 0x1ac   :  { %3741 = vmatpush.bf16.msrb.mxu0 %v5645_v56  ;;  %v5610_v56 = vld [vmem:[#allocation7 + $0x528] sm:$0xf0]  ;;  %v3471_v0 = vpop.f32.mrf.mxu0  ;;  %v5746_v48 = vld [vmem:[#allocation7 + $0x638] sm:$0xf0] }
 0x1ad   :  { %3755 = vmatpush.bf16.msrb.mxu1 %v5709_v10  ;;  %v6194_v10 = vld [vmem:[#allocation7 + $0x664] sm:$0xf]  ;;  %v3472_v19 = vadd.f32 %v3471_v0, %v3458_v41  ;;  %v3485_v6 = vpop.f32.mrf.mxu1  ;;  %v5613_v8 = vor.u32 %v6154_v54, %v5610_v56  ;;  %v5821_v41 = vor.u32 %v6206_v29, %v5818_v30  ;;  %v5749_v54 = vor.u32 %v6188_v45, %v5746_v48  ;;  %v5954_v39 = vld [vmem:[#allocation7 + $0x7d8] sm:$0xf0]  ;;  %v5722_v30 = vld [vmem:[#allocation7 + $0x608] sm:$0xf0] }
 0x1ae   :  { %3717 = vmatpush.bf16.msra.mxu2 %v5485_v3  ;;  %v5677_v3 = vor.u32 %v6170_v62, %v5674_v28  ;;  %v5794_v15 = vld [vmem:[#allocation7 + $0x698] sm:$0xf0]  ;;  %v6182_v29 = vld [vmem:[#allocation7 + $0x604] sm:$0xf] }
 0x1af   :  { %3731 = vmatpush.bf16.msra.mxu3 %v5549_v35  ;;  %v5773_v35 = vor.u32 %v6194_v10, %v5770_v2  ;;  %v6186_v10 = vld [vmem:[#allocation7 + $0x624] sm:$0xf]  ;;  %v5738_v2 = vld [vmem:[#allocation7 + $0x628] sm:$0xf0]  ;;  %v5725_v45 = vor.u32 %v6182_v29, %v5722_v30 }
 0x1b0   :  { %3742 = vmatpush.bf16.msrb.mxu0 %v5637_v9  ;;  %v6884_v9 = vadd.f32 %v3485_v6, %v3472_v19  ;;  %v6202_v19 = vld [vmem:[#allocation7 + $0x6a4] sm:$0xf]  ;;  %v6224_v6 = vld [vmem:[#allocation7 + $0x754] sm:$0xf]  ;;  %v5741_v11 = vor.u32 %v6186_v10, %v5738_v2  ;;  %v5922_v2 = vld [vmem:[#allocation7 + $0x798] sm:$0xf0] }
 0x1b1   :  { %3756 = vmatpush.bf16.msrb.mxu1 %v5701_v55  ;;  %v5837_v55 = vor.u32 %v6210_v4, %v5834_v57  ;;  %v5802_v57 = vld [vmem:[#allocation7 + $0x6a8] sm:$0xf0]  ;;  %v6232_v10 = vld [vmem:[#allocation7 + $0x794] sm:$0xf] }
 0x1b2   :  { %3718 = vmatpush.bf16.msra.mxu2 %v5477_v1  ;;  %v5669_v1 = vor.u32 %v6168_v12, %v5666_v38  ;;  %v5730_v38 = vld [vmem:[#allocation7 + $0x618] sm:$0xf0] }
 0x1b3   :  { %3732 = vmatpush.bf16.msra.mxu3 %v5541_v47  ;;  %v5658_v47 = vld [vmem:[#allocation7 + $0x588] sm:$0xf0] }
 0x1b4   :  { %3743 = vmatpush.bf16.msrb.mxu0 %v5629_v5  ;;  %v5754_v5 = vld [vmem:[#allocation7 + $0x648] sm:$0xf0]  ;;  %v5661_v22 = vor.u32 %v6166_v36, %v5658_v47  ;;  %v5797_v47 = vor.u32 %v6200_v40, %v5794_v15 }
 0x1b5   :  { %3757 = vmatpush.bf16.msrb.mxu1 %v5693_v37  ;;  %v6244_v37 = vld [vmem:[#allocation7 + $0x7f4] sm:$0xf]  ;;  %v5757_v26 = vor.u32 %v6190_v27, %v5754_v5 }
 0x1b6   :  { %3719 = vmatpush.bf16.msra.mxu2 %v5469_v49  ;;  %v6204_v49 = vld [vmem:[#allocation7 + $0x6b4] sm:$0xf]  ;;  %v5973_v43 = vor.u32 %v6244_v37, %v5970_v34  ;;  %v5786_v37 = vld [vmem:[#allocation7 + $0x688] sm:$0xf0] }
 0x1b7   :  { %3733 = vmatpush.bf16.msra.mxu3 %v5533_v17  ;;  %v6226_v17 = vld [vmem:[#allocation7 + $0x764] sm:$0xf]  ;;  %v5813_v62 = vor.u32 %v6204_v49, %v5810_v51  ;;  %v6220_v34 = vld [vmem:[#allocation7 + $0x734] sm:$0xf]  ;;  %v5866_v51 = vld [vmem:[#allocation7 + $0x728] sm:$0xf0] }
 0x1b8   :  { %3744 = vmatpush.bf16.msrb.mxu0 %v5621_v50  ;;  %v5898_v50 = vld [vmem:[#allocation7 + $0x768] sm:$0xf0] }
 0x1b9   :  { %3758 = vmatpush.bf16.msrb.mxu1 %v5685_v53  ;;  %3720 = vmatmul.bf16.vlgmr.msra.gmra.mxu2 %v6805_v14  ;;  %v5829_v14 = vor.u32 %v6208_v46, %v5826_v21  ;;  %v6242_v53 = vld [vmem:[#allocation7 + $0x7e4] sm:$0xf]  ;;  %v5901_v0 = vor.u32 %v6226_v17, %v5898_v50  ;;  %v5882_v21 = vld [vmem:[#allocation7 + $0x748] sm:$0xf0] }
 0x1ba   :  { %3768 = vmatpush.bf16.msrb.mxu2 %v5781_v59  ;;  %3734 = vmatmul.bf16.vlgmr.msra.gmra.mxu3 %v6807_v20  ;;  %v5906_v20 = vld [vmem:[#allocation7 + $0x778] sm:$0xf0]  ;;  %v5962_v59 = vld [vmem:[#allocation7 + $0x7e8] sm:$0xf0]  ;;  %v6222_v46 = vld [vmem:[#allocation7 + $0x744] sm:$0xf] }
 0x1bb   :  { %3782 = vmatpush.bf16.msrb.mxu3 %v5845_v7  ;;  %v5909_v42 = vor.u32 %v6228_v32, %v5906_v20  ;;  %v5965_v4 = vor.u32 %v6242_v53, %v5962_v59  ;;  %v5885_v27 = vor.u32 %v6222_v46, %v5882_v21  ;;  %v6198_v32 = vld [vmem:[#allocation7 + $0x684] sm:$0xf]  ;;  %v5930_v53 = vld [vmem:[#allocation7 + $0x7a8] sm:$0xf0] }
 0x1bc   :  { %3745 = vmatpush.bf16.msrb.mxu0 %v5613_v8  ;;  %v3497_v56 = vpop.f32.mrf.mxu2  ;;  %v5890_v8 = vld [vmem:[#allocation7 + $0x758] sm:$0xf0]  ;;  %v5789_v48 = vor.u32 %v6198_v32, %v5786_v37  ;;  %v6234_v50 = vld [vmem:[#allocation7 + $0x7a4] sm:$0xf] }
 0x1bd   :  { %3759 = vmatpush.bf16.msrb.mxu1 %v5677_v3  ;;  %v3498_v7 = vadd.f32 %v3497_v56, %v6882_v25  ;;  %v3511_v28 = vpop.f32.mrf.mxu3  ;;  %v5805_v25 = vor.u32 %v6202_v19, %v5802_v57  ;;  %v5893_v12 = vor.u32 %v6224_v6, %v5890_v8  ;;  %v6214_v57 = vld [vmem:[#allocation7 + $0x704] sm:$0xf]  ;;  %v5850_v6 = vld [vmem:[#allocation7 + $0x708] sm:$0xf0] }
 0x1be   :  { %3769 = vmatpush.bf16.msrb.mxu2 %v5773_v35  ;;  %v6240_v35 = vld [vmem:[#allocation7 + $0x7d4] sm:$0xf]  ;;  %v6230_v8 = vld [vmem:[#allocation7 + $0x784] sm:$0xf] }
 0x1bf   :  { %3783 = vmatpush.bf16.msrb.mxu3 %v5837_v55  ;;  %v3512_v3 = vadd.f32 %v3511_v28, %v3498_v7  ;;  %v6184_v55 = vld [vmem:[#allocation7 + $0x614] sm:$0xf]  ;;  %v5858_v28 = vld [vmem:[#allocation7 + $0x718] sm:$0xf0] }
 0x1c0   :  { %3746 = vmatpush.bf16.msrb.mxu0 %v5605_v58 }
 0x1c1   :  { %3760 = vmatpush.bf16.msrb.mxu1 %v5669_v1 }
 0x1c2   :  { %3770 = vmatpush.bf16.msrb.mxu2 %v5765_v23  ;;  %v5733_v23 = vor.u32 %v6184_v55, %v5730_v38 }
 0x1c3   :  { %3784 = vmatpush.bf16.msrb.mxu3 %v5829_v14 }
 0x1c4   :  { %3747 = vmatpush.bf16.msrb.mxu0 %v5597_v33  ;;  %v3525_v58 = vpop.f32.mrf.mxu0  ;;  %v3499_v24 = vpop.f32.mrf.mxu2 }
 0x1c5   :  { %3761 = vmatpush.bf16.msrb.mxu1 %v5661_v22  ;;  %v3526_v1 = vadd.f32 %v3525_v58, %v3512_v3  ;;  %v3539_v36 = vpop.f32.mrf.mxu1  ;;  %v3500_v14 = vadd.f32 %v3499_v24, %v6884_v9  ;;  %v3513_v5 = vpop.f32.mrf.mxu3  ;;  %v5874_v22 = vld [vmem:[#allocation7 + $0x738] sm:$0xf0]  ;;  %v5914_v3 = vld [vmem:[#allocation7 + $0x788] sm:$0xf0] }
 0x1c6   :  { %3771 = vmatpush.bf16.msrb.mxu2 %v5757_v26  ;;  %v5877_v9 = vor.u32 %v6220_v34, %v5874_v22 }
 0x1c7   :  { %3785 = vmatpush.bf16.msrb.mxu3 %v5821_v41  ;;  %3748 = vmatmul.bf16.vlgmr.msrb.gmra.mxu0 %v6814_v13  ;;  %v5957_v13 = vor.u32 %v6240_v35, %v5954_v39  ;;  %v3540_v33 = vadd.f32 %v3539_v36, %v3526_v1  ;;  %v3514_v26 = vadd.f32 %v3513_v5, %v3500_v14  ;;  %v6236_v41 = vld [vmem:[#allocation7 + $0x7b4] sm:$0xf] }
 0x1c8   :  { %3796 = vmatpush.bf16.msra.mxu0 %v5909_v42  ;;  %3762 = vmatmul.bf16.vlgmr.msrb.gmra.mxu1 %v6816_v16  ;;  %v5946_v16 = vld [vmem:[#allocation7 + $0x7c8] sm:$0xf0]  ;;  %v5938_v42 = vld [vmem:[#allocation7 + $0x7b8] sm:$0xf0]  ;;  %v5853_v35 = vor.u32 %v6214_v57, %v5850_v6  ;;  %v5917_v39 = vor.u32 %v6230_v8, %v5914_v3 }
 0x1c9   :  { %3810 = vmatpush.bf16.msra.mxu1 %v5973_v43  ;;  %v5949_v20 = vor.u32 %v6238_v31, %v5946_v16  ;;  %v5941_v49 = vor.u32 %v6236_v41, %v5938_v42  ;;  %v6218_v43 = vld [vmem:[#allocation7 + $0x724] sm:$0xf] }
 0x1ca   :  { %3772 = vmatpush.bf16.msrb.mxu2 %v5749_v54  ;;  %v5869_v56 = vor.u32 %v6218_v43, %v5866_v51 }
 0x1cb   :  { %3786 = vmatpush.bf16.msrb.mxu3 %v5813_v62  ;;  %v5933_v62 = vor.u32 %v6234_v50, %v5930_v53  ;;  %v3831_v53 = vpop.permute.xlu0 %3830 }
 0x1cc   :  { %3797 = vmatpush.bf16.msra.mxu0 %v5901_v0  ;;  %v3527_v17 = vpop.f32.mrf.mxu0  ;;  %v6216_v0 = vld [vmem:[#allocation7 + $0x714] sm:$0xf] }
 0x1cd   :  { %3811 = vmatpush.bf16.msra.mxu1 %v5965_v4  ;;  %v3528_v59 = vadd.f32 %v3527_v17, %v3514_v26  ;;  %v3541_v54 = vpop.f32.mrf.mxu1  ;;  %v5861_v19 = vor.u32 %v6216_v0, %v5858_v28  ;;  %v5925_v4 = vor.u32 %v6232_v10, %v5922_v2 }
 0x1ce   :  { %3773 = vmatpush.bf16.msrb.mxu2 %v5741_v11 }
 0x1cf   :  { %3787 = vmatpush.bf16.msrb.mxu3 %v5805_v25  ;;  %v3542_v7 = vadd.f32 %v3541_v54, %v3528_v59  ;;  %v3850_v54 = vpop.permute.xlu1 %3849 }
 0x1d0   :  { %3798 = vmatpush.bf16.msra.mxu0 %v5893_v12 }
 0x1d1   :  { %3812 = vmatpush.bf16.msra.mxu1 %v5957_v13 }
 0x1d2   :  { %3774 = vmatpush.bf16.msrb.mxu2 %v5733_v23 }
 0x1d3   :  { %3788 = vmatpush.bf16.msrb.mxu3 %v5797_v47  ;;  %v3836_v8 = vpop.permute.xlu0 %3835 }
 0x1d4   :  { %3799 = vmatpush.bf16.msra.mxu0 %v5885_v27 }
 0x1d5   :  { %3813 = vmatpush.bf16.msra.mxu1 %v5949_v20 }
 0x1d6   :  { %3775 = vmatpush.bf16.msrb.mxu2 %v5725_v45 }
 0x1d7   :  { %3789 = vmatpush.bf16.msrb.mxu3 %v5789_v48 }
 0x1d8   :  { %3800 = vmatpush.bf16.msra.mxu0 %v5877_v9 }
 0x1d9   :  { %3814 = vmatpush.bf16.msra.mxu1 %v5941_v49  ;;  %3776 = vmatmul.bf16.vlgmr.msrb.gmra.mxu2 %v6836_v44 }
 0x1da   :  { %3790 = vmatmul.bf16.vlgmr.msrb.gmra.mxu3 %v6841_v52 }
 0x1dc   :  { %3801 = vmatpush.bf16.msra.mxu0 %v5869_v56  ;;  %v3553_v11 = vpop.f32.mrf.mxu2 }
 0x1dd   :  { %3815 = vmatpush.bf16.msra.mxu1 %v5933_v62  ;;  %v3554_v44 = vadd.f32 %v3553_v11, %v3540_v33  ;;  %v3567_v25 = vpop.f32.mrf.mxu3  ;;  %v3868_v62 = vpop.permute.xlu2 %3867 }
 0x1df   :  { %v3568_v52 = vadd.f32 %v3567_v25, %v3554_v44  ;;  %v6909_v44 = vpop.permute.xlu1 %3853 }
 0x1e0   :  { %3802 = vmatpush.bf16.msra.mxu0 %v5861_v19 }
 0x1e1   :  { %3816 = vmatpush.bf16.msra.mxu1 %v5925_v4 }
 0x1e4   :  { %3803 = vmatpush.bf16.msra.mxu0 %v5853_v35  ;;  %v3581_v12 = vpop.f32.mrf.mxu0  ;;  %v3555_v38 = vpop.f32.mrf.mxu2 }
 0x1e5   :  { %3817 = vmatpush.bf16.msra.mxu1 %v5917_v39  ;;  %v3582_v55 = vadd.f32 %v3581_v12, %v3568_v52  ;;  %v3595_v40 = vpop.f32.mrf.mxu1  ;;  %v3556_v13 = vadd.f32 %v3555_v38, %v3542_v7  ;;  %v3569_v15 = vpop.f32.mrf.mxu3 }
 0x1e6   :  { %v6911_v52 = vpop.permute.xlu2 %3871 }
 0x1e7   :  { %3804 = vmatmul.bf16.vlgmr.msra.gmra.mxu0 %v6848_v63  ;;  %v6896_v46 = vadd.f32 %v3595_v40, %v3582_v55  ;;  %v3570_v21 = vadd.f32 %v3569_v15, %v3556_v13 }
 0x1e8   :  { %3818 = vmatmul.bf16.vlgmr.msra.gmra.mxu1 %v6850_v61 }
 0x1ec   :  { %v3583_v58 = vpop.f32.mrf.mxu0 }
 0x1ed   :  { %v3584_v31 = vadd.f32 %v3583_v58, %v3570_v21  ;;  %v3597_v16 = vpop.f32.mrf.mxu1 }
 0x1ef   :  { %v6898_v1 = vadd.f32 %v3597_v16, %v3584_v31  ;;  %v6918_v16 = vld [vmem:[%s6952_s5 + $0x8] sm:$0x1f] }
 0x1fc   :  { %v3609_v23 = vpop.f32.mrf.mxu2 }
 0x1fd   :  { %v3623_v24 = vpop.f32.mrf.mxu3  ;;  %v3610_v29 = vadd.f32 %v3609_v23, %v6860_v18 }
 0x1ff   :  { %v3624_v32 = vadd.f32 %v3623_v24, %v3610_v29  ;;  %v3839_v24 = vperm.slane %v6918_v16, 0  ;;  %v3890_v29 = vpop.permute.xlu1 %3889 }
 0x204   :  { %v3637_v63 = vpop.f32.mrf.mxu0  ;;  %v3611_v61 = vpop.f32.mrf.mxu2 }
 0x205   :  { %v3651_v36 = vpop.f32.mrf.mxu1  ;;  %v3625_v47 = vpop.f32.mrf.mxu3  ;;  %v3638_v33 = vadd.f32 %v3637_v63, %v3624_v32  ;;  %v3612_v34 = vadd.f32 %v3611_v61, %v6865_v60  ;;  %v6905_v60 = vld [vmem:[%s6952_s5] sm:$0x1f]  ;;  %v3841_v32 = vmul.f32 %v3839_v24, %v3831_v53 }
 0x206   :  { %v3838_v4 = vperm.slane %v6905_v60, 0  ;;  %v3856_v11 = vperm.slane %v6905_v60, 1  ;;  %v3874_v13 = vperm.slane %v6905_v60, 2 }
 0x207   :  { %v3652_v26 = vadd.f32 %v3651_v36, %v3638_v33  ;;  %v3626_v42 = vadd.f32 %v3625_v47, %v3612_v34  ;;  %v3892_v47 = vperm.slane %v6905_v60, 3 }
 0x208   :  { %v3840_v39 = vmul.f32 %v3838_v4, %v3831_v53  ;;  %v3858_v15 = vmul.f32 %v3856_v11, %v3850_v54  ;;  %v3876_v36 = vmul.f32 %v3874_v13, %v3868_v62 }
 0x20a   :  { %v3844_v21 = vadd.f32 %v3840_v39, %v6896_v46  ;;  %v3875_v46 = vperm.slane %v6918_v16, 2 }
 0x20c   :  { %v3639_v14 = vpop.f32.mrf.mxu0  ;;  %v3862_v61 = vadd.f32 %v3858_v15, %v3844_v21  ;;  %v3877_v53 = vmul.f32 %v3875_v46, %v3868_v62  ;;  %v3896_v62 = vmul.f32 %v3892_v47, %v3890_v29  ;;  %v3879_v21 = vmul.f32 %v3875_v46, %v6911_v52 }
 0x20d   :  { %v3653_v27 = vpop.f32.mrf.mxu1  ;;  %v3640_v48 = vadd.f32 %v3639_v14, %v3626_v42  ;;  %v3842_v14 = vmul.f32 %v3838_v4, %v3836_v8 }
 0x20f   :  { %v3654_v17 = vadd.f32 %v3653_v27, %v3640_v48  ;;  %v3886_v27 = vpop.permute.xlu0 %3885  ;;  %v3893_v48 = vperm.slane %v6918_v16, 3 }
 0x210   :  { %v3894_v42 = vmul.f32 %v3892_v47, %v3886_v27 }
 0x21c   :  { %v3665_v5 = vpop.f32.mrf.mxu2 }
 0x21d   :  { %v3679_v30 = vpop.f32.mrf.mxu3  ;;  %v3666_v45 = vadd.f32 %v3665_v5, %v3652_v26  ;;  %v3860_v26 = vmul.f32 %v3856_v11, %v6909_v44 }
 0x21f   :  { %v3680_v49 = vadd.f32 %v3679_v30, %v3666_v45  ;;  %v3910_v45 = vperm.slane %v6905_v60, 4 }
 0x224   :  { %v3693_v20 = vpop.f32.mrf.mxu0  ;;  %v3667_v22 = vpop.f32.mrf.mxu2 }
 0x225   :  { %v3707_v37 = vpop.f32.mrf.mxu1  ;;  %v3681_v41 = vpop.f32.mrf.mxu3  ;;  %v3694_v50 = vadd.f32 %v3693_v20, %v3680_v49  ;;  %v3668_v59 = vadd.f32 %v3667_v22, %v3654_v17  ;;  %v3857_v20 = vperm.slane %v6918_v16, 1  ;;  %v3846_v49 = vadd.f32 %v3842_v14, %v6898_v1  ;;  %v3920_v1 = vld [vmem:[%s6953_s6] sm:$0x3] }
 0x226   :  { %v3922_v39 = vperm.slane %v3920_v1, 0 }
 0x227   :  { %v3708_v56 = vadd.f32 %v3707_v37, %v3694_v50  ;;  %v3682_v0 = vadd.f32 %v3681_v41, %v3668_v59  ;;  %v3880_v41 = vadd.f32 %v3876_v36, %v3862_v61  ;;  %v3859_v17 = vmul.f32 %v3857_v20, %v3850_v54 }
 0x228   :  { %v3911_v50 = vperm.slane %v6918_v16, 4  ;;  %v3878_v59 = vmul.f32 %v3874_v13, %v6911_v52 }
 0x22c   :  { %v3695_v9 = vpop.f32.mrf.mxu0 }
 0x22d   :  { %v3709_v43 = vpop.f32.mrf.mxu1  ;;  %v3696_v2 = vadd.f32 %v3695_v9, %v3682_v0  ;;  %v3904_v9 = vpop.permute.xlu2 %3903 }
 0x22e   :  { %v3913_v4 = vmul.f32 %v3911_v50, %v3904_v9 }
 0x22f   :  { %v3710_v3 = vadd.f32 %v3709_v43, %v3696_v2 }
 0x23c   :  { %v3721_v51 = vpop.f32.mrf.mxu2 }
 0x23d   :  { %v3735_v18 = vpop.f32.mrf.mxu3  ;;  %v3722_v28 = vadd.f32 %v3721_v51, %v3708_v56  ;;  %v3898_v56 = vadd.f32 %v3894_v42, %v3880_v41 }
 0x23f   :  { %v3736_v57 = vadd.f32 %v3735_v18, %v3722_v28  ;;  %v3895_v28 = vmul.f32 %v3893_v48, %v3886_v27 }
 0x244   :  { %v3749_v7 = vpop.f32.mrf.mxu0  ;;  %v3723_v19 = vpop.f32.mrf.mxu2 }
 0x245   :  { %v3763_v10 = vpop.f32.mrf.mxu1  ;;  %v3737_v6 = vpop.f32.mrf.mxu3  ;;  %v3750_v35 = vadd.f32 %v3749_v7, %v3736_v57  ;;  %v3724_v25 = vadd.f32 %v3723_v19, %v3710_v3  ;;  %v3912_v7 = vmul.f32 %v3910_v45, %v3904_v9 }
 0x247   :  { %v3764_v55 = vadd.f32 %v3763_v10, %v3750_v35  ;;  %v3738_v58 = vadd.f32 %v3737_v6, %v3724_v25  ;;  %v3864_v10 = vadd.f32 %v3860_v26, %v3846_v49  ;;  %v3843_v6 = vmul.f32 %v3839_v24, %v3836_v8  ;;  %v3908_v25 = vpop.permute.xlu1 %3907 }
 0x248   :  { %v3916_v3 = vadd.f32 %v3912_v7, %v3898_v56  ;;  %v3897_v24 = vmul.f32 %v3893_v48, %v3890_v29 }
 0x249   :  { %v3882_v11 = vadd.f32 %v3878_v59, %v3864_v10 }
 0x24c   :  { %v3751_v12 = vpop.f32.mrf.mxu0 }
 0x24d   :  { %v3765_v38 = vpop.f32.mrf.mxu1  ;;  %v3752_v63 = vadd.f32 %v3751_v12, %v3738_v58  ;;  %v3914_v58 = vmul.f32 %v3910_v45, %v3908_v25 }
 0x24f   :  { %v3766_v33 = vadd.f32 %v3765_v38, %v3752_v63  ;;  %v3923_v38 = vperm.slane %v3920_v1, 1  ;;  %v3915_v63 = vmul.f32 %v3911_v50, %v3908_v25 }
 0x25c   :  { %v3777_v40 = vpop.f32.mrf.mxu2 }
 0x25d   :  { %v3778_v31 = vadd.f32 %v3777_v40, %v3764_v55  ;;  %v3791_v23 = vpop.f32.mrf.mxu3  ;;  %v3861_v40 = vmul.f32 %v3857_v20, %v6909_v44 }
 0x25f   :  { %v3792_v5 = vadd.f32 %v3791_v23, %v3778_v31  ;;  %v3900_v31 = vadd.f32 %v3896_v62, %v3882_v11  ;;  %v3926_v23 = vadd.f32 %v3922_v39, %v3916_v3  ;;  %v3931_v3 = vld [vmem:[%s6955_s8] sm:$0x3] }
 0x261   :  { %v3918_v47 = vadd.f32 %v3914_v58, %v3900_v31 }
 0x264   :  { %v3805_v30 = vpop.f32.mrf.mxu0  ;;  %v3779_v22 = vpop.f32.mrf.mxu2 }
 0x265   :  { %v3806_v37 = vadd.f32 %v3805_v30, %v3792_v5  ;;  %v3819_v34 = vpop.f32.mrf.mxu1  ;;  %v3780_v51 = vadd.f32 %v3779_v22, %v3766_v33  ;;  %v3793_v0 = vpop.f32.mrf.mxu3  ;;  %v3928_v5 = vadd.f32 %v3922_v39, %v3918_v47 }
 0x267   :  { %v3820_v43 = vadd.f32 %v3819_v34, %v3806_v37  ;;  %v3794_v2 = vadd.f32 %v3793_v0, %v3780_v51 }
 0x269   :  { %v3845_v18 = vadd.f32 %v3841_v32, %v3820_v43  ;;  %v6633_v32 = vmov 256.0  }
 0x26a   :  { %6484 = vrcp.f32 %v6633_v32 }
 0x26b   :  { %v3863_v60 = vadd.f32 %v3859_v17, %v3845_v18 }
 0x26c   :  { %v3807_v19 = vpop.f32.mrf.mxu0 }
 0x26d   :  { %v3881_v54 = vadd.f32 %v3877_v53, %v3863_v60  ;;  %v3808_v57 = vadd.f32 %v3807_v19, %v3794_v2  ;;  %v3821_v35 = vpop.f32.mrf.mxu1 }
 0x26f   :  { %v3822_v12 = vadd.f32 %v3821_v35, %v3808_v57  ;;  %v3899_v55 = vadd.f32 %v3895_v28, %v3881_v54 }
 0x270   :  { %v6485_v52 = vpop.eup %6484 }
 0x271   :  { %v3847_v13 = vadd.f32 %v3843_v6, %v3822_v12  ;;  %v3917_v15 = vadd.f32 %v3913_v4, %v3899_v55  ;;  %v3939_v46 = vmul.f32 256.0, %v6485_v52  ;;  %vm3943_vm1 = vweird.f32 %v6485_v52  ;;  %v3930_v4 = vld [vmem:[%s6954_s7] sm:$0x3]  ;;  %s6634_s7 = smov [#allocation10]  }
 0x272   :  { %v3990_v62 = vperm.slane %v3930_v4, 0  ;;  %v3991_v35 = vperm.slane %v3930_v4, 1  ;;  %v3999_v55 = vperm.slane %v3931_v3, 0  ;;  %s4015_s8 = sshll.u32 %s6634_s7, 4  ;;  %s4016_s8 = int_to_ptr.vmem [resolvable:$true] %s4015_s8 }
 0x273   :  { %v3865_v16 = vadd.f32 %v3861_v40, %v3847_v13  ;;  %v3927_v8 = vadd.f32 %v3923_v38, %v3917_v15  ;;  %v3940_v20 = vsub.f32 1.0, %v3939_v46 }
 0x275   :  { %v3883_v36 = vadd.f32 %v3879_v21, %v3865_v16  ;;  %v3932_v61 = vadd.f32 %v3927_v8, %v3926_v23  ;;  %v3941_v33 = vmul.f32 %v6485_v52, %v3940_v20 }
 0x277   :  { %3933 = vadd.xlane.f32.xlu2 %v3932_v61  ;;  %v3901_v14 = vadd.f32 %v3897_v24, %v3883_v36  ;;  %v3942_v37 = vadd.f32 %v6485_v52, %v3941_v33 }
 0x279   :  { %v3919_v27 = vadd.f32 %v3915_v63, %v3901_v14  ;;  %v3944_v29 = vsel %vm3943_vm1, %v6485_v52, %v3942_v37 }
 0x27b   :  { %v3929_v30 = vadd.f32 %v3923_v38, %v3919_v27  ;;  %v4000_v38 = vperm.slane %v3931_v3, 1 }
 0x27d   :  { %v3935_v44 = vadd.f32 %v3929_v30, %v3928_v5 }
 0x27f   :  { %3936 = vadd.xlane.f32.xlu0 %v3935_v44 }
 0x2ea   :  { %v3934_v34 = vpop.xlane.xlu2 %3933 }
 0x2eb   :  { %v3945_v22 = vmul.f32 %v3944_v29, %v3934_v34 }
 0x2ed   :  { %v3947_v26 = vsub.f32 %v3926_v23, %v3945_v22  ;;  %v3948_v41 = vsub.f32 %v3927_v8, %v3945_v22 }
 0x2ef   :  { %v3951_v42 = vmul.f32 %v3947_v26, %v3947_v26  ;;  %v3952_v45 = vmul.f32 %v3948_v41, %v3948_v41 }
 0x2f1   :  { %v3955_v48 = vadd.f32 %v3952_v45, %v3951_v42 }
 0x2f2   :  { %v3937_v9 = vpop.xlane.xlu0 %3936 }
 0x2f3   :  { %v3946_v49 = vmul.f32 %v3944_v29, %v3937_v9  ;;  %3956 = vadd.xlane.f32.xlu1 %v3955_v48 }
 0x2f5   :  { %v3949_v43 = vsub.f32 %v3928_v5, %v3946_v49  ;;  %v3950_v51 = vsub.f32 %v3929_v30, %v3946_v49 }
 0x2f7   :  { %v3953_v17 = vmul.f32 %v3949_v43, %v3949_v43  ;;  %v3954_v50 = vmul.f32 %v3950_v51, %v3950_v51 }
 0x2f9   :  { %v3958_v18 = vadd.f32 %v3954_v50, %v3953_v17 }
 0x2fb   :  { %3959 = vadd.xlane.f32.xlu2 %v3958_v18 }
 0x366   :  { %v3957_v53 = vpop.xlane.xlu1 %3956 }
 0x367   :  { %v3961_v59 = vmul.f32 %v3957_v53, %v3944_v29 }
 0x369   :  { %v3963_v56 = vadd.f32 1e-12, %v3961_v59 }
 0x36b   :  { %6486 = vrsqrt.f32 %v3963_v56  ;;  %vm3971_vm3 = vweird.f32 %v3963_v56 }
 0x36e   :  { %v3960_v7 = vpop.xlane.xlu2 %3959 }
 0x36f   :  { %v3962_v0 = vmul.f32 %v3960_v7, %v3944_v29 }
 0x371   :  { %v6487_v28 = vpop.eup %6486  ;;  %v3964_v10 = vadd.f32 1e-12, %v3962_v0 }
 0x372   :  { %v3966_v60 = vmul.f32 %v6487_v28, %v3963_v56  ;;  %vm3972_vm2 = vweird.f32 %v6487_v28 }
 0x373   :  { %6488 = vrsqrt.f32 %v3964_v10  ;;  %vm3973_vm4 = vmor %vm3971_vm3, %vm3972_vm2  ;;  %vm3981_vm6 = vweird.f32 %v3964_v10 }
 0x374   :  { %v3967_v2 = vmul.f32 %v6487_v28, %v3966_v60 }
 0x376   :  { %v3968_v1 = vmul.f32 0.5, %v3967_v2 }
 0x378   :  { %v3969_v19 = vsub.f32 1.5, %v3968_v1 }
 0x379   :  { %v6489_v54 = vpop.eup %6488 }
 0x37a   :  { %v3970_v57 = vmul.f32 %v6487_v28, %v3969_v19  ;;  %v3976_v6 = vmul.f32 %v6489_v54, %v3964_v10  ;;  %vm3982_vm5 = vweird.f32 %v6489_v54 }
 0x37b   :  { %vm3983_vm7 = vmor %vm3981_vm6, %vm3982_vm5 }
 0x37c   :  { %v3974_v39 = vsel %vm3973_vm4, %v6487_v28, %v3970_v57  ;;  %v3977_v11 = vmul.f32 %v6489_v54, %v3976_v6 }
 0x37d   :  { %v3985_v25 = vmul.f32 %v3974_v39, %v3947_v26  ;;  %v3986_v12 = vmul.f32 %v3974_v39, %v3948_v41 }
 0x37e   :  { %v3978_v40 = vmul.f32 0.5, %v3977_v11 }
 0x37f   :  { %v3994_v13 = vmul.f32 %v3990_v62, %v3985_v25  ;;  %v3995_v15 = vmul.f32 %v3991_v35, %v3986_v12 }
 0x380   :  { %v3979_v21 = vsub.f32 1.5, %v3978_v40 }
 0x381   :  { %v4003_v58 = vadd.f32 %v3999_v55, %v3994_v13  ;;  %v4004_v31 = vadd.f32 %v4000_v38, %v3995_v15 }
 0x382   :  { %v3980_v16 = vmul.f32 %v6489_v54, %v3979_v21 }
 0x383   :  { %v4007_v23 = vpack.c.bf16 %v4004_v31, %v4003_v58 }
 0x384   :  { %v3984_v8 = vsel %vm3983_vm7, %v6489_v54, %v3980_v16 }
 0x385   :  { %v3987_v24 = vmul.f32 %v3984_v8, %v3949_v43  ;;  %v3988_v63 = vmul.f32 %v3984_v8, %v3950_v51  ;;  %4009 = vst [vmem:[#allocation10] sm:$0xff] %v4007_v23 }
 0x387   :  { %v3996_v36 = vmul.f32 %v3990_v62, %v3987_v24  ;;  %v3997_v61 = vmul.f32 %v3991_v35, %v3988_v63 }
 0x389   :  { %v4005_v47 = vadd.f32 %v3999_v55, %v3996_v36  ;;  %v4006_v14 = vadd.f32 %v4000_v38, %v3997_v61 }
 0x38b   :  { %v4008_v27 = vpack.c.bf16 %v4006_v14, %v4005_v47 }
 0x38d   :  { %4010 = vst [vmem:[#allocation10 + $0x8] sm:$0xff] %v4008_v27 }
 0x38e   :  { %4023 = dma.vmem_to_hbm [thread:$0]  %s4016_s8, 256, %s4018_s1, [#allocation4], %s6625_s29, %s6625_s29, %s6626_s30  }
 0x38f   :  { %6616 = dma.done.wait [#allocation4], 256  }
 0x390   :  { %6617 = vsyncadd [#allocation4], 4294967040 }
 0x391   :  { %4028 = vsyncpa [#allocation3], 1 }
 0x392   :  { %4029 = vsyncpa [#allocation6], 1 }
 0x393   :  { %4030 = vsyncpa [#allocation9], 1 }
 0x394   :  { %4031 = vsyncpa [#allocation4], 1 }

</bundles_post_ra>
